<compile_context>
chip_gen: v6e
topology: v6e:2x2x1
jax: 0.10.0
libtpu: 0.0.40
codegen_flags: <defaults>
</compile_context>

<pallas_src>
import jax
import jax.numpy as jnp
from jax.experimental import pallas as pl
from jax.experimental.pallas import tpu as pltpu

INP = 432
HID1 = 256
HID2 = 256
OUTP = 521
OUTP_PAD = 640  # next multiple of 128 (lane-dense output / W3 slab)


def _elu(h):
    # F.elu with alpha=1.0. exp() of large positive h gives inf but is masked
    # by the where (no NaN), matching the original kernel's behavior.
    return jnp.where(h > 0.0, h, jnp.exp(h) - 1.0)


def _pfnn_kernel(coef_ref, x_ref, w1_ref, b1_ref, b2_ref, b3_ref,
                 w2_hbm, w3_hbm, out_ref, w2_vmem, w3_vmem, sem):
    """coef_ref: SMEM (4,) f32 — blend coefficient of net i (permutation folded
       in on the host).
    x_ref:   VMEM (B, INP) f32.
    w1_ref:  VMEM (INP, 4*HID1) bf16 packed weights; net i is lane slice
             [i*HID1, (i+1)*HID1).
    bN_ref:  VMEM (4, out_dim) f32 biases (net-major).
    w2_hbm / w3_hbm: packed bf16 weights left in HBM; manually DMA'd into the
             VMEM scratch buffers so the copy overlaps earlier-layer compute.
    """
    # Kick off layer-2/3 weight DMA before any compute.
    cp_w2 = pltpu.make_async_copy(w2_hbm, w2_vmem, sem.at[0])
    cp_w3 = pltpu.make_async_copy(w3_hbm, w3_vmem, sem.at[1])
    cp_w2.start()
    cp_w3.start()

    c0 = coef_ref[0]
    c1 = coef_ref[1]
    c2 = coef_ref[2]
    c3 = coef_ref[3]

    def blend(y_cat, b_ref, n):
        # y_cat: (B, 4*n) f32; slices are static and 128-aligned (n % 128 == 0).
        y = (c0 * y_cat[:, 0 * n:1 * n] + c1 * y_cat[:, 1 * n:2 * n]
             + c2 * y_cat[:, 2 * n:3 * n] + c3 * y_cat[:, 3 * n:4 * n])
        b = (c0 * b_ref[0:1, :] + c1 * b_ref[1:2, :]
             + c2 * b_ref[2:3, :] + c3 * b_ref[3:4, :])
        return y + b

    x = x_ref[...].astype(jnp.bfloat16)
    y1 = jnp.dot(x, w1_ref[...], preferred_element_type=jnp.float32)
    h1 = _elu(blend(y1, b1_ref, HID1)).astype(jnp.bfloat16)

    cp_w2.wait()
    y2 = jnp.dot(h1, w2_vmem[...], preferred_element_type=jnp.float32)
    h2 = _elu(blend(y2, b2_ref, HID2)).astype(jnp.bfloat16)

    cp_w3.wait()
    y3 = jnp.dot(h2, w3_vmem[...], preferred_element_type=jnp.float32)
    out_ref[...] = blend(y3, b3_ref, OUTP_PAD)


def pfnn_forward(x, packed, phase):
    """x: (B, INP) f32.  packed: output of pack_params (built once, device
    resident).  phase: host Python float — the int()/% arithmetic below matches
    the PyTorch forward and requires a concrete float (not a traced scalar)."""
    B = x.shape[0]

    # Host-side phase arithmetic, identical to the PyTorch forward.
    w = phase * 2.0 % 1
    k = -int(phase * -2.0)
    w2 = w * w
    w3 = w2 * w
    # Catmull-Rom coefficients of a1..a4 (from the original blend expression),
    # re-indexed onto the fixed net order 0..3 (a_j is net (k+j-1) % 4).
    c_a = (1.0 - 2.5 * w2 + 1.5 * w3,        # coefficient of a1
           0.5 * w + 2.0 * w2 - 1.5 * w3,    # coefficient of a2
           -0.5 * w2 + 0.5 * w3,             # coefficient of a3
           -0.5 * w + w2 - 0.5 * w3)         # coefficient of a4
    coef_list = [0.0] * 4
    for j in range(4):
        coef_list[(k + j) % 4] = c_a[j]
    coefs = jnp.array(coef_list, dtype=jnp.float32)

    smem = pl.BlockSpec(memory_space=pltpu.MemorySpace.SMEM)
    vmem = pl.BlockSpec(memory_space=pltpu.MemorySpace.VMEM)
    hbm = pl.BlockSpec(memory_space=pl.ANY)

    out = pl.pallas_call(
        _pfnn_kernel,
        out_shape=jax.ShapeDtypeStruct((B, OUTP_PAD), jnp.float32),
        in_specs=[smem, vmem, vmem, vmem, vmem, vmem, hbm, hbm],
        out_specs=vmem,
        scratch_shapes=[
            pltpu.VMEM((HID1, 4 * HID2), jnp.bfloat16),      # W2 landing buffer
            pltpu.VMEM((HID2, 4 * OUTP_PAD), jnp.bfloat16),  # W3 landing buffer
            pltpu.SemaphoreType.DMA((2,)),
        ],
        compiler_params=pltpu.CompilerParams(
            vmem_limit_bytes=32 * 1024 * 1024),
    )(coefs, x, packed["W1"], packed["b1"], packed["b2"], packed["b3"],
      packed["W2"], packed["W3"])
    return out[:, :OUTP]


def init_params(key):
    """Deterministic init mimicking nn.Linear default (uniform +-1/sqrt(fan_in)),
    stored in PyTorch (out, in) layout, stacked over the 4 nets."""
    ks = jax.random.split(key, 24)

    def lin(kw, kb, out_dim, in_dim):
        bound = 1.0 / jnp.sqrt(jnp.float32(in_dim))
        W = jax.random.uniform(kw, (out_dim, in_dim), jnp.float32, -bound, bound)
        b = jax.random.uniform(kb, (out_dim,), jnp.float32, -bound, bound)
        return W, b

    W1s, b1s, W2s, b2s, W3s, b3s = [], [], [], [], [], []
    idx = 0
    for _ in range(4):
        W, b = lin(ks[idx], ks[idx + 1], HID1, INP); idx += 2
        W1s.append(W); b1s.append(b)
        W, b = lin(ks[idx], ks[idx + 1], HID2, HID1); idx += 2
        W2s.append(W); b2s.append(b)
        W, b = lin(ks[idx], ks[idx + 1], OUTP, HID2); idx += 2
        W3s.append(W); b3s.append(b)
    return {
        "W1": jnp.stack(W1s), "b1": jnp.stack(b1s),
        "W2": jnp.stack(W2s), "b2": jnp.stack(b2s),
        "W3": jnp.stack(W3s), "b3": jnp.stack(b3s),
    }


def pack_params(params):
    """One-time packing (NOT on the per-call path): transpose each net's weight
    to (in, out), pad the last layer's out dim to 640, concatenate the 4 nets
    along the output (lane) axis, and cast weights to bf16."""
    def cat_w(Ws, pad_to=None):
        mats = []
        for i in range(4):
            Wt = Ws[i].T  # (in, out)
            if pad_to is not None and Wt.shape[1] < pad_to:
                Wt = jnp.pad(Wt, ((0, 0), (0, pad_to - Wt.shape[1])))
            mats.append(Wt)
        return jnp.concatenate(mats, axis=1).astype(jnp.bfloat16)

    def pad_b(bs, pad_to=None):
        b = bs
        if pad_to is not None and b.shape[1] < pad_to:
            b = jnp.pad(b, ((0, 0), (0, pad_to - b.shape[1])))
        return b.astype(jnp.float32)

    return {
        "W1": cat_w(params["W1"]),            # (INP,  4*HID1)     bf16
        "b1": pad_b(params["b1"]),            # (4, HID1)          f32
        "W2": cat_w(params["W2"]),            # (HID1, 4*HID2)     bf16
        "b2": pad_b(params["b2"]),            # (4, HID2)          f32
        "W3": cat_w(params["W3"], OUTP_PAD),  # (HID2, 4*OUTP_PAD) bf16
        "b3": pad_b(params["b3"], OUTP_PAD),  # (4, OUTP_PAD)      f32
    }


def ref_forward(x, params, phase):
    """Pure-JAX f32 reference matching the original PyTorch forward expression."""
    w = phase * 2.0 % 1
    k = -int(phase * -2.0)
    perm = [(k + i) % 4 for i in range(4)]

    def lin(h, i, Wk, bk):
        return h @ params[Wk][i].T + params[bk][i]

    def blend(h, Wk, bk):
        y1 = lin(h, perm[0], Wk, bk)
        y2 = lin(h, perm[1], Wk, bk)
        y3 = lin(h, perm[2], Wk, bk)
        y4 = lin(h, perm[3], Wk, bk)
        return (y1 + w * (y2 / 2.0 - y4 / 2.0)
                + w ** 2.0 * (y4 - y1 * 5.0 / 2.0 + 2.0 * y2 - y3 / 2.0)
                + w ** 3.0 * (y1 * 3.0 / 2.0 - y2 * 3.0 / 2.0 + y3 / 2.0 - y4 / 2.0))

    h1 = jax.nn.elu(blend(x, "W1", "b1"))
    h2 = jax.nn.elu(blend(h1, "W2", "b2"))
    return blend(h2, "W3", "b3")


if __name__ == "__main__":
    key = jax.random.PRNGKey(0)
    k_param, k_x = jax.random.split(key)
    params = init_params(k_param)
    packed = pack_params(params)   # one-time weight packing (bf16, (in, 4*out))

    B = 8
    x = jax.random.normal(k_x, (B, INP), dtype=jnp.float32)
    phase = 0.8  # host scalar, as in the PyTorch forward(x, phase)

    out = jax.block_until_ready(pfnn_forward(x, packed, phase))
    ref = jax.block_until_ready(ref_forward(x, params, phase))

    assert out.shape == (B, OUTP), out.shape
    # Tolerance loosened vs a pure-f32 run because weights/activations are
    # quantized to bf16 in the kernel (accumulation stays f32 on the MXU).
    err = float(jnp.max(jnp.abs(out - ref)))
    assert err < 5e-2, err

    print("KERNEL_OK")
</pallas_src>

<mosaic_0001>
module attributes {stable_mosaic.version = 11 : i64} {
  func.func @_pfnn_kernel(%arg0: memref<4xf32, #tpu.memory_space<smem>>, %arg1: memref<8x432xf32, #tpu.memory_space<vmem>>, %arg2: memref<432x1024xbf16, #tpu.memory_space<vmem>>, %arg3: memref<4x256xf32, #tpu.memory_space<vmem>>, %arg4: memref<4x256xf32, #tpu.memory_space<vmem>>, %arg5: memref<4x640xf32, #tpu.memory_space<vmem>>, %arg6: memref<256x1024xbf16, #tpu.memory_space<any>>, %arg7: memref<256x2560xbf16, #tpu.memory_space<any>>, %arg8: memref<8x640xf32, #tpu.memory_space<vmem>>, %arg9: memref<256x1024xbf16, #tpu.memory_space<vmem>>, %arg10: memref<256x2560xbf16, #tpu.memory_space<vmem>>, %arg11: memref<2x!tpu.dma_semaphore, #tpu.memory_space<semaphore_mem>>) attributes {dimension_semantics = [], scalar_prefetch = 0 : i64, scratch_operands = 3 : i64, tpu.core_type = #tpu.core_type<tc>} {
    %c0_i32 = arith.constant 0 : i32
    %0 = tpu.memref_slice %arg11[%c0_i32] : memref<2x!tpu.dma_semaphore, #tpu.memory_space<semaphore_mem>> -> memref<1x!tpu.dma_semaphore, #tpu.memory_space<semaphore_mem>>
    %1 = tpu.memref_squeeze %0 : memref<1x!tpu.dma_semaphore, #tpu.memory_space<semaphore_mem>> -> memref<!tpu.dma_semaphore, #tpu.memory_space<semaphore_mem>>
    tpu.enqueue_dma source(%arg6 : memref<256x1024xbf16, #tpu.memory_space<any>>) target(%arg9 : memref<256x1024xbf16, #tpu.memory_space<vmem>>) target_semaphore(%1 : memref<!tpu.dma_semaphore, #tpu.memory_space<semaphore_mem>>)
    %c1_i32 = arith.constant 1 : i32
    %2 = tpu.memref_slice %arg11[%c1_i32] : memref<2x!tpu.dma_semaphore, #tpu.memory_space<semaphore_mem>> -> memref<1x!tpu.dma_semaphore, #tpu.memory_space<semaphore_mem>>
    %3 = tpu.memref_squeeze %2 : memref<1x!tpu.dma_semaphore, #tpu.memory_space<semaphore_mem>> -> memref<!tpu.dma_semaphore, #tpu.memory_space<semaphore_mem>>
    tpu.enqueue_dma source(%arg7 : memref<256x2560xbf16, #tpu.memory_space<any>>) target(%arg10 : memref<256x2560xbf16, #tpu.memory_space<vmem>>) target_semaphore(%3 : memref<!tpu.dma_semaphore, #tpu.memory_space<semaphore_mem>>)
    %c0 = arith.constant 0 : index
    %4 = memref.load %arg0[%c0] : memref<4xf32, #tpu.memory_space<smem>>
    %c1 = arith.constant 1 : index
    %5 = memref.load %arg0[%c1] : memref<4xf32, #tpu.memory_space<smem>>
    %c2 = arith.constant 2 : index
    %6 = memref.load %arg0[%c2] : memref<4xf32, #tpu.memory_space<smem>>
    %c3 = arith.constant 3 : index
    %7 = memref.load %arg0[%c3] : memref<4xf32, #tpu.memory_space<smem>>
    %c0_0 = arith.constant 0 : index
    %c0_1 = arith.constant 0 : index
    %8 = vector.load %arg1[%c0_0, %c0_1] : memref<8x432xf32, #tpu.memory_space<vmem>>, vector<8x432xf32>
    %9 = arith.truncf %8 : vector<8x432xf32> to vector<8x432xbf16>
    %c0_2 = arith.constant 0 : index
    %c0_3 = arith.constant 0 : index
    %10 = vector.load %arg2[%c0_2, %c0_3] : memref<432x1024xbf16, #tpu.memory_space<vmem>>, vector<432x1024xbf16>
    %cst = arith.constant dense<0.000000e+00> : vector<8x1024xf32>
    %11 = tpu.matmul %9, %10, %cst {dimension_numbers = #tpu.dot_dimension_numbers<[1], [0], [0], [1], [0, 0, 1, 1], [], []>} : vector<8x432xbf16>, vector<432x1024xbf16>, vector<8x1024xf32> -> vector<8x1024xf32>
    %12 = vector.extract_strided_slice %11 {offsets = [0, 0], sizes = [8, 256], strides = [1, 1]} : vector<8x1024xf32> to vector<8x256xf32>
    %13 = vector.broadcast %4 : f32 to vector<8x256xf32>
    %14 = arith.mulf %13, %12 : vector<8x256xf32>
    %15 = vector.extract_strided_slice %11 {offsets = [0, 256], sizes = [8, 256], strides = [1, 1]} : vector<8x1024xf32> to vector<8x256xf32>
    %16 = vector.broadcast %5 : f32 to vector<8x256xf32>
    %17 = arith.mulf %16, %15 : vector<8x256xf32>
    %18 = arith.addf %14, %17 : vector<8x256xf32>
    %19 = vector.extract_strided_slice %11 {offsets = [0, 512], sizes = [8, 256], strides = [1, 1]} : vector<8x1024xf32> to vector<8x256xf32>
    %20 = vector.broadcast %6 : f32 to vector<8x256xf32>
    %21 = arith.mulf %20, %19 : vector<8x256xf32>
    %22 = arith.addf %18, %21 : vector<8x256xf32>
    %23 = vector.extract_strided_slice %11 {offsets = [0, 768], sizes = [8, 256], strides = [1, 1]} : vector<8x1024xf32> to vector<8x256xf32>
    %24 = vector.broadcast %7 : f32 to vector<8x256xf32>
    %25 = arith.mulf %24, %23 : vector<8x256xf32>
    %26 = arith.addf %22, %25 : vector<8x256xf32>
    %c0_4 = arith.constant 0 : index
    %c0_5 = arith.constant 0 : index
    %27 = vector.load %arg3[%c0_4, %c0_5] : memref<4x256xf32, #tpu.memory_space<vmem>>, vector<1x256xf32>
    %28 = vector.broadcast %4 : f32 to vector<1x256xf32>
    %29 = arith.mulf %28, %27 : vector<1x256xf32>
    %c1_6 = arith.constant 1 : index
    %c0_7 = arith.constant 0 : index
    %30 = vector.load %arg3[%c1_6, %c0_7] : memref<4x256xf32, #tpu.memory_space<vmem>>, vector<1x256xf32>
    %31 = vector.broadcast %5 : f32 to vector<1x256xf32>
    %32 = arith.mulf %31, %30 : vector<1x256xf32>
    %33 = arith.addf %29, %32 : vector<1x256xf32>
    %c2_8 = arith.constant 2 : index
    %c0_9 = arith.constant 0 : index
    %34 = vector.load %arg3[%c2_8, %c0_9] : memref<4x256xf32, #tpu.memory_space<vmem>>, vector<1x256xf32>
    %35 = vector.broadcast %6 : f32 to vector<1x256xf32>
    %36 = arith.mulf %35, %34 : vector<1x256xf32>
    %37 = arith.addf %33, %36 : vector<1x256xf32>
    %c3_10 = arith.constant 3 : index
    %c0_11 = arith.constant 0 : index
    %38 = vector.load %arg3[%c3_10, %c0_11] : memref<4x256xf32, #tpu.memory_space<vmem>>, vector<1x256xf32>
    %39 = vector.broadcast %7 : f32 to vector<1x256xf32>
    %40 = arith.mulf %39, %38 : vector<1x256xf32>
    %41 = arith.addf %37, %40 : vector<1x256xf32>
    %42 = vector.broadcast %41 : vector<1x256xf32> to vector<8x256xf32>
    %43 = arith.addf %26, %42 : vector<8x256xf32>
    %cst_12 = arith.constant 0.000000e+00 : f32
    %44 = vector.broadcast %cst_12 : f32 to vector<8x256xf32>
    %45 = arith.cmpf ogt, %43, %44 : vector<8x256xf32>
    %46 = math.exp %43 : vector<8x256xf32>
    %cst_13 = arith.constant 1.000000e+00 : f32
    %47 = vector.broadcast %cst_13 : f32 to vector<8x256xf32>
    %48 = arith.subf %46, %47 : vector<8x256xf32>
    %49 = arith.select %45, %43, %48 : vector<8x256xi1>, vector<8x256xf32>
    %50 = arith.truncf %49 : vector<8x256xf32> to vector<8x256xbf16>
    %c0_i32_14 = arith.constant 0 : i32
    %51 = tpu.memref_slice %arg11[%c0_i32_14] : memref<2x!tpu.dma_semaphore, #tpu.memory_space<semaphore_mem>> -> memref<1x!tpu.dma_semaphore, #tpu.memory_space<semaphore_mem>>
    %52 = tpu.memref_squeeze %51 : memref<1x!tpu.dma_semaphore, #tpu.memory_space<semaphore_mem>> -> memref<!tpu.dma_semaphore, #tpu.memory_space<semaphore_mem>>
    tpu.wait_dma2 semaphore(%52 : memref<!tpu.dma_semaphore, #tpu.memory_space<semaphore_mem>>) src(%arg6 : memref<256x1024xbf16, #tpu.memory_space<any>>) dst(%arg9 : memref<256x1024xbf16, #tpu.memory_space<vmem>>)
    %c0_15 = arith.constant 0 : index
    %c0_16 = arith.constant 0 : index
    %53 = vector.load %arg9[%c0_15, %c0_16] : memref<256x1024xbf16, #tpu.memory_space<vmem>>, vector<256x1024xbf16>
    %cst_17 = arith.constant dense<0.000000e+00> : vector<8x1024xf32>
    %54 = tpu.matmul %50, %53, %cst_17 {dimension_numbers = #tpu.dot_dimension_numbers<[1], [0], [0], [1], [0, 0, 1, 1], [], []>} : vector<8x256xbf16>, vector<256x1024xbf16>, vector<8x1024xf32> -> vector<8x1024xf32>
    %55 = vector.extract_strided_slice %54 {offsets = [0, 0], sizes = [8, 256], strides = [1, 1]} : vector<8x1024xf32> to vector<8x256xf32>
    %56 = vector.broadcast %4 : f32 to vector<8x256xf32>
    %57 = arith.mulf %56, %55 : vector<8x256xf32>
    %58 = vector.extract_strided_slice %54 {offsets = [0, 256], sizes = [8, 256], strides = [1, 1]} : vector<8x1024xf32> to vector<8x256xf32>
    %59 = vector.broadcast %5 : f32 to vector<8x256xf32>
    %60 = arith.mulf %59, %58 : vector<8x256xf32>
    %61 = arith.addf %57, %60 : vector<8x256xf32>
    %62 = vector.extract_strided_slice %54 {offsets = [0, 512], sizes = [8, 256], strides = [1, 1]} : vector<8x1024xf32> to vector<8x256xf32>
    %63 = vector.broadcast %6 : f32 to vector<8x256xf32>
    %64 = arith.mulf %63, %62 : vector<8x256xf32>
    %65 = arith.addf %61, %64 : vector<8x256xf32>
    %66 = vector.extract_strided_slice %54 {offsets = [0, 768], sizes = [8, 256], strides = [1, 1]} : vector<8x1024xf32> to vector<8x256xf32>
    %67 = vector.broadcast %7 : f32 to vector<8x256xf32>
    %68 = arith.mulf %67, %66 : vector<8x256xf32>
    %69 = arith.addf %65, %68 : vector<8x256xf32>
    %c0_18 = arith.constant 0 : index
    %c0_19 = arith.constant 0 : index
    %70 = vector.load %arg4[%c0_18, %c0_19] : memref<4x256xf32, #tpu.memory_space<vmem>>, vector<1x256xf32>
    %71 = vector.broadcast %4 : f32 to vector<1x256xf32>
    %72 = arith.mulf %71, %70 : vector<1x256xf32>
    %c1_20 = arith.constant 1 : index
    %c0_21 = arith.constant 0 : index
    %73 = vector.load %arg4[%c1_20, %c0_21] : memref<4x256xf32, #tpu.memory_space<vmem>>, vector<1x256xf32>
    %74 = vector.broadcast %5 : f32 to vector<1x256xf32>
    %75 = arith.mulf %74, %73 : vector<1x256xf32>
    %76 = arith.addf %72, %75 : vector<1x256xf32>
    %c2_22 = arith.constant 2 : index
    %c0_23 = arith.constant 0 : index
    %77 = vector.load %arg4[%c2_22, %c0_23] : memref<4x256xf32, #tpu.memory_space<vmem>>, vector<1x256xf32>
    %78 = vector.broadcast %6 : f32 to vector<1x256xf32>
    %79 = arith.mulf %78, %77 : vector<1x256xf32>
    %80 = arith.addf %76, %79 : vector<1x256xf32>
    %c3_24 = arith.constant 3 : index
    %c0_25 = arith.constant 0 : index
    %81 = vector.load %arg4[%c3_24, %c0_25] : memref<4x256xf32, #tpu.memory_space<vmem>>, vector<1x256xf32>
    %82 = vector.broadcast %7 : f32 to vector<1x256xf32>
    %83 = arith.mulf %82, %81 : vector<1x256xf32>
    %84 = arith.addf %80, %83 : vector<1x256xf32>
    %85 = vector.broadcast %84 : vector<1x256xf32> to vector<8x256xf32>
    %86 = arith.addf %69, %85 : vector<8x256xf32>
    %cst_26 = arith.constant 0.000000e+00 : f32
    %87 = vector.broadcast %cst_26 : f32 to vector<8x256xf32>
    %88 = arith.cmpf ogt, %86, %87 : vector<8x256xf32>
    %89 = math.exp %86 : vector<8x256xf32>
    %cst_27 = arith.constant 1.000000e+00 : f32
    %90 = vector.broadcast %cst_27 : f32 to vector<8x256xf32>
    %91 = arith.subf %89, %90 : vector<8x256xf32>
    %92 = arith.select %88, %86, %91 : vector<8x256xi1>, vector<8x256xf32>
    %93 = arith.truncf %92 : vector<8x256xf32> to vector<8x256xbf16>
    %c1_i32_28 = arith.constant 1 : i32
    %94 = tpu.memref_slice %arg11[%c1_i32_28] : memref<2x!tpu.dma_semaphore, #tpu.memory_space<semaphore_mem>> -> memref<1x!tpu.dma_semaphore, #tpu.memory_space<semaphore_mem>>
    %95 = tpu.memref_squeeze %94 : memref<1x!tpu.dma_semaphore, #tpu.memory_space<semaphore_mem>> -> memref<!tpu.dma_semaphore, #tpu.memory_space<semaphore_mem>>
    tpu.wait_dma2 semaphore(%95 : memref<!tpu.dma_semaphore, #tpu.memory_space<semaphore_mem>>) src(%arg7 : memref<256x2560xbf16, #tpu.memory_space<any>>) dst(%arg10 : memref<256x2560xbf16, #tpu.memory_space<vmem>>)
    %c0_29 = arith.constant 0 : index
    %c0_30 = arith.constant 0 : index
    %96 = vector.load %arg10[%c0_29, %c0_30] : memref<256x2560xbf16, #tpu.memory_space<vmem>>, vector<256x2560xbf16>
    %cst_31 = arith.constant dense<0.000000e+00> : vector<8x2560xf32>
    %97 = tpu.matmul %93, %96, %cst_31 {dimension_numbers = #tpu.dot_dimension_numbers<[1], [0], [0], [1], [0, 0, 1, 1], [], []>} : vector<8x256xbf16>, vector<256x2560xbf16>, vector<8x2560xf32> -> vector<8x2560xf32>
    %98 = vector.extract_strided_slice %97 {offsets = [0, 0], sizes = [8, 640], strides = [1, 1]} : vector<8x2560xf32> to vector<8x640xf32>
    %99 = vector.broadcast %4 : f32 to vector<8x640xf32>
    %100 = arith.mulf %99, %98 : vector<8x640xf32>
    %101 = vector.extract_strided_slice %97 {offsets = [0, 640], sizes = [8, 640], strides = [1, 1]} : vector<8x2560xf32> to vector<8x640xf32>
    %102 = vector.broadcast %5 : f32 to vector<8x640xf32>
    %103 = arith.mulf %102, %101 : vector<8x640xf32>
    %104 = arith.addf %100, %103 : vector<8x640xf32>
    %105 = vector.extract_strided_slice %97 {offsets = [0, 1280], sizes = [8, 640], strides = [1, 1]} : vector<8x2560xf32> to vector<8x640xf32>
    %106 = vector.broadcast %6 : f32 to vector<8x640xf32>
    %107 = arith.mulf %106, %105 : vector<8x640xf32>
    %108 = arith.addf %104, %107 : vector<8x640xf32>
    %109 = vector.extract_strided_slice %97 {offsets = [0, 1920], sizes = [8, 640], strides = [1, 1]} : vector<8x2560xf32> to vector<8x640xf32>
    %110 = vector.broadcast %7 : f32 to vector<8x640xf32>
    %111 = arith.mulf %110, %109 : vector<8x640xf32>
    %112 = arith.addf %108, %111 : vector<8x640xf32>
    %c0_32 = arith.constant 0 : index
    %c0_33 = arith.constant 0 : index
    %113 = vector.load %arg5[%c0_32, %c0_33] : memref<4x640xf32, #tpu.memory_space<vmem>>, vector<1x640xf32>
    %114 = vector.broadcast %4 : f32 to vector<1x640xf32>
    %115 = arith.mulf %114, %113 : vector<1x640xf32>
    %c1_34 = arith.constant 1 : index
    %c0_35 = arith.constant 0 : index
    %116 = vector.load %arg5[%c1_34, %c0_35] : memref<4x640xf32, #tpu.memory_space<vmem>>, vector<1x640xf32>
    %117 = vector.broadcast %5 : f32 to vector<1x640xf32>
    %118 = arith.mulf %117, %116 : vector<1x640xf32>
    %119 = arith.addf %115, %118 : vector<1x640xf32>
    %c2_36 = arith.constant 2 : index
    %c0_37 = arith.constant 0 : index
    %120 = vector.load %arg5[%c2_36, %c0_37] : memref<4x640xf32, #tpu.memory_space<vmem>>, vector<1x640xf32>
    %121 = vector.broadcast %6 : f32 to vector<1x640xf32>
    %122 = arith.mulf %121, %120 : vector<1x640xf32>
    %123 = arith.addf %119, %122 : vector<1x640xf32>
    %c3_38 = arith.constant 3 : index
    %c0_39 = arith.constant 0 : index
    %124 = vector.load %arg5[%c3_38, %c0_39] : memref<4x640xf32, #tpu.memory_space<vmem>>, vector<1x640xf32>
    %125 = vector.broadcast %7 : f32 to vector<1x640xf32>
    %126 = arith.mulf %125, %124 : vector<1x640xf32>
    %127 = arith.addf %123, %126 : vector<1x640xf32>
    %128 = vector.broadcast %127 : vector<1x640xf32> to vector<8x640xf32>
    %129 = arith.addf %112, %128 : vector<8x640xf32>
    %c0_40 = arith.constant 0 : index
    %c0_41 = arith.constant 0 : index
    %130 = vector.load %arg8[%c0_40, %c0_41] : memref<8x640xf32, #tpu.memory_space<vmem>>, vector<8x640xf32>
    tpu.vector_store %arg8[%c0_40, %c0_41], %129 {strides = array<i32>} : memref<8x640xf32, #tpu.memory_space<vmem>>, vector<8x640xf32>,
    return
  }
}

</mosaic_0001>

<bundles_post_ra>
// kernel: tpu_custom_call.1
= control target key start
LH: loop header
LB: loop body
LE: loop exit
PB: predicated region body
PF: predicated region fallthrough
CT: control target
= control target key end

     0   :  { %13 = vsyncpa [#allocation8], 0  ;;  %s6849_s0 = inlined_call_operand.hbm [shape: f32[4], index: 0, kind: input, shape index: {}]   ;;  %s6850_s1 = inlined_call_operand.hbm [shape: f32[8,432], index: 1, kind: input, shape index: {}]   ;;  %s6851_s2 = inlined_call_operand.hbm [shape: bf16[432,1024], index: 2, kind: input, shape index: {}]   ;;  %s6852_s3 = inlined_call_operand.hbm [shape: f32[4,256], index: 3, kind: input, shape index: {}]   ;;  %s6853_s4 = inlined_call_operand.hbm [shape: f32[4,256], index: 4, kind: input, shape index: {}]   ;;  %s6854_s5 = inlined_call_operand.hbm [shape: f32[4,640], index: 5, kind: input, shape index: {}]   ;;  %s6855_s6 = inlined_call_operand.hbm [shape: bf16[256,1024], index: 6, kind: input, shape index: {}]   ;;  %s6856_s7 = inlined_call_operand.hbm [shape: bf16[256,2560], index: 7, kind: input, shape index: {}]   ;;  %s6857_s8 = inlined_call_operand.hbm [shape: f32[8,640], index: 8, kind: output, shape index: {}]  }
   0x1   :  { %14 = vsyncpa [#allocation6], 0 }
   0x2   :  { %15 = vsyncpa [#allocation11], 0 }
   0x3   :  { %16 = vsyncpa [#allocation14], 0 }
   0x4   :  { %17 = vsyncpa [#allocation7], 0  ;;  %s6614_s27 = smov [#allocation10]  }
   0x5   :  { %s41_s28 = sshll.u32 %s6614_s27, 4  ;;  %s42_s28 = int_to_ptr.vmem [resolvable:$true] %s41_s28 }
   0x6   :  { %s6440_s29 = scalar_lea.vmem %s42_s28, 27648  ;;  %p6445_p1 = scmp.lt.s32.totalorder %s42_s28, %s42_s28 }
   0x7   :  { %p6441_p0 = scmp.ne.s32.totalorder %s42_s28, %s6440_s29  ;;  %p6446_p2 = scmp.lt.s32.totalorder %s6440_s29, %s6440_s29 }
   0x9   :  { %p6447_p3 = por %p6446_p2, %p6445_p1 }
   0xb   :  { %p6448_p4 = pnand %p6447_p3, %p6441_p0 }
   0xd   :  { %6451 = shalt.err (!%p6448_p4)
}
   0xe   :  { %s6615_s30 = smov 512   ;;  %s6616_s9 = smov 32  }
   0xf   :  { %47 = dma.hbm_to_vmem [thread:$0]  %s6851_s2, 27648, %s42_s28, [#allocation11], %s6615_s30, %s6615_s30, %s6616_s9  }
  0x10   :  { %s6617_s12 = smov [#allocation13]  }
  0x11   :  { %s64_s13 = sshll.u32 %s6617_s12, 4  ;;  %s65_s13 = int_to_ptr.vmem [resolvable:$true] %s64_s13 }
  0x12   :  { %s6460_s14 = scalar_lea.vmem %s65_s13, 128  ;;  %p6465_p6 = scmp.lt.s32.totalorder %s65_s13, %s65_s13 }
  0x13   :  { %p6461_p5 = scmp.ne.s32.totalorder %s65_s13, %s6460_s14  ;;  %p6466_p7 = scmp.lt.s32.totalorder %s6460_s14, %s6460_s14 }
  0x15   :  { %p6467_p8 = por %p6466_p7, %p6465_p6 }
  0x17   :  { %p6468_p9 = pnand %p6467_p8, %p6461_p5 }
  0x19   :  { %6471 = shalt.err (!%p6468_p9)
}
  0x1a   :  { %67 = dma.hbm_to_vmem [thread:$0]  %s6853_s4, 128, %s65_s13, [#allocation14]  }
  0x1b   :  { %s6618_s17 = smov [#allocation5]   ;;  %s6619_s2 = smov [#allocation9]  }
  0x1c   :  { %25 = dma.hbm_to_smem %s6849_s0, 16, %s6618_s17, [#allocation8]  }
  0x1d   :  { %s32_s20 = sshll.u32 %s6619_s2, 4  ;;  %s6620_s21 = smov [#allocation12]   ;;  %s33_s20 = int_to_ptr.vmem [resolvable:$true] %s32_s20 }
  0x1e   :  { %s54_s22 = sshll.u32 %s6620_s21, 4  ;;  %s6488_s23 = scalar_lea.vmem %s33_s20, 512  ;;  %s55_s22 = int_to_ptr.vmem [resolvable:$true] %s54_s22 }
  0x1f   :  { %p6489_p10 = scmp.ne.s32.totalorder %s33_s20, %s6488_s23  ;;  %p6493_p11 = scmp.lt.s32.totalorder %s33_s20, %s33_s20 }
  0x20   :  { %p6494_p12 = scmp.lt.s32.totalorder %s6488_s23, %s6488_s23 }
  0x22   :  { %p6495_p13 = por %p6494_p12, %p6493_p11 }
  0x24   :  { %p6496_p0 = pnand %p6495_p13, %p6489_p10 }
  0x26   :  { %6499 = shalt.err (!%p6496_p0)
}
  0x27   :  { %35 = dma.hbm_to_vmem [thread:$0]  %s6850_s1, 512, %s33_s20, [#allocation6]  }
  0x28   :  { %s6508_s4 = scalar_lea.vmem %s55_s22, 128  ;;  %p6513_p2 = scmp.lt.s32.totalorder %s55_s22, %s55_s22 }
  0x29   :  { %p6509_p1 = scmp.ne.s32.totalorder %s55_s22, %s6508_s4  ;;  %p6514_p3 = scmp.lt.s32.totalorder %s6508_s4, %s6508_s4 }
  0x2b   :  { %p6515_p4 = por %p6514_p3, %p6513_p2 }
  0x2d   :  { %p6516_p5 = pnand %p6515_p4, %p6509_p1 }
  0x2f   :  { %6519 = shalt.err (!%p6516_p5)
}
  0x30   :  { %57 = dma.hbm_to_vmem [thread:$0]  %s6852_s3, 128, %s55_s22, [#allocation11]  }
  0x31   :  { %s6621_s27 = smov [#allocation15]  }
  0x32   :  { %s74_s28 = sshll.u32 %s6621_s27, 4  ;;  %s75_s28 = int_to_ptr.vmem [resolvable:$true] %s74_s28 }
  0x33   :  { %s6528_s29 = scalar_lea.vmem %s75_s28, 320  ;;  %p6533_p7 = scmp.lt.s32.totalorder %s75_s28, %s75_s28 }
  0x34   :  { %p6529_p6 = scmp.ne.s32.totalorder %s75_s28, %s6528_s29  ;;  %p6534_p8 = scmp.lt.s32.totalorder %s6528_s29, %s6528_s29 }
  0x36   :  { %p6535_p9 = por %p6534_p8, %p6533_p7 }
  0x38   :  { %p6536_p10 = pnand %p6535_p9, %p6529_p6 }
  0x3a   :  { %6539 = shalt.err (!%p6536_p10)
}
  0x3b   :  { %77 = dma.hbm_to_vmem [thread:$0]  %s6854_s5, 320, %s75_s28, [#allocation14]  }
  0x3c   :  { %6600 = dma.done.wait [#allocation8], 16  }
  0x3d   :  { %6601 = vsyncadd [#allocation8], 4294967280 }
  0x3e   :  { %6602 = dma.done.wait [#allocation6], 512  }
  0x3f   :  { %6603 = vsyncadd [#allocation6], 4294966784 }
  0x40   :  { %6604 = dma.done.wait [#allocation11], 27776  }
  0x41   :  { %6605 = vsyncadd [#allocation11], 4294939520 }
  0x42   :  { %6606 = dma.done.wait [#allocation14], 448  }
  0x43   :  { %6607 = vsyncadd [#allocation14], 4294966848 }
  0x44   :  { %96 = sfence }
  0x45   :  { %v189_v0 = vld [vmem:[#allocation10 + $0x1c0] sm:$0xff]  ;;  %v128_v40 = vld [vmem:[#allocation9 + $0x18] sm:$0xff]  ;;  %vm1429_vm0 = vcmask 392192   ;;  %v126_v58 = vld [vmem:[#allocation9 + $0x8] sm:$0xff]  ;;  %s121_s3 = sld [smem:[#allocation5]]  ;;  %s6622_s9 = smov [#allocation2]  }
  0x46   :  { %v193_v1 = vld [vmem:[#allocation10 + $0x1e0] sm:$0xff]  ;;  %v6688_v43 = vpack.c.bf16 %v128_v40, %v128_v40  ;;  %v6692_v61 = vpack.c.bf16 %v126_v58, %v126_v58  ;;  %s5256_s5 = sld [smem:[#allocation5 + $0x1]]  ;;  %s105_s10 = sshll.u32 %s6622_s9, 4  ;;  %s106_s10 = int_to_ptr.vmem [resolvable:$true] %s105_s10 }
  0x47   :  { %v317_v2 = vld [vmem:[#allocation10 + $0x5c0] sm:$0xff]  ;;  %v5316_v3 = vcombine.high %v189_v0, %v193_v1  ;;  %v5315_v5 = vcombine.low %v189_v0, %v193_v1  ;;  %s6623_s11 = smov [#allocation3]   ;;  %s6548_s13 = scalar_lea.vmem %s106_s10, 16384 }
  0x48   :  { %v321_v4 = vld [vmem:[#allocation10 + $0x5e0] sm:$0xff]  ;;  %5475 = vmatprep.mubr.msk.bf16.mxu1 %vm1429_vm0, %v6688_v43  ;;  %1465 = vmatprep.mubr.bf16.mxu0 %v6692_v61  ;;  %s117_s12 = sshll.u32 %s6623_s11, 4  ;;  %p6549_p11 = scmp.ne.s32.totalorder %s106_s10, %s6548_s13  ;;  %s118_s12 = int_to_ptr.vmem [resolvable:$true] %s117_s12 }
  0x49   :  { %v181_v6 = vld [vmem:[#allocation10 + $0x180] sm:$0xff]  ;;  %v5444_v8 = vcombine.high %v317_v2, %v321_v4  ;;  %v5443_v9 = vcombine.low %v317_v2, %v321_v4  ;;  %1433 = vmatprep.subr.bf16.mxu0 %v5316_v3  ;;  %p6553_p12 = scmp.lt.s32.totalorder %s106_s10, %s106_s10  ;;  %p6554_p13 = scmp.lt.s32.totalorder %s6548_s13, %s6548_s13 }
  0x4a   :  { %v185_v7 = vld [vmem:[#allocation10 + $0x1a0] sm:$0xff]  ;;  %1434 = vmatpush1.bf16.msra.mxu0 %v5315_v5 }
  0x4b   :  { %v5308_v10 = vcombine.high %v181_v6, %v185_v7  ;;  %v309_v11 = vld [vmem:[#allocation10 + $0x580] sm:$0xff]  ;;  %1474 = vmatprep.subr.bf16.mxu1 %v5444_v8  ;;  %v5307_v18 = vcombine.low %v181_v6, %v185_v7  ;;  %p6555_p0 = por %p6554_p13, %p6553_p12 }
  0x4c   :  { %v313_v12 = vld [vmem:[#allocation10 + $0x5a0] sm:$0xff]  ;;  %1475 = vmatpush1.bf16.msra.mxu1 %v5443_v9 }
  0x4d   :  { %v173_v13 = vld [vmem:[#allocation10 + $0x140] sm:$0xff]  ;;  %v5436_v14 = vcombine.high %v309_v11, %v313_v12  ;;  %1435 = vmatprep.subr.bf16.mxu0 %v5308_v10  ;;  %v5435_v19 = vcombine.low %v309_v11, %v313_v12  ;;  %p6556_p1 = pnand %p6555_p0, %p6549_p11 }
  0x4e   :  { %v177_v15 = vld [vmem:[#allocation10 + $0x160] sm:$0xff]  ;;  %1436 = vmatpush1.bf16.msra.mxu0 %v5307_v18 }
  0x4f   :  { %v301_v16 = vld [vmem:[#allocation10 + $0x540] sm:$0xff]  ;;  %v5300_v20 = vcombine.high %v173_v13, %v177_v15  ;;  %1476 = vmatprep.subr.bf16.mxu1 %v5436_v14  ;;  %v5299_v26 = vcombine.low %v173_v13, %v177_v15 }
  0x50   :  { %v305_v17 = vld [vmem:[#allocation10 + $0x560] sm:$0xff]  ;;  %1477 = vmatpush1.bf16.msra.mxu1 %v5435_v19 }
  0x51   :  { %v5428_v21 = vcombine.high %v301_v16, %v305_v17  ;;  %v165_v22 = vld [vmem:[#allocation10 + $0x100] sm:$0xff]  ;;  %1437 = vmatprep.subr.bf16.mxu0 %v5300_v20  ;;  %v5427_v27 = vcombine.low %v301_v16, %v305_v17 }
  0x52   :  { %v169_v23 = vld [vmem:[#allocation10 + $0x120] sm:$0xff]  ;;  %1438 = vmatpush1.bf16.msra.mxu0 %v5299_v26 }
  0x53   :  { %v293_v24 = vld [vmem:[#allocation10 + $0x500] sm:$0xff]  ;;  %v5292_v28 = vcombine.high %v165_v22, %v169_v23  ;;  %1478 = vmatprep.subr.bf16.mxu1 %v5428_v21  ;;  %v5291_v34 = vcombine.low %v165_v22, %v169_v23 }
  0x54   :  { %v297_v25 = vld [vmem:[#allocation10 + $0x520] sm:$0xff]  ;;  %1479 = vmatpush1.bf16.msra.mxu1 %v5427_v27 }
  0x55   :  { %v5420_v29 = vcombine.high %v293_v24, %v297_v25  ;;  %v157_v30 = vld [vmem:[#allocation10 + $0xc0] sm:$0xff]  ;;  %1439 = vmatprep.subr.bf16.mxu0 %v5292_v28  ;;  %v5419_v35 = vcombine.low %v293_v24, %v297_v25  ;;  %v190_v28 = vld [vmem:[#allocation10 + $0x1c8] sm:$0xff] }
  0x56   :  { %v161_v31 = vld [vmem:[#allocation10 + $0xe0] sm:$0xff]  ;;  %1440 = vmatpush1.bf16.msra.mxu0 %v5291_v34 }
  0x57   :  { %v285_v32 = vld [vmem:[#allocation10 + $0x4c0] sm:$0xff]  ;;  %v5284_v36 = vcombine.high %v157_v30, %v161_v31  ;;  %1480 = vmatprep.subr.bf16.mxu1 %v5420_v29  ;;  %v5283_v44 = vcombine.low %v157_v30, %v161_v31  ;;  %v194_v29 = vld [vmem:[#allocation10 + $0x1e8] sm:$0xff] }
  0x58   :  { %v289_v33 = vld [vmem:[#allocation10 + $0x4e0] sm:$0xff]  ;;  %1481 = vmatpush1.bf16.msra.mxu1 %v5419_v35  ;;  %v5318_v34 = vcombine.high %v190_v28, %v194_v29 }
  0x59   :  { %v5412_v37 = vcombine.high %v285_v32, %v289_v33  ;;  %v149_v38 = vld [vmem:[#allocation10 + $0x80] sm:$0xff]  ;;  %1441 = vmatprep.subr.bf16.mxu0 %v5284_v36  ;;  %v5411_v45 = vcombine.low %v285_v32, %v289_v33  ;;  %v127_v33 = vld [vmem:[#allocation9 + $0x10] sm:$0xff] }
  0x5a   :  { %v153_v39 = vld [vmem:[#allocation10 + $0xa0] sm:$0xff]  ;;  %1442 = vmatpush1.bf16.msra.mxu0 %v5283_v44 }
  0x5b   :  { %v277_v41 = vld [vmem:[#allocation10 + $0x480] sm:$0xff]  ;;  %v5276_v46 = vcombine.high %v149_v38, %v153_v39  ;;  %1482 = vmatprep.subr.bf16.mxu1 %v5412_v37  ;;  %v5275_v52 = vcombine.low %v149_v38, %v153_v39  ;;  %v182_v37 = vld [vmem:[#allocation10 + $0x188] sm:$0xff]  ;;  %v6695_v39 = vpack.c.bf16 %v127_v33, %v127_v33 }
  0x5c   :  { %v281_v42 = vld [vmem:[#allocation10 + $0x4a0] sm:$0xff]  ;;  %1483 = vmatpush1.bf16.msra.mxu1 %v5411_v45  ;;  %v186_v38 = vld [vmem:[#allocation10 + $0x1a8] sm:$0xff] }
  0x5d   :  { %v5404_v47 = vcombine.high %v277_v41, %v281_v42  ;;  %v141_v48 = vld [vmem:[#allocation10 + $0x40] sm:$0xff]  ;;  %1443 = vmatprep.subr.bf16.mxu0 %v5276_v46  ;;  %v5403_v53 = vcombine.low %v277_v41, %v281_v42  ;;  %v5317_v41 = vcombine.low %v190_v28, %v194_v29  ;;  %v5310_v44 = vcombine.high %v182_v37, %v186_v38  ;;  %v298_v33 = vld [vmem:[#allocation10 + $0x528] sm:$0xff] }
  0x5e   :  { %v145_v49 = vld [vmem:[#allocation10 + $0x60] sm:$0xff]  ;;  %1444 = vmatpush1.bf16.msra.mxu0 %v5275_v52 }
  0x5f   :  { %v269_v50 = vld [vmem:[#allocation10 + $0x440] sm:$0xff]  ;;  %v5268_v54 = vcombine.high %v141_v48, %v145_v49  ;;  %1484 = vmatprep.subr.bf16.mxu1 %v5404_v47  ;;  %v5267_v62 = vcombine.low %v141_v48, %v145_v49  ;;  %v174_v47 = vld [vmem:[#allocation10 + $0x148] sm:$0xff] }
  0x60   :  { %v273_v51 = vld [vmem:[#allocation10 + $0x460] sm:$0xff]  ;;  %1485 = vmatpush1.bf16.msra.mxu1 %v5403_v53  ;;  %v178_v48 = vld [vmem:[#allocation10 + $0x168] sm:$0xff] }
  0x61   :  { %v5396_v55 = vcombine.high %v269_v50, %v273_v51  ;;  %v133_v56 = vld [vmem:[#allocation10] sm:$0xff]  ;;  %1445 = vmatprep.subr.bf16.mxu0 %v5268_v54  ;;  %v5395_v63 = vcombine.low %v269_v50, %v273_v51  ;;  %v5309_v50 = vcombine.low %v182_v37, %v186_v38  ;;  %v5302_v52 = vcombine.high %v174_v47, %v178_v48 }
  0x62   :  { %v137_v57 = vld [vmem:[#allocation10 + $0x20] sm:$0xff]  ;;  %1446 = vmatpush1.bf16.msra.mxu0 %v5267_v62  ;;  %v5301_v58 = vcombine.low %v174_v47, %v178_v48 }
  0x63   :  { %v261_v59 = vld [vmem:[#allocation10 + $0x400] sm:$0xff]  ;;  %v5260_v0 = vcombine.high %v133_v56, %v137_v57  ;;  %1486 = vmatprep.subr.bf16.mxu1 %v5396_v55  ;;  %v5259_v6 = vcombine.low %v133_v56, %v137_v57  ;;  %v166_v55 = vld [vmem:[#allocation10 + $0x108] sm:$0xff] }
  0x64   :  { %v265_v60 = vld [vmem:[#allocation10 + $0x420] sm:$0xff]  ;;  %1487 = vmatpush1.bf16.msra.mxu1 %v5395_v63  ;;  %v170_v56 = vld [vmem:[#allocation10 + $0x128] sm:$0xff] }
  0x65   :  { %v5388_v1 = vcombine.high %v261_v59, %v265_v60  ;;  %v253_v2 = vld [vmem:[#allocation10 + $0x3c0] sm:$0xff]  ;;  %1447 = vmatprep.subr.bf16.mxu0 %v5260_v0  ;;  %v5387_v7 = vcombine.low %v261_v59, %v265_v60  ;;  %v5294_v60 = vcombine.high %v166_v55, %v170_v56  ;;  %v158_v0 = vld [vmem:[#allocation10 + $0xc8] sm:$0xff] }
  0x66   :  { %v257_v3 = vld [vmem:[#allocation10 + $0x3e0] sm:$0xff]  ;;  %1448 = vmatpush1.bf16.msra.mxu0 %v5259_v6  ;;  %v318_v6 = vld [vmem:[#allocation10 + $0x5c8] sm:$0xff] }
  0x67   :  { %v341_v4 = vld [vmem:[#allocation10 + $0x680] sm:$0xff]  ;;  %v5380_v8 = vcombine.high %v253_v2, %v257_v3  ;;  %1488 = vmatprep.subr.bf16.mxu1 %v5388_v1  ;;  %v5379_v14 = vcombine.low %v253_v2, %v257_v3  ;;  %v162_v1 = vld [vmem:[#allocation10 + $0xe8] sm:$0xff]  ;;  %v5293_v3 = vcombine.low %v166_v55, %v170_v56 }
  0x68   :  { %v345_v5 = vld [vmem:[#allocation10 + $0x6a0] sm:$0xff]  ;;  %1489 = vmatpush1.bf16.msra.mxu1 %v5387_v7  ;;  %v322_v7 = vld [vmem:[#allocation10 + $0x5e8] sm:$0xff] }
  0x69   :  { %v5468_v9 = vcombine.high %v341_v4, %v345_v5  ;;  %v245_v10 = vld [vmem:[#allocation10 + $0x380] sm:$0xff]  ;;  %1449 = vmatprep.subr.bf16.mxu0 %v5380_v8  ;;  %v5467_v15 = vcombine.low %v341_v4, %v345_v5  ;;  %v5286_v5 = vcombine.high %v158_v0, %v162_v1  ;;  %v150_v8 = vld [vmem:[#allocation10 + $0x88] sm:$0xff] }
  0x6a   :  { %v249_v11 = vld [vmem:[#allocation10 + $0x3a0] sm:$0xff]  ;;  %1450 = vmatpush2.bf16.msra.mxu0 %v5379_v14 }
  0x6b   :  { %v333_v12 = vld [vmem:[#allocation10 + $0x640] sm:$0xff]  ;;  %v5372_v16 = vcombine.high %v245_v10, %v249_v11  ;;  %1500 = vmatprep.subr.bf16.mxu1 %v5468_v9  ;;  %v5371_v22 = vcombine.low %v245_v10, %v249_v11  ;;  %v154_v9 = vld [vmem:[#allocation10 + $0xa8] sm:$0xff] }
  0x6c   :  { %v337_v13 = vld [vmem:[#allocation10 + $0x660] sm:$0xff]  ;;  %1501 = vmatpush2.bf16.msra.mxu1 %v5467_v15  ;;  %v5278_v14 = vcombine.high %v150_v8, %v154_v9  ;;  %v310_v15 = vld [vmem:[#allocation10 + $0x588] sm:$0xff] }
  0x6d   :  { %v5460_v17 = vcombine.high %v333_v12, %v337_v13  ;;  %v237_v18 = vld [vmem:[#allocation10 + $0x340] sm:$0xff]  ;;  %1451 = vmatprep.subr.bf16.mxu0 %v5372_v16  ;;  %v5459_v23 = vcombine.low %v333_v12, %v337_v13  ;;  %v5285_v12 = vcombine.low %v158_v0, %v162_v1  ;;  %v5446_v13 = vcombine.high %v318_v6, %v322_v7  ;;  %v314_v16 = vld [vmem:[#allocation10 + $0x5a8] sm:$0xff] }
  0x6e   :  { %v241_v19 = vld [vmem:[#allocation10 + $0x360] sm:$0xff]  ;;  %1452 = vmatpush2.bf16.msra.mxu0 %v5371_v22  ;;  %v5438_v22 = vcombine.high %v310_v15, %v314_v16  ;;  %v5437_v28 = vcombine.low %v310_v15, %v314_v16 }
  0x6f   :  { %v325_v20 = vld [vmem:[#allocation10 + $0x600] sm:$0xff]  ;;  %v5364_v24 = vcombine.high %v237_v18, %v241_v19  ;;  %1502 = vmatprep.subr.bf16.mxu1 %v5460_v17  ;;  %v5363_v30 = vcombine.low %v237_v18, %v241_v19  ;;  %v142_v18 = vld [vmem:[#allocation10 + $0x48] sm:$0xff] }
  0x70   :  { %v329_v21 = vld [vmem:[#allocation10 + $0x620] sm:$0xff]  ;;  %1503 = vmatpush2.bf16.msra.mxu1 %v5459_v23  ;;  %v146_v19 = vld [vmem:[#allocation10 + $0x68] sm:$0xff] }
  0x71   :  { %v5452_v25 = vcombine.high %v325_v20, %v329_v21  ;;  %v229_v26 = vld [vmem:[#allocation10 + $0x300] sm:$0xff]  ;;  %1453 = vmatprep.subr.bf16.mxu0 %v5364_v24  ;;  %v5451_v31 = vcombine.low %v325_v20, %v329_v21  ;;  %v5445_v20 = vcombine.low %v318_v6, %v322_v7  ;;  %v5277_v21 = vcombine.low %v150_v8, %v154_v9  ;;  %v302_v24 = vld [vmem:[#allocation10 + $0x548] sm:$0xff] }
  0x72   :  { %v233_v27 = vld [vmem:[#allocation10 + $0x320] sm:$0xff]  ;;  %1454 = vmatpush2.bf16.msra.mxu0 %v5363_v30  ;;  %v5270_v23 = vcombine.high %v142_v18, %v146_v19  ;;  %v5269_v29 = vcombine.low %v142_v18, %v146_v19  ;;  %v226_v6 = vld [vmem:[#allocation10 + $0x2e8] sm:$0xff] }
  0x73   :  { %v5356_v32 = vcombine.high %v229_v26, %v233_v27  ;;  %1504 = vmatprep.subr.bf16.mxu1 %v5452_v25  ;;  %v221_v35 = vld [vmem:[#allocation10 + $0x2c0] sm:$0xff]  ;;  %v5355_v40 = vcombine.low %v229_v26, %v233_v27  ;;  %v306_v25 = vld [vmem:[#allocation10 + $0x568] sm:$0xff] }
  0x74   :  { %v225_v36 = vld [vmem:[#allocation10 + $0x2e0] sm:$0xff]  ;;  %1505 = vmatpush2.bf16.msra.mxu1 %v5451_v31  ;;  %v134_v26 = vld [vmem:[#allocation10 + $0x8] sm:$0xff]  ;;  %v5430_v30 = vcombine.high %v302_v24, %v306_v25 }
  0x75   :  { %1455 = vmatprep.subr.bf16.mxu0 %v5356_v32  ;;  %v5348_v42 = vcombine.high %v221_v35, %v225_v36  ;;  %1515 = vmatprep.subr.bf16.mxu1 %v5318_v34  ;;  %v213_v45 = vld [vmem:[#allocation10 + $0x280] sm:$0xff]  ;;  %v5347_v49 = vcombine.low %v221_v35, %v225_v36  ;;  %v138_v27 = vld [vmem:[#allocation10 + $0x28] sm:$0xff]  ;;  %v5429_v36 = vcombine.low %v302_v24, %v306_v25 }
  0x76   :  { %v217_v46 = vld [vmem:[#allocation10 + $0x2a0] sm:$0xff]  ;;  %1456 = vmatpush2.bf16.msra.mxu0 %v5355_v40  ;;  %v5262_v31 = vcombine.high %v134_v26, %v138_v27  ;;  %v294_v32 = vld [vmem:[#allocation10 + $0x508] sm:$0xff]  ;;  %v5261_v37 = vcombine.low %v134_v26, %v138_v27 }
  0x77   :  { %1507 = vmatmul.mubr.bf16.vlgmr.msra.gmra.mxu1 %v6695_v39  ;;  %1457 = vmatprep.subr.bf16.mxu0 %v5348_v42  ;;  %v5340_v51 = vcombine.high %v213_v45, %v217_v46  ;;  %v205_v53 = vld [vmem:[#allocation10 + $0x240] sm:$0xff]  ;;  %v5339_v57 = vcombine.low %v213_v45, %v217_v46  ;;  %v254_v34 = vld [vmem:[#allocation10 + $0x3c8] sm:$0xff]  ;;  %v5422_v38 = vcombine.high %v294_v32, %v298_v33 }
  0x78   :  { %1516 = vmatpush1.bf16.msra.mxu1 %v5317_v41  ;;  %v209_v54 = vld [vmem:[#allocation10 + $0x260] sm:$0xff]  ;;  %1547 = vmatprep.mubr.bf16.mxu1 %v6692_v61  ;;  %v258_v35 = vld [vmem:[#allocation10 + $0x3e8] sm:$0xff]  ;;  %v5421_v46 = vcombine.low %v294_v32, %v298_v33 }
  0x79   :  { %1517 = vmatprep.subr.bf16.mxu1 %v5310_v44  ;;  %v5332_v59 = vcombine.high %v205_v53, %v209_v54  ;;  %v197_v62 = vld [vmem:[#allocation10 + $0x200] sm:$0xff]  ;;  %v5331_v2 = vcombine.low %v205_v53, %v209_v54  ;;  %v5382_v40 = vcombine.high %v254_v34, %v258_v35  ;;  %v286_v41 = vld [vmem:[#allocation10 + $0x4c8] sm:$0xff]  ;;  %v5381_v47 = vcombine.low %v254_v34, %v258_v35 }
  0x7a   :  { %1458 = vmatpush2.bf16.msra.mxu0 %v5347_v49  ;;  %v201_v63 = vld [vmem:[#allocation10 + $0x220] sm:$0xff]  ;;  %v290_v42 = vld [vmem:[#allocation10 + $0x4e8] sm:$0xff] }
  0x7b   :  { %1459 = vmatprep.subr.bf16.mxu0 %v5340_v51  ;;  %v5324_v4 = vcombine.high %v197_v62, %v201_v63  ;;  %v5323_v10 = vcombine.low %v197_v62, %v201_v63  ;;  %v125_v11 = vld [vmem:[#allocation9] sm:$0xff]  ;;  %v246_v44 = vld [vmem:[#allocation10 + $0x388] sm:$0xff]  ;;  %v5414_v48 = vcombine.high %v286_v41, %v290_v42  ;;  %v5413_v54 = vcombine.low %v286_v41, %v290_v42 }
  0x7c   :  { %1518 = vmatpush1.bf16.msra.mxu1 %v5309_v50  ;;  %v6699_v17 = vpack.c.bf16 %v125_v11, %v125_v11  ;;  %v250_v45 = vld [vmem:[#allocation10 + $0x3a8] sm:$0xff] }
  0x7d   :  { %1519 = vmatprep.subr.bf16.mxu1 %v5302_v52  ;;  %v5374_v49 = vcombine.high %v246_v44, %v250_v45  ;;  %v278_v50 = vld [vmem:[#allocation10 + $0x488] sm:$0xff]  ;;  %v5373_v55 = vcombine.low %v246_v44, %v250_v45 }
  0x7e   :  { %1460 = vmatpush2.bf16.msra.mxu0 %v5339_v57  ;;  %v282_v51 = vld [vmem:[#allocation10 + $0x4a8] sm:$0xff] }
  0x7f   :  { %1461 = vmatprep.subr.bf16.mxu0 %v5332_v59  ;;  %v238_v52 = vld [vmem:[#allocation10 + $0x348] sm:$0xff]  ;;  %v5406_v56 = vcombine.high %v278_v50, %v282_v51  ;;  %v5405_v63 = vcombine.low %v278_v50, %v282_v51 }
  0x80   :  { %1520 = vmatpush1.bf16.msra.mxu1 %v5301_v58  ;;  %v242_v53 = vld [vmem:[#allocation10 + $0x368] sm:$0xff] }
  0x81   :  { %1521 = vmatprep.subr.bf16.mxu1 %v5294_v60  ;;  %v5366_v57 = vcombine.high %v238_v52, %v242_v53  ;;  %v270_v58 = vld [vmem:[#allocation10 + $0x448] sm:$0xff]  ;;  %v5365_v0 = vcombine.low %v238_v52, %v242_v53 }
  0x82   :  { %1462 = vmatpush2.bf16.msra.mxu0 %v5331_v2  ;;  %v274_v59 = vld [vmem:[#allocation10 + $0x468] sm:$0xff] }
  0x83   :  { %1463 = vmatprep.subr.bf16.mxu0 %v5324_v4  ;;  %v230_v60 = vld [vmem:[#allocation10 + $0x308] sm:$0xff]  ;;  %v5398_v1 = vcombine.high %v270_v58, %v274_v59  ;;  %v5397_v7 = vcombine.low %v270_v58, %v274_v59 }
  0x84   :  { %1522 = vmatpush1.bf16.msra.mxu1 %v5293_v3  ;;  %v234_v62 = vld [vmem:[#allocation10 + $0x328] sm:$0xff] }
  0x85   :  { %1523 = vmatprep.subr.bf16.mxu1 %v5286_v5  ;;  %v5358_v2 = vcombine.high %v230_v60, %v234_v62  ;;  %v262_v3 = vld [vmem:[#allocation10 + $0x408] sm:$0xff]  ;;  %v5357_v8 = vcombine.low %v230_v60, %v234_v62 }
  0x86   :  { %1464 = vmatpush2.bf16.msra.mxu0 %v5323_v10  ;;  %v266_v4 = vld [vmem:[#allocation10 + $0x428] sm:$0xff] }
  0x87   :  { %1556 = vmatprep.subr.bf16.mxu0 %v5446_v13  ;;  %v222_v5 = vld [vmem:[#allocation10 + $0x2c8] sm:$0xff]  ;;  %v5390_v9 = vcombine.high %v262_v3, %v266_v4  ;;  %v5389_v15 = vcombine.low %v262_v3, %v266_v4 }
  0x88   :  { %1524 = vmatpush1.bf16.msra.mxu1 %v5285_v12  ;;  %v5350_v10 = vcombine.high %v222_v5, %v226_v6  ;;  %v342_v11 = vld [vmem:[#allocation10 + $0x688] sm:$0xff]  ;;  %v5349_v16 = vcombine.low %v222_v5, %v226_v6 }
  0x89   :  { %1525 = vmatprep.subr.bf16.mxu1 %v5278_v14  ;;  %1466 = vmatmul.mubr.bf16.vlgmr.msra.gmra.mxu0 %v6699_v17  ;;  %v346_v12 = vld [vmem:[#allocation10 + $0x6a8] sm:$0xff] }
  0x8a   :  { %1557 = vmatpush1.bf16.msra.mxu0 %v5445_v20  ;;  %5476 = vmatprep.mubr.msk.bf16.mxu0 %vm1429_vm0, %v6688_v43  ;;  %v214_v13 = vld [vmem:[#allocation10 + $0x288] sm:$0xff]  ;;  %v5470_v18 = vcombine.high %v342_v11, %v346_v12  ;;  %v5469_v24 = vcombine.low %v342_v11, %v346_v12 }
  0x8b   :  { %1558 = vmatprep.subr.bf16.mxu0 %v5438_v22  ;;  %v218_v14 = vld [vmem:[#allocation10 + $0x2a8] sm:$0xff] }
  0x8c   :  { %1526 = vmatpush1.bf16.msra.mxu1 %v5277_v21  ;;  %v5342_v19 = vcombine.high %v214_v13, %v218_v14  ;;  %v334_v20 = vld [vmem:[#allocation10 + $0x648] sm:$0xff]  ;;  %v5341_v25 = vcombine.low %v214_v13, %v218_v14 }
  0x8d   :  { %1527 = vmatprep.subr.bf16.mxu1 %v5270_v23  ;;  %v338_v21 = vld [vmem:[#allocation10 + $0x668] sm:$0xff] }
  0x8e   :  { %1559 = vmatpush1.bf16.msra.mxu0 %v5437_v28  ;;  %v206_v22 = vld [vmem:[#allocation10 + $0x248] sm:$0xff]  ;;  %v5462_v26 = vcombine.high %v334_v20, %v338_v21  ;;  %v5461_v32 = vcombine.low %v334_v20, %v338_v21 }
  0x8f   :  { %1560 = vmatprep.subr.bf16.mxu0 %v5430_v30  ;;  %v210_v23 = vld [vmem:[#allocation10 + $0x268] sm:$0xff] }
  0x90   :  { %1528 = vmatpush1.bf16.msra.mxu1 %v5269_v29  ;;  %v5334_v27 = vcombine.high %v206_v22, %v210_v23  ;;  %v326_v28 = vld [vmem:[#allocation10 + $0x608] sm:$0xff]  ;;  %v5333_v33 = vcombine.low %v206_v22, %v210_v23 }
  0x91   :  { %1529 = vmatprep.subr.bf16.mxu1 %v5262_v31  ;;  %v330_v29 = vld [vmem:[#allocation10 + $0x628] sm:$0xff] }
  0x92   :  { %1561 = vmatpush1.bf16.msra.mxu0 %v5429_v36  ;;  %v198_v30 = vld [vmem:[#allocation10 + $0x208] sm:$0xff]  ;;  %v5454_v34 = vcombine.high %v326_v28, %v330_v29  ;;  %v191_v36 = vld [vmem:[#allocation10 + $0x1d0] sm:$0xff]  ;;  %v5453_v41 = vcombine.low %v326_v28, %v330_v29 }
  0x93   :  { %1562 = vmatprep.subr.bf16.mxu0 %v5422_v38  ;;  %v202_v31 = vld [vmem:[#allocation10 + $0x228] sm:$0xff]  ;;  %v319_v38 = vld [vmem:[#allocation10 + $0x5d0] sm:$0xff] }
  0x94   :  { %1530 = vmatpush1.bf16.msra.mxu1 %v5261_v37  ;;  %v5326_v35 = vcombine.high %v198_v30, %v202_v31  ;;  %v195_v37 = vld [vmem:[#allocation10 + $0x1f0] sm:$0xff]  ;;  %v5325_v42 = vcombine.low %v198_v30, %v202_v31 }
  0x95   :  { %1531 = vmatprep.subr.bf16.mxu1 %v5382_v40  ;;  %v323_v40 = vld [vmem:[#allocation10 + $0x5f0] sm:$0xff]  ;;  %v5320_v44 = vcombine.high %v191_v36, %v195_v37  ;;  %v5319_v50 = vcombine.low %v191_v36, %v195_v37 }
  0x96   :  { %1563 = vmatpush1.bf16.msra.mxu0 %v5421_v46  ;;  %v5448_v45 = vcombine.high %v319_v38, %v323_v40  ;;  %v183_v46 = vld [vmem:[#allocation10 + $0x190] sm:$0xff]  ;;  %v5447_v51 = vcombine.low %v319_v38, %v323_v40 }
  0x97   :  { %1564 = vmatprep.subr.bf16.mxu0 %v5414_v48  ;;  %v311_v48 = vld [vmem:[#allocation10 + $0x590] sm:$0xff] }
  0x98   :  { %1532 = vmatpush2.bf16.msra.mxu1 %v5381_v47  ;;  %v187_v47 = vld [vmem:[#allocation10 + $0x1b0] sm:$0xff] }
  0x99   :  { %1533 = vmatprep.subr.bf16.mxu1 %v5374_v49  ;;  %v315_v49 = vld [vmem:[#allocation10 + $0x5b0] sm:$0xff]  ;;  %v5312_v52 = vcombine.high %v183_v46, %v187_v47  ;;  %v5311_v58 = vcombine.low %v183_v46, %v187_v47 }
  0x9a   :  { %1565 = vmatpush1.bf16.msra.mxu0 %v5413_v54  ;;  %v5440_v53 = vcombine.high %v311_v48, %v315_v49  ;;  %v175_v54 = vld [vmem:[#allocation10 + $0x150] sm:$0xff]  ;;  %v5439_v59 = vcombine.low %v311_v48, %v315_v49 }
  0x9b   :  { %1566 = vmatprep.subr.bf16.mxu0 %v5406_v56  ;;  %v303_v56 = vld [vmem:[#allocation10 + $0x550] sm:$0xff] }
  0x9c   :  { %1534 = vmatpush2.bf16.msra.mxu1 %v5373_v55  ;;  %v179_v55 = vld [vmem:[#allocation10 + $0x170] sm:$0xff] }
  0x9d   :  { %1535 = vmatprep.subr.bf16.mxu1 %v5366_v57  ;;  %v307_v57 = vld [vmem:[#allocation10 + $0x570] sm:$0xff]  ;;  %v5304_v60 = vcombine.high %v175_v54, %v179_v55  ;;  %v5303_v3 = vcombine.low %v175_v54, %v179_v55 }
  0x9e   :  { %1567 = vmatpush1.bf16.msra.mxu0 %v5405_v63  ;;  %v5432_v62 = vcombine.high %v303_v56, %v307_v57  ;;  %v167_v63 = vld [vmem:[#allocation10 + $0x110] sm:$0xff]  ;;  %v5431_v4 = vcombine.low %v303_v56, %v307_v57 }
  0x9f   :  { %1568 = vmatprep.subr.bf16.mxu0 %v5398_v1  ;;  %v295_v1 = vld [vmem:[#allocation10 + $0x510] sm:$0xff] }
  0xa0   :  { %1536 = vmatpush2.bf16.msra.mxu1 %v5365_v0  ;;  %v171_v0 = vld [vmem:[#allocation10 + $0x130] sm:$0xff] }
  0xa1   :  { %1537 = vmatprep.subr.bf16.mxu1 %v5358_v2  ;;  %v299_v2 = vld [vmem:[#allocation10 + $0x530] sm:$0xff]  ;;  %v5296_v5 = vcombine.high %v167_v63, %v171_v0  ;;  %v5295_v11 = vcombine.low %v167_v63, %v171_v0 }
  0xa2   :  { %1569 = vmatpush1.bf16.msra.mxu0 %v5397_v7  ;;  %v5424_v6 = vcombine.high %v295_v1, %v299_v2  ;;  %v159_v7 = vld [vmem:[#allocation10 + $0xd0] sm:$0xff]  ;;  %v5423_v12 = vcombine.low %v295_v1, %v299_v2 }
  0xa3   :  { %1570 = vmatprep.subr.bf16.mxu0 %v5390_v9  ;;  %v287_v9 = vld [vmem:[#allocation10 + $0x4d0] sm:$0xff] }
  0xa4   :  { %1538 = vmatpush2.bf16.msra.mxu1 %v5357_v8  ;;  %v163_v8 = vld [vmem:[#allocation10 + $0xf0] sm:$0xff] }
  0xa5   :  { %1539 = vmatprep.subr.bf16.mxu1 %v5350_v10  ;;  %v291_v10 = vld [vmem:[#allocation10 + $0x4f0] sm:$0xff]  ;;  %v5288_v13 = vcombine.high %v159_v7, %v163_v8  ;;  %v5287_v20 = vcombine.low %v159_v7, %v163_v8 }
  0xa6   :  { %1571 = vmatpush1.bf16.msra.mxu0 %v5389_v15  ;;  %v5416_v14 = vcombine.high %v287_v9, %v291_v10  ;;  %v151_v15 = vld [vmem:[#allocation10 + $0x90] sm:$0xff]  ;;  %v5415_v21 = vcombine.low %v287_v9, %v291_v10 }
  0xa7   :  { %1582 = vmatprep.subr.bf16.mxu0 %v5470_v18  ;;  %v279_v18 = vld [vmem:[#allocation10 + $0x490] sm:$0xff] }
  0xa8   :  { %1540 = vmatpush2.bf16.msra.mxu1 %v5349_v16  ;;  %v155_v16 = vld [vmem:[#allocation10 + $0xb0] sm:$0xff] }
  0xa9   :  { %1541 = vmatprep.subr.bf16.mxu1 %v5342_v19  ;;  %v283_v19 = vld [vmem:[#allocation10 + $0x4b0] sm:$0xff]  ;;  %v5280_v22 = vcombine.high %v151_v15, %v155_v16  ;;  %v5279_v28 = vcombine.low %v151_v15, %v155_v16 }
  0xaa   :  { %1583 = vmatpush2.bf16.msra.mxu0 %v5469_v24  ;;  %v5408_v23 = vcombine.high %v279_v18, %v283_v19  ;;  %v143_v24 = vld [vmem:[#allocation10 + $0x50] sm:$0xff]  ;;  %v5407_v29 = vcombine.low %v279_v18, %v283_v19 }
  0xab   :  { %1584 = vmatprep.subr.bf16.mxu0 %v5462_v26  ;;  %v271_v26 = vld [vmem:[#allocation10 + $0x450] sm:$0xff] }
  0xac   :  { %1542 = vmatpush2.bf16.msra.mxu1 %v5341_v25  ;;  %v147_v25 = vld [vmem:[#allocation10 + $0x70] sm:$0xff] }
  0xad   :  { %1543 = vmatprep.subr.bf16.mxu1 %v5334_v27  ;;  %v275_v27 = vld [vmem:[#allocation10 + $0x470] sm:$0xff]  ;;  %v5272_v30 = vcombine.high %v143_v24, %v147_v25  ;;  %v5271_v36 = vcombine.low %v143_v24, %v147_v25 }
  0xae   :  { %1585 = vmatpush2.bf16.msra.mxu0 %v5461_v32  ;;  %v5400_v31 = vcombine.high %v271_v26, %v275_v27  ;;  %v135_v32 = vld [vmem:[#allocation10 + $0x10] sm:$0xff]  ;;  %v5399_v37 = vcombine.low %v271_v26, %v275_v27 }
  0xaf   :  { %1586 = vmatprep.subr.bf16.mxu0 %v5454_v34  ;;  %v263_v34 = vld [vmem:[#allocation10 + $0x410] sm:$0xff] }
  0xb0   :  { %1544 = vmatpush2.bf16.msra.mxu1 %v5333_v33  ;;  %v139_v33 = vld [vmem:[#allocation10 + $0x30] sm:$0xff] }
  0xb1   :  { %1545 = vmatprep.subr.bf16.mxu1 %v5326_v35  ;;  %v267_v35 = vld [vmem:[#allocation10 + $0x430] sm:$0xff]  ;;  %v5264_v38 = vcombine.high %v135_v32, %v139_v33  ;;  %v5263_v46 = vcombine.low %v135_v32, %v139_v33 }
  0xb2   :  { %1587 = vmatpush2.bf16.msra.mxu0 %v5453_v41  ;;  %v5392_v40 = vcombine.high %v263_v34, %v267_v35  ;;  %v255_v41 = vld [vmem:[#allocation10 + $0x3d0] sm:$0xff]  ;;  %v5391_v47 = vcombine.low %v263_v34, %v267_v35 }
  0xb3   :  { %1597 = vmatprep.subr.bf16.mxu0 %v5320_v44  ;;  %v343_v44 = vld [vmem:[#allocation10 + $0x690] sm:$0xff] }
  0xb4   :  { %1546 = vmatpush2.bf16.msra.mxu1 %v5325_v42  ;;  %v259_v42 = vld [vmem:[#allocation10 + $0x3f0] sm:$0xff] }
  0xb5   :  { %1638 = vmatprep.subr.bf16.mxu1 %v5448_v45  ;;  %1589 = vmatmul.mubr.bf16.vlgmr.msra.gmra.mxu0 %v6695_v39  ;;  %v347_v45 = vld [vmem:[#allocation10 + $0x6b0] sm:$0xff]  ;;  %v5384_v48 = vcombine.high %v255_v41, %v259_v42  ;;  %v5383_v54 = vcombine.low %v255_v41, %v259_v42 }
  0xb6   :  { %1598 = vmatpush1.bf16.msra.mxu0 %v5319_v50  ;;  %1629 = vmatprep.mubr.bf16.mxu0 %v6692_v61  ;;  %v5472_v49 = vcombine.high %v343_v44, %v347_v45  ;;  %v247_v50 = vld [vmem:[#allocation10 + $0x390] sm:$0xff]  ;;  %v5471_v55 = vcombine.low %v343_v44, %v347_v45  ;;  %v320_v45 = vld [vmem:[#allocation10 + $0x5d8] sm:$0xff] }
  0xb7   :  { %1548 = vmatmul.mubr.bf16.vlgmr.msra.gmra.mxu1 %v6699_v17  ;;  %1599 = vmatprep.subr.bf16.mxu0 %v5312_v52  ;;  %v335_v52 = vld [vmem:[#allocation10 + $0x650] sm:$0xff] }
  0xb8   :  { %1639 = vmatpush1.bf16.msra.mxu1 %v5447_v51  ;;  %5477 = vmatprep.mubr.msk.bf16.mxu1 %vm1429_vm0, %v6688_v43  ;;  %v251_v51 = vld [vmem:[#allocation10 + $0x3b0] sm:$0xff] }
  0xb9   :  { %1640 = vmatprep.subr.bf16.mxu1 %v5440_v53  ;;  %v339_v53 = vld [vmem:[#allocation10 + $0x670] sm:$0xff]  ;;  %v5376_v56 = vcombine.high %v247_v50, %v251_v51  ;;  %v5375_v63 = vcombine.low %v247_v50, %v251_v51 }
  0xba   :  { %1600 = vmatpush1.bf16.msra.mxu0 %v5311_v58  ;;  %v5464_v57 = vcombine.high %v335_v52, %v339_v53  ;;  %v239_v58 = vld [vmem:[#allocation10 + $0x350] sm:$0xff]  ;;  %v5463_v0 = vcombine.low %v335_v52, %v339_v53  ;;  %v312_v53 = vld [vmem:[#allocation10 + $0x598] sm:$0xff] }
  0xbb   :  { %1601 = vmatprep.subr.bf16.mxu0 %v5304_v60  ;;  %v327_v60 = vld [vmem:[#allocation10 + $0x610] sm:$0xff] }
  0xbc   :  { %1641 = vmatpush1.bf16.msra.mxu1 %v5439_v59  ;;  %v243_v59 = vld [vmem:[#allocation10 + $0x370] sm:$0xff] }
  0xbd   :  { %1642 = vmatprep.subr.bf16.mxu1 %v5432_v62  ;;  %v331_v62 = vld [vmem:[#allocation10 + $0x630] sm:$0xff]  ;;  %v5368_v1 = vcombine.high %v239_v58, %v243_v59  ;;  %v5367_v7 = vcombine.low %v239_v58, %v243_v59 }
  0xbe   :  { %1602 = vmatpush1.bf16.msra.mxu0 %v5303_v3  ;;  %v5456_v2 = vcombine.high %v327_v60, %v331_v62  ;;  %v231_v3 = vld [vmem:[#allocation10 + $0x310] sm:$0xff]  ;;  %v5455_v8 = vcombine.low %v327_v60, %v331_v62  ;;  %v304_v62 = vld [vmem:[#allocation10 + $0x558] sm:$0xff] }
  0xbf   :  { %1603 = vmatprep.subr.bf16.mxu0 %v5296_v5  ;;  %v192_v5 = vld [vmem:[#allocation10 + $0x1d8] sm:$0xff] }
  0xc0   :  { %1643 = vmatpush1.bf16.msra.mxu1 %v5431_v4  ;;  %v235_v4 = vld [vmem:[#allocation10 + $0x330] sm:$0xff] }
  0xc1   :  { %1644 = vmatprep.subr.bf16.mxu1 %v5424_v6  ;;  %v196_v6 = vld [vmem:[#allocation10 + $0x1f8] sm:$0xff]  ;;  %v5360_v9 = vcombine.high %v231_v3, %v235_v4  ;;  %v5359_v15 = vcombine.low %v231_v3, %v235_v4 }
  0xc2   :  { %1604 = vmatpush1.bf16.msra.mxu0 %v5295_v11  ;;  %v5322_v10 = vcombine.high %v192_v5, %v196_v6  ;;  %v223_v11 = vld [vmem:[#allocation10 + $0x2d0] sm:$0xff]  ;;  %v5321_v16 = vcombine.low %v192_v5, %v196_v6  ;;  %v296_v6 = vld [vmem:[#allocation10 + $0x518] sm:$0xff] }
  0xc3   :  { %1605 = vmatprep.subr.bf16.mxu0 %v5288_v13  ;;  %v184_v13 = vld [vmem:[#allocation10 + $0x198] sm:$0xff] }
  0xc4   :  { %1645 = vmatpush1.bf16.msra.mxu1 %v5423_v12  ;;  %v227_v12 = vld [vmem:[#allocation10 + $0x2f0] sm:$0xff] }
  0xc5   :  { %1646 = vmatprep.subr.bf16.mxu1 %v5416_v14  ;;  %v188_v14 = vld [vmem:[#allocation10 + $0x1b8] sm:$0xff]  ;;  %v5352_v18 = vcombine.high %v223_v11, %v227_v12  ;;  %v5351_v24 = vcombine.low %v223_v11, %v227_v12 }
  0xc6   :  { %1606 = vmatpush1.bf16.msra.mxu0 %v5287_v20  ;;  %v5314_v19 = vcombine.high %v184_v13, %v188_v14  ;;  %v215_v20 = vld [vmem:[#allocation10 + $0x290] sm:$0xff]  ;;  %v5313_v25 = vcombine.low %v184_v13, %v188_v14  ;;  %v288_v14 = vld [vmem:[#allocation10 + $0x4d8] sm:$0xff] }
  0xc7   :  { %1607 = vmatprep.subr.bf16.mxu0 %v5280_v22  ;;  %v176_v22 = vld [vmem:[#allocation10 + $0x158] sm:$0xff] }
  0xc8   :  { %1647 = vmatpush1.bf16.msra.mxu1 %v5415_v21  ;;  %v219_v21 = vld [vmem:[#allocation10 + $0x2b0] sm:$0xff] }
  0xc9   :  { %1648 = vmatprep.subr.bf16.mxu1 %v5408_v23  ;;  %v180_v23 = vld [vmem:[#allocation10 + $0x178] sm:$0xff]  ;;  %v5344_v26 = vcombine.high %v215_v20, %v219_v21  ;;  %v5343_v32 = vcombine.low %v215_v20, %v219_v21 }
  0xca   :  { %1608 = vmatpush1.bf16.msra.mxu0 %v5279_v28  ;;  %v5306_v27 = vcombine.high %v176_v22, %v180_v23  ;;  %v207_v28 = vld [vmem:[#allocation10 + $0x250] sm:$0xff]  ;;  %v5305_v33 = vcombine.low %v176_v22, %v180_v23  ;;  %v280_v22 = vld [vmem:[#allocation10 + $0x498] sm:$0xff] }
  0xcb   :  { %1609 = vmatprep.subr.bf16.mxu0 %v5272_v30  ;;  %v168_v30 = vld [vmem:[#allocation10 + $0x118] sm:$0xff] }
  0xcc   :  { %1649 = vmatpush1.bf16.msra.mxu1 %v5407_v29  ;;  %v211_v29 = vld [vmem:[#allocation10 + $0x270] sm:$0xff]  ;;  %v284_v23 = vld [vmem:[#allocation10 + $0x4b8] sm:$0xff] }
  0xcd   :  { %1650 = vmatprep.subr.bf16.mxu1 %v5400_v31  ;;  %v172_v31 = vld [vmem:[#allocation10 + $0x138] sm:$0xff]  ;;  %v5336_v34 = vcombine.high %v207_v28, %v211_v29  ;;  %v5335_v41 = vcombine.low %v207_v28, %v211_v29  ;;  %v5410_v28 = vcombine.high %v280_v22, %v284_v23 }
  0xce   :  { %1610 = vmatpush1.bf16.msra.mxu0 %v5271_v36  ;;  %v5298_v35 = vcombine.high %v168_v30, %v172_v31  ;;  %v199_v36 = vld [vmem:[#allocation10 + $0x210] sm:$0xff]  ;;  %v5297_v42 = vcombine.low %v168_v30, %v172_v31  ;;  %v272_v30 = vld [vmem:[#allocation10 + $0x458] sm:$0xff] }
  0xcf   :  { %1611 = vmatprep.subr.bf16.mxu0 %v5264_v38  ;;  %v160_v38 = vld [vmem:[#allocation10 + $0xd8] sm:$0xff] }
  0xd0   :  { %1651 = vmatpush1.bf16.msra.mxu1 %v5399_v37  ;;  %v203_v37 = vld [vmem:[#allocation10 + $0x230] sm:$0xff]  ;;  %v276_v31 = vld [vmem:[#allocation10 + $0x478] sm:$0xff] }
  0xd1   :  { %1652 = vmatprep.subr.bf16.mxu1 %v5392_v40  ;;  %v164_v40 = vld [vmem:[#allocation10 + $0xf8] sm:$0xff] }
  0xd2   :  { %1612 = vmatpush1.bf16.msra.mxu0 %v5263_v46  ;;  %v5290_v44 = vcombine.high %v160_v38, %v164_v40  ;;  %v324_v46 = vld [vmem:[#allocation10 + $0x5f8] sm:$0xff]  ;;  %v5289_v50 = vcombine.low %v160_v38, %v164_v40 }
  0xd3   :  { %1613 = vmatprep.subr.bf16.mxu0 %v5384_v48  ;;  %v156_v48 = vld [vmem:[#allocation10 + $0xb8] sm:$0xff]  ;;  %v5450_v51 = vcombine.high %v320_v45, %v324_v46 }
  0xd4   :  { %1653 = vmatpush1.bf16.msra.mxu1 %v5391_v47  ;;  %v152_v47 = vld [vmem:[#allocation10 + $0x98] sm:$0xff] }
  0xd5   :  { %1664 = vmatprep.subr.bf16.mxu1 %v5472_v49  ;;  %v5327_v49 = vcombine.low %v199_v36, %v203_v37  ;;  %v5282_v52 = vcombine.high %v152_v47, %v156_v48  ;;  %v5281_v58 = vcombine.low %v152_v47, %v156_v48  ;;  %v264_v38 = vld [vmem:[#allocation10 + $0x418] sm:$0xff] }
  0xd6   :  { %1614 = vmatpush2.bf16.msra.mxu0 %v5383_v54  ;;  %v316_v54 = vld [vmem:[#allocation10 + $0x5b8] sm:$0xff] }
  0xd7   :  { %1615 = vmatprep.subr.bf16.mxu0 %v5376_v56  ;;  %v148_v56 = vld [vmem:[#allocation10 + $0x78] sm:$0xff]  ;;  %v5442_v59 = vcombine.high %v312_v53, %v316_v54 }
  0xd8   :  { %1665 = vmatpush2.bf16.msra.mxu1 %v5471_v55  ;;  %v144_v55 = vld [vmem:[#allocation10 + $0x58] sm:$0xff] }
  0xd9   :  { %1666 = vmatprep.subr.bf16.mxu1 %v5464_v57  ;;  %v5449_v57 = vcombine.low %v320_v45, %v324_v46  ;;  %v5274_v60 = vcombine.high %v144_v55, %v148_v56  ;;  %v5273_v3 = vcombine.low %v144_v55, %v148_v56  ;;  %v268_v40 = vld [vmem:[#allocation10 + $0x438] sm:$0xff] }
  0xda   :  { %1616 = vmatpush2.bf16.msra.mxu0 %v5375_v63  ;;  %v308_v63 = vld [vmem:[#allocation10 + $0x578] sm:$0xff]  ;;  %v5394_v45 = vcombine.high %v264_v38, %v268_v40 }
  0xdb   :  { %1617 = vmatprep.subr.bf16.mxu0 %v5368_v1  ;;  %v140_v1 = vld [vmem:[#allocation10 + $0x38] sm:$0xff]  ;;  %v5434_v4 = vcombine.high %v304_v62, %v308_v63 }
  0xdc   :  { %1667 = vmatpush2.bf16.msra.mxu1 %v5463_v0  ;;  %v136_v0 = vld [vmem:[#allocation10 + $0x18] sm:$0xff] }
  0xdd   :  { %1668 = vmatprep.subr.bf16.mxu1 %v5456_v2  ;;  %v5441_v2 = vcombine.low %v312_v53, %v316_v54  ;;  %v5266_v5 = vcombine.high %v136_v0, %v140_v1  ;;  %v5265_v11 = vcombine.low %v136_v0, %v140_v1  ;;  %v344_v47 = vld [vmem:[#allocation10 + $0x698] sm:$0xff] }
  0xde   :  { %1618 = vmatpush2.bf16.msra.mxu0 %v5367_v7  ;;  %v300_v7 = vld [vmem:[#allocation10 + $0x538] sm:$0xff] }
  0xdf   :  { %1619 = vmatprep.subr.bf16.mxu0 %v5360_v9  ;;  %v260_v9 = vld [vmem:[#allocation10 + $0x3f8] sm:$0xff]  ;;  %v5426_v12 = vcombine.high %v296_v6, %v300_v7 }
  0xe0   :  { %1669 = vmatpush2.bf16.msra.mxu1 %v5455_v8  ;;  %v256_v8 = vld [vmem:[#allocation10 + $0x3d8] sm:$0xff] }
  0xe1   :  { %1679 = vmatprep.subr.bf16.mxu1 %v5322_v10  ;;  %v5433_v10 = vcombine.low %v304_v62, %v308_v63  ;;  %v5386_v13 = vcombine.high %v256_v8, %v260_v9  ;;  %v348_v48 = vld [vmem:[#allocation10 + $0x6b8] sm:$0xff] }
  0xe2   :  { %1620 = vmatpush2.bf16.msra.mxu0 %v5359_v15  ;;  %v248_v15 = vld [vmem:[#allocation10 + $0x398] sm:$0xff]  ;;  %v5474_v53 = vcombine.high %v344_v47, %v348_v48 }
  0xe3   :  { %1671 = vmatmul.mubr.bf16.vlgmr.msra.gmra.mxu1 %v6695_v39  ;;  %1621 = vmatprep.subr.bf16.mxu0 %v5352_v18  ;;  %v5425_v18 = vcombine.low %v296_v6, %v300_v7  ;;  %v336_v55 = vld [vmem:[#allocation10 + $0x658] sm:$0xff] }
  0xe4   :  { %1680 = vmatpush1.bf16.msra.mxu1 %v5321_v16  ;;  %1711 = vmatprep.mubr.bf16.mxu1 %v6692_v61  ;;  %v5328_v61 = vcombine.high %v199_v36, %v203_v37  ;;  %v252_v16 = vld [vmem:[#allocation10 + $0x3b8] sm:$0xff]  ;;  %v5402_v36 = vcombine.high %v272_v30, %v276_v31 }
  0xe5   :  { %1681 = vmatprep.subr.bf16.mxu1 %v5314_v19  ;;  %v5385_v19 = vcombine.low %v256_v8, %v260_v9  ;;  %v5378_v21 = vcombine.high %v248_v15, %v252_v16  ;;  %v340_v56 = vld [vmem:[#allocation10 + $0x678] sm:$0xff] }
  0xe6   :  { %1622 = vmatpush2.bf16.msra.mxu0 %v5351_v24  ;;  %v240_v24 = vld [vmem:[#allocation10 + $0x358] sm:$0xff]  ;;  %v5466_v62 = vcombine.high %v336_v55, %v340_v56 }
  0xe7   :  { %1623 = vmatprep.subr.bf16.mxu0 %v5344_v26  ;;  %v328_v0 = vld [vmem:[#allocation10 + $0x618] sm:$0xff] }
  0xe8   :  { %1682 = vmatpush1.bf16.msra.mxu1 %v5313_v25  ;;  %v244_v25 = vld [vmem:[#allocation10 + $0x378] sm:$0xff] }
  0xe9   :  { %1683 = vmatprep.subr.bf16.mxu1 %v5306_v27  ;;  %v5377_v27 = vcombine.low %v248_v15, %v252_v16  ;;  %v5370_v29 = vcombine.high %v240_v24, %v244_v25  ;;  %v332_v1 = vld [vmem:[#allocation10 + $0x638] sm:$0xff] }
  0xea   :  { %1624 = vmatpush2.bf16.msra.mxu0 %v5343_v32  ;;  %v232_v32 = vld [vmem:[#allocation10 + $0x318] sm:$0xff]  ;;  %v5458_v6 = vcombine.high %v328_v0, %v332_v1  ;;  %v5457_v8 = vcombine.low %v328_v0, %v332_v1 }
  0xeb   :  { %1625 = vmatprep.subr.bf16.mxu0 %v5336_v34  ;;  %v5409_v34 = vcombine.low %v280_v22, %v284_v23  ;;  %v6718_v23 = vstv %s5256_s5 }
  0xec   :  { %1684 = vmatpush1.bf16.msra.mxu1 %v5305_v33  ;;  %v236_v33 = vld [vmem:[#allocation10 + $0x338] sm:$0xff] }
  0xed   :  { %1685 = vmatprep.subr.bf16.mxu1 %v5298_v35  ;;  %v5369_v35 = vcombine.low %v240_v24, %v244_v25  ;;  %v5362_v37 = vcombine.high %v232_v32, %v236_v33 }
  0xee   :  { %1626 = vmatpush2.bf16.msra.mxu0 %v5335_v41  ;;  %v224_v41 = vld [vmem:[#allocation10 + $0x2d8] sm:$0xff] }
  0xef   :  { %1627 = vmatprep.subr.bf16.mxu0 %v5328_v61  ;;  %v5401_v61 = vcombine.low %v272_v30, %v276_v31 }
  0xf0   :  { %1686 = vmatpush1.bf16.msra.mxu1 %v5297_v42  ;;  %v228_v42 = vld [vmem:[#allocation10 + $0x2f8] sm:$0xff] }
  0xf1   :  { %1687 = vmatprep.subr.bf16.mxu1 %v5290_v44  ;;  %v5361_v44 = vcombine.low %v232_v32, %v236_v33  ;;  %v5354_v46 = vcombine.high %v224_v41, %v228_v42 }
  0xf2   :  { %1628 = vmatpush2.bf16.msra.mxu0 %v5327_v49  ;;  %v216_v49 = vld [vmem:[#allocation10 + $0x298] sm:$0xff] }
  0xf3   :  { %1720 = vmatprep.subr.bf16.mxu0 %v5450_v51  ;;  %v5393_v51 = vcombine.low %v264_v38, %v268_v40 }
  0xf4   :  { %1688 = vmatpush1.bf16.msra.mxu1 %v5289_v50  ;;  %v220_v50 = vld [vmem:[#allocation10 + $0x2b8] sm:$0xff] }
  0xf5   :  { %1689 = vmatprep.subr.bf16.mxu1 %v5282_v52  ;;  %1630 = vmatmul.mubr.bf16.vlgmr.msra.gmra.mxu0 %v6699_v17  ;;  %v5353_v52 = vcombine.low %v224_v41, %v228_v42  ;;  %v5346_v54 = vcombine.high %v216_v49, %v220_v50 }
  0xf6   :  { %1721 = vmatpush1.bf16.msra.mxu0 %v5449_v57  ;;  %5478 = vmatprep.mubr.msk.bf16.mxu0 %vm1429_vm0, %v6688_v43  ;;  %v292_v43 = vld [vmem:[#allocation10 + $0x4f8] sm:$0xff] }
  0xf7   :  { %1722 = vmatprep.subr.bf16.mxu0 %v5442_v59  ;;  %v5418_v20 = vcombine.high %v288_v14, %v292_v43  ;;  %v5417_v26 = vcombine.low %v288_v14, %v292_v43  ;;  %v208_v57 = vld [vmem:[#allocation10 + $0x258] sm:$0xff]  ;;  %v5473_v59 = vcombine.low %v344_v47, %v348_v48 }
  0xf8   :  { %1690 = vmatpush1.bf16.msra.mxu1 %v5281_v58  ;;  %v212_v58 = vld [vmem:[#allocation10 + $0x278] sm:$0xff] }
  0xf9   :  { %1691 = vmatprep.subr.bf16.mxu1 %v5274_v60  ;;  %v5345_v60 = vcombine.low %v216_v49, %v220_v50  ;;  %v5338_v63 = vcombine.high %v208_v57, %v212_v58 }
  0xfa   :  { %1723 = vmatpush1.bf16.msra.mxu0 %v5441_v2  ;;  %v200_v2 = vld [vmem:[#allocation10 + $0x218] sm:$0xff] }
  0xfb   :  { %1724 = vmatprep.subr.bf16.mxu0 %v5434_v4  ;;  %v5465_v4 = vcombine.low %v336_v55, %v340_v56 }
  0xfc   :  { %1692 = vmatpush1.bf16.msra.mxu1 %v5273_v3  ;;  %v204_v3 = vld [vmem:[#allocation10 + $0x238] sm:$0xff] }
  0xfd   :  { %1693 = vmatprep.subr.bf16.mxu1 %v5266_v5  ;;  %v5337_v5 = vcombine.low %v208_v57, %v212_v58  ;;  %v5330_v7 = vcombine.high %v200_v2, %v204_v3  ;;  %v5329_v9 = vcombine.low %v200_v2, %v204_v3 }
  0xfe   :  { %1725 = vmatpush1.bf16.msra.mxu0 %v5433_v10 }
  0xff   :  { %1726 = vmatprep.subr.bf16.mxu0 %v5426_v12 }
 0x100   :  { %1694 = vmatpush1.bf16.msra.mxu1 %v5265_v11 }
 0x101   :  { %1695 = vmatprep.subr.bf16.mxu1 %v5386_v13 }
 0x102   :  { %1727 = vmatpush1.bf16.msra.mxu0 %v5425_v18 }
 0x103   :  { %1728 = vmatprep.subr.bf16.mxu0 %v5418_v20 }
 0x104   :  { %1696 = vmatpush2.bf16.msra.mxu1 %v5385_v19 }
 0x105   :  { %1697 = vmatprep.subr.bf16.mxu1 %v5378_v21  ;;  %v6716_v21 = vstv %s121_s3 }
 0x106   :  { %1729 = vmatpush1.bf16.msra.mxu0 %v5417_v26 }
 0x107   :  { %1730 = vmatprep.subr.bf16.mxu0 %v5410_v28 }
 0x108   :  { %1698 = vmatpush2.bf16.msra.mxu1 %v5377_v27 }
 0x109   :  { %1699 = vmatprep.subr.bf16.mxu1 %v5370_v29 }
 0x10a   :  { %1731 = vmatpush1.bf16.msra.mxu0 %v5409_v34 }
 0x10b   :  { %1732 = vmatprep.subr.bf16.mxu0 %v5402_v36 }
 0x10c   :  { %1700 = vmatpush2.bf16.msra.mxu1 %v5369_v35 }
 0x10d   :  { %1701 = vmatprep.subr.bf16.mxu1 %v5362_v37 }
 0x10e   :  { %1733 = vmatpush1.bf16.msra.mxu0 %v5401_v61 }
 0x10f   :  { %1734 = vmatprep.subr.bf16.mxu0 %v5394_v45 }
 0x110   :  { %1702 = vmatpush2.bf16.msra.mxu1 %v5361_v44 }
 0x111   :  { %1703 = vmatprep.subr.bf16.mxu1 %v5354_v46 }
 0x112   :  { %1735 = vmatpush1.bf16.msra.mxu0 %v5393_v51 }
 0x113   :  { %1746 = vmatprep.subr.bf16.mxu0 %v5474_v53 }
 0x114   :  { %1704 = vmatpush2.bf16.msra.mxu1 %v5353_v52 }
 0x115   :  { %1705 = vmatprep.subr.bf16.mxu1 %v5346_v54 }
 0x116   :  { %1747 = vmatpush2.bf16.msra.mxu0 %v5473_v59 }
 0x117   :  { %1748 = vmatprep.subr.bf16.mxu0 %v5466_v62 }
 0x118   :  { %1706 = vmatpush2.bf16.msra.mxu1 %v5345_v60 }
 0x119   :  { %1707 = vmatprep.subr.bf16.mxu1 %v5338_v63 }
 0x11a   :  { %1749 = vmatpush2.bf16.msra.mxu0 %v5465_v4 }
 0x11b   :  { %1750 = vmatprep.subr.bf16.mxu0 %v5458_v6 }
 0x11c   :  { %1708 = vmatpush2.bf16.msra.mxu1 %v5337_v5 }
 0x11d   :  { %1709 = vmatprep.subr.bf16.mxu1 %v5330_v7 }
 0x11e   :  { %1751 = vmatpush2.bf16.msra.mxu0 %v5457_v8 }
 0x120   :  { %1710 = vmatpush2.bf16.msra.mxu1 %v5329_v9 }
 0x121   :  { %1753 = vmatmul.mubr.bf16.vlgmr.msra.gmra.mxu0 %v6695_v39 }
 0x123   :  { %1712 = vmatmul.mubr.bf16.vlgmr.msra.gmra.mxu1 %v6699_v17 }
 0x137   :  { %v1508_v10 = vpop.f32.mrf.mxu1 }
 0x139   :  { %v1510_v11 = vpop.f32.mrf.mxu1 }
 0x13b   :  { %v1512_v12 = vpop.f32.mrf.mxu1 }
 0x13d   :  { %v1513_v13 = vpop.f32.mrf.mxu1 }
 0x149   :  { %v1467_v14 = vpop.f32.mrf.mxu0 }
 0x14a   :  { %v1509_v43 = vadd.f32 %v1508_v10, %v1467_v14 }
 0x14b   :  { %v1469_v15 = vpop.f32.mrf.mxu0 }
 0x14c   :  { %v1511_v16 = vadd.f32 %v1510_v11, %v1469_v15  ;;  %v1762_v25 = vmul.f32 %v6716_v21, %v1509_v43 }
 0x14d   :  { %v1471_v18 = vpop.f32.mrf.mxu0 }
 0x14e   :  { %v1763_v30 = vmul.f32 %v6716_v21, %v1511_v16 }
 0x14f   :  { %v1472_v19 = vpop.f32.mrf.mxu0 }
 0x175   :  { %v1590_v20 = vpop.f32.mrf.mxu0 }
 0x177   :  { %v1549_v22 = vpop.f32.mrf.mxu1  ;;  %v1592_v17 = vpop.f32.mrf.mxu0 }
 0x178   :  { %v1591_v39 = vadd.f32 %v1590_v20, %v1549_v22 }
 0x179   :  { %v1551_v24 = vpop.f32.mrf.mxu1  ;;  %v1594_v28 = vpop.f32.mrf.mxu0 }
 0x17a   :  { %v1765_v26 = vmul.f32 %v6718_v23, %v1591_v39  ;;  %v1593_v27 = vadd.f32 %v1592_v17, %v1551_v24 }
 0x17b   :  { %v1553_v29 = vpop.f32.mrf.mxu1  ;;  %v1595_v33 = vpop.f32.mrf.mxu0 }
 0x17c   :  { %v1767_v31 = vadd.f32 %v1765_v26, %v1762_v25  ;;  %v1766_v32 = vmul.f32 %v6718_v23, %v1593_v27 }
 0x17d   :  { %v1554_v34 = vpop.f32.mrf.mxu1 }
 0x17e   :  { %v6724_v35 = vadd.f32 %v1766_v32, %v1763_v30 }
 0x17f   :  { %6559 = shalt.err (!%p6556_p1)  }
 0x180   :  { %108 = dma.hbm_to_vmem [thread:$0]  %s6855_s6, 16384, %s106_s10, [#allocation4] }
 0x181   :  { %s6568_s16 = scalar_lea.vmem %s118_s12, 40960  ;;  %p6573_p3 = scmp.lt.s32.totalorder %s118_s12, %s118_s12 }
 0x182   :  { %p6569_p2 = scmp.ne.s32.totalorder %s118_s12, %s6568_s16  ;;  %p6574_p4 = scmp.lt.s32.totalorder %s6568_s16, %s6568_s16 }
 0x184   :  { %p6575_p5 = por %p6574_p4, %p6573_p3 }
 0x186   :  { %p6576_p6 = pnand %p6575_p5, %p6569_p2 }
 0x188   :  { %6579 = shalt.err (!%p6576_p6)  }
 0x189   :  { %120 = dma.hbm_to_vmem [thread:$0]  %s6856_s7, 40960, %s118_s12, [#allocation4 + $0x1]  ;;  %v1779_v49 = vld [vmem:[#allocation12] ss:$4 sm:$0x3]  ;;  %v1794_v56 = vlaneseq }
 0x18a   :  { %s5257_s19 = sld [smem:[#allocation5 + $0x2]]  ;;  %v1782_v50 = vld [vmem:[#allocation12 + $0x1] ss:$4 sm:$0x3]  ;;  %v1780_v51 = vmul.f32 %v1779_v49, %v6716_v21 }
 0x18b   :  { %s5258_s6 = sld [smem:[#allocation5 + $0x3]]  ;;  %v1783_v52 = vmul.f32 %v1782_v50, %v6718_v23  ;;  %v1786_v53 = vld [vmem:[#allocation12 + $0x2] ss:$4 sm:$0x3]  ;;  %v6741_v62 = vshrl.u32 %v1794_v56, 7 }
 0x18c   :  { %v1790_v58 = vld [vmem:[#allocation12 + $0x3] ss:$4 sm:$0x3] }
 0x18d   :  { %v1784_v54 = vadd.f32 %v1783_v52, %v1780_v51  ;;  %v6744_v2 = vsub.s32 0, %v6741_v62  ;;  %v6748_v7 = vsub.s32 1, %v6741_v62 }
 0x190   :  { %v6732_v42 = vstv %s5257_s19 }
 0x191   :  { %v1787_v55 = vmul.f32 %v1786_v53, %v6732_v42  ;;  %v6738_v57 = vstv %s5258_s6 }
 0x192   :  { %v1791_v60 = vmul.f32 %v1790_v58, %v6738_v57 }
 0x193   :  { %v1788_v59 = vadd.f32 %v1787_v55, %v1784_v54 }
 0x195   :  { %v1792_v1 = vadd.f32 %v1791_v60, %v1788_v59 }
 0x197   :  { %v1797_v10 = vrot.slane %v1792_v1, %v6744_v2  ;;  %v1801_v16 = vrot.slane %v1792_v1, %v6748_v7 }
 0x1a3   :  { %v1672_v36 = vpop.f32.mrf.mxu1 }
 0x1a5   :  { %v1674_v37 = vpop.f32.mrf.mxu1 }
 0x1a7   :  { %v1676_v38 = vpop.f32.mrf.mxu1 }
 0x1a9   :  { %v1677_v40 = vpop.f32.mrf.mxu1 }
 0x1b5   :  { %v1631_v41 = vpop.f32.mrf.mxu0 }
 0x1b6   :  { %v1673_v61 = vadd.f32 %v1672_v36, %v1631_v41 }
 0x1b7   :  { %v1633_v44 = vpop.f32.mrf.mxu0 }
 0x1b8   :  { %v1770_v45 = vmul.f32 %v6732_v42, %v1673_v61  ;;  %v1675_v63 = vadd.f32 %v1674_v37, %v1633_v44 }
 0x1b9   :  { %v1635_v46 = vpop.f32.mrf.mxu0 }
 0x1ba   :  { %v1772_v47 = vadd.f32 %v1770_v45, %v1767_v31  ;;  %v1771_v4 = vmul.f32 %v6732_v42, %v1675_v63 }
 0x1bb   :  { %v1636_v48 = vpop.f32.mrf.mxu0 }
 0x1bc   :  { %v1773_v14 = vadd.f32 %v1771_v4, %v6724_v35 }
 0x1e1   :  { %v1754_v0 = vpop.f32.mrf.mxu0 }
 0x1e3   :  { %v1713_v3 = vpop.f32.mrf.mxu1  ;;  %v1756_v6 = vpop.f32.mrf.mxu0 }
 0x1e4   :  { %v1755_v5 = vadd.f32 %v1754_v0, %v1713_v3 }
 0x1e5   :  { %v1715_v8 = vpop.f32.mrf.mxu1  ;;  %v1758_v12 = vpop.f32.mrf.mxu0 }
 0x1e6   :  { %v1775_v9 = vmul.f32 %v6738_v57, %v1755_v5  ;;  %v1757_v11 = vadd.f32 %v1756_v6, %v1715_v8 }
 0x1e7   :  { %v1717_v13 = vpop.f32.mrf.mxu1  ;;  %v1759_v18 = vpop.f32.mrf.mxu0 }
 0x1e8   :  { %v1777_v43 = vadd.f32 %v1775_v9, %v1772_v47  ;;  %v1776_v15 = vmul.f32 %v6738_v57, %v1757_v11 }
 0x1e9   :  { %v1718_v19 = vpop.f32.mrf.mxu1 }
 0x1ea   :  { %v1804_v20 = vadd.f32 %v1797_v10, %v1777_v43  ;;  %v1778_v22 = vadd.f32 %v1776_v15, %v1773_v14 }
 0x1ec   :  { %v1808_v39 = vmul.f32 1.442695, %v1804_v20  ;;  %v1805_v17 = vadd.f32 %v1801_v16, %v1778_v22  ;;  %vm1806_vm1 = vcmp.gt.f32.partialorder %v1804_v20, 0.0 }
 0x1ee   :  { %5944 = vpow2.f32 %v1808_v39  ;;  %v1810_v24 = vmul.f32 1.442695, %v1805_v17  ;;  %vm1807_vm2 = vcmp.gt.f32.partialorder %v1805_v17, 0.0 }
 0x1f0   :  { %5946 = vpow2.f32 %v1810_v24 }
 0x1fb   :  { %v5945_v25 = vpop.eup %5944 }
 0x1fc   :  { %v5479_v26 = vadd.f32 -1.0, %v5945_v25 }
 0x1fd   :  { %v5947_v27 = vpop.eup %5946 }
 0x1fe   :  { %v1814_v28 = vsel %vm1806_vm1, %v1804_v20, %v5479_v26  ;;  %v5480_v29 = vadd.f32 -1.0, %v5947_v27 }
 0x1ff   :  { %v6755_v30 = vpack.c.bf16 %v1814_v28, %v1814_v28 }
 0x200   :  { %v1815_v31 = vsel %vm1807_vm2, %v1805_v17, %v5480_v29 }
 0x201   :  { %v6757_v32 = vpack.c.bf16 %v1815_v31, %v1815_v31 }
 0x202   :  { %6608 = dma.done.wait [#allocation4], 16384 }
 0x203   :  { %6609 = vsyncadd [#allocation4], 4294950912  ;;  %2622 = vmatprep.mubr.bf16.mxu0 %v6757_v32  ;;  %2663 = vmatprep.mubr.bf16.mxu1 %v6757_v32  ;;  %v1878_v33 = vld [vmem:[#allocation2 + $0x1c0] sm:$0xff]  ;;  %v1879_v35 = vld [vmem:[#allocation2 + $0x1c8] sm:$0xff] }
 0x204   :  { %v1882_v34 = vld [vmem:[#allocation2 + $0x1e0] sm:$0xff]  ;;  %v1883_v37 = vld [vmem:[#allocation2 + $0x1e8] sm:$0xff] }
 0x205   :  { %v5538_v36 = vcombine.high %v1878_v33, %v1882_v34  ;;  %v5537_v38 = vcombine.low %v1878_v33, %v1882_v34  ;;  %v1870_v40 = vld [vmem:[#allocation2 + $0x180] sm:$0xff]  ;;  %v5540_v61 = vcombine.high %v1879_v35, %v1883_v37  ;;  %v5539_v44 = vcombine.low %v1879_v35, %v1883_v37  ;;  %v1871_v46 = vld [vmem:[#allocation2 + $0x188] sm:$0xff] }
 0x206   :  { %v1874_v41 = vld [vmem:[#allocation2 + $0x1a0] sm:$0xff]  ;;  %v1875_v47 = vld [vmem:[#allocation2 + $0x1a8] sm:$0xff] }
 0x207   :  { %v5530_v45 = vcombine.high %v1870_v40, %v1874_v41  ;;  %v1862_v48 = vld [vmem:[#allocation2 + $0x140] sm:$0xff]  ;;  %2590 = vmatprep.subr.bf16.mxu0 %v5538_v36  ;;  %v5532_v49 = vcombine.high %v1871_v46, %v1875_v47  ;;  %v1863_v51 = vld [vmem:[#allocation2 + $0x148] sm:$0xff]  ;;  %2631 = vmatprep.subr.bf16.mxu1 %v5540_v61  ;;  %v5529_v53 = vcombine.low %v1870_v40, %v1874_v41 }
 0x208   :  { %v1866_v50 = vld [vmem:[#allocation2 + $0x160] sm:$0xff]  ;;  %v1867_v52 = vld [vmem:[#allocation2 + $0x168] sm:$0xff]  ;;  %2591 = vmatpush1.bf16.msra.mxu0 %v5537_v38  ;;  %2632 = vmatpush1.bf16.msra.mxu1 %v5539_v44  ;;  %v5531_v54 = vcombine.low %v1871_v46, %v1875_v47 }
 0x209   :  { %2592 = vmatprep.subr.bf16.mxu0 %v5530_v45  ;;  %v5522_v55 = vcombine.high %v1862_v48, %v1866_v50  ;;  %2633 = vmatprep.subr.bf16.mxu1 %v5532_v49  ;;  %v5524_v56 = vcombine.high %v1863_v51, %v1867_v52  ;;  %v1854_v58 = vld [vmem:[#allocation2 + $0x100] sm:$0xff]  ;;  %v1855_v60 = vld [vmem:[#allocation2 + $0x108] sm:$0xff]  ;;  %v5521_v0 = vcombine.low %v1862_v48, %v1866_v50 }
 0x20a   :  { %v1858_v59 = vld [vmem:[#allocation2 + $0x120] sm:$0xff]  ;;  %v1859_v63 = vld [vmem:[#allocation2 + $0x128] sm:$0xff]  ;;  %v5523_v1 = vcombine.low %v1863_v51, %v1867_v52 }
 0x20b   :  { %v5514_v3 = vcombine.high %v1854_v58, %v1858_v59  ;;  %v5516_v4 = vcombine.high %v1855_v60, %v1859_v63  ;;  %v1846_v5 = vld [vmem:[#allocation2 + $0xc0] sm:$0xff]  ;;  %v1847_v8 = vld [vmem:[#allocation2 + $0xc8] sm:$0xff]  ;;  %v5513_v10 = vcombine.low %v1854_v58, %v1858_v59  ;;  %v5515_v11 = vcombine.low %v1855_v60, %v1859_v63 }
 0x20c   :  { %2593 = vmatpush1.bf16.msra.mxu0 %v5529_v53  ;;  %2634 = vmatpush1.bf16.msra.mxu1 %v5531_v54  ;;  %v1850_v6 = vld [vmem:[#allocation2 + $0xe0] sm:$0xff]  ;;  %v1851_v9 = vld [vmem:[#allocation2 + $0xe8] sm:$0xff] }
 0x20d   :  { %2594 = vmatprep.subr.bf16.mxu0 %v5522_v55  ;;  %2635 = vmatprep.subr.bf16.mxu1 %v5524_v56  ;;  %v5506_v12 = vcombine.high %v1846_v5, %v1850_v6  ;;  %v5508_v13 = vcombine.high %v1847_v8, %v1851_v9  ;;  %v1838_v14 = vld [vmem:[#allocation2 + $0x80] sm:$0xff]  ;;  %v1839_v15 = vld [vmem:[#allocation2 + $0x88] sm:$0xff]  ;;  %v5505_v18 = vcombine.low %v1846_v5, %v1850_v6 }
 0x20e   :  { %v1842_v43 = vld [vmem:[#allocation2 + $0xa0] sm:$0xff]  ;;  %v1843_v16 = vld [vmem:[#allocation2 + $0xa8] sm:$0xff]  ;;  %v5507_v19 = vcombine.low %v1847_v8, %v1851_v9 }
 0x20f   :  { %v5498_v20 = vcombine.high %v1838_v14, %v1842_v43  ;;  %v5500_v22 = vcombine.high %v1839_v15, %v1843_v16  ;;  %v1830_v39 = vld [vmem:[#allocation2 + $0x40] sm:$0xff]  ;;  %v1831_v24 = vld [vmem:[#allocation2 + $0x48] sm:$0xff]  ;;  %v5497_v26 = vcombine.low %v1838_v14, %v1842_v43  ;;  %v5499_v27 = vcombine.low %v1839_v15, %v1843_v16 }
 0x210   :  { %2595 = vmatpush1.bf16.msra.mxu0 %v5521_v0  ;;  %2636 = vmatpush1.bf16.msra.mxu1 %v5523_v1  ;;  %v1834_v17 = vld [vmem:[#allocation2 + $0x60] sm:$0xff]  ;;  %v1835_v25 = vld [vmem:[#allocation2 + $0x68] sm:$0xff] }
 0x211   :  { %2596 = vmatprep.subr.bf16.mxu0 %v5514_v3  ;;  %2637 = vmatprep.subr.bf16.mxu1 %v5516_v4  ;;  %v5490_v28 = vcombine.high %v1830_v39, %v1834_v17  ;;  %v5492_v29 = vcombine.high %v1831_v24, %v1835_v25  ;;  %v1822_v31 = vld [vmem:[#allocation2] sm:$0xff]  ;;  %v1823_v34 = vld [vmem:[#allocation2 + $0x8] sm:$0xff]  ;;  %v5489_v36 = vcombine.low %v1830_v39, %v1834_v17 }
 0x212   :  { %v1826_v33 = vld [vmem:[#allocation2 + $0x20] sm:$0xff]  ;;  %v1827_v35 = vld [vmem:[#allocation2 + $0x28] sm:$0xff]  ;;  %v5491_v37 = vcombine.low %v1831_v24, %v1835_v25 }
 0x213   :  { %v5482_v38 = vcombine.high %v1822_v31, %v1826_v33  ;;  %v5484_v40 = vcombine.high %v1823_v34, %v1827_v35  ;;  %v1942_v41 = vld [vmem:[#allocation2 + $0x3c0] sm:$0xff]  ;;  %v1943_v44 = vld [vmem:[#allocation2 + $0x3c8] sm:$0xff]  ;;  %v5481_v46 = vcombine.low %v1822_v31, %v1826_v33  ;;  %v5483_v47 = vcombine.low %v1823_v34, %v1827_v35 }
 0x214   :  { %2597 = vmatpush1.bf16.msra.mxu0 %v5513_v10  ;;  %2638 = vmatpush1.bf16.msra.mxu1 %v5515_v11  ;;  %v1946_v61 = vld [vmem:[#allocation2 + $0x3e0] sm:$0xff]  ;;  %v1947_v45 = vld [vmem:[#allocation2 + $0x3e8] sm:$0xff] }
 0x215   :  { %2598 = vmatprep.subr.bf16.mxu0 %v5506_v12  ;;  %2639 = vmatprep.subr.bf16.mxu1 %v5508_v13  ;;  %v5602_v48 = vcombine.high %v1942_v41, %v1946_v61  ;;  %v5604_v49 = vcombine.high %v1943_v44, %v1947_v45  ;;  %v1934_v50 = vld [vmem:[#allocation2 + $0x380] sm:$0xff]  ;;  %v1935_v52 = vld [vmem:[#allocation2 + $0x388] sm:$0xff]  ;;  %v5601_v54 = vcombine.low %v1942_v41, %v1946_v61 }
 0x216   :  { %v1938_v51 = vld [vmem:[#allocation2 + $0x3a0] sm:$0xff]  ;;  %v1939_v53 = vld [vmem:[#allocation2 + $0x3a8] sm:$0xff]  ;;  %v5603_v55 = vcombine.low %v1943_v44, %v1947_v45 }
 0x217   :  { %v5594_v56 = vcombine.high %v1934_v50, %v1938_v51  ;;  %v5596_v58 = vcombine.high %v1935_v52, %v1939_v53  ;;  %v1926_v59 = vld [vmem:[#allocation2 + $0x340] sm:$0xff]  ;;  %v1927_v63 = vld [vmem:[#allocation2 + $0x348] sm:$0xff]  ;;  %v5593_v1 = vcombine.low %v1934_v50, %v1938_v51  ;;  %v5595_v3 = vcombine.low %v1935_v52, %v1939_v53  ;;  %v1880_v51 = vld [vmem:[#allocation2 + $0x1d0] sm:$0xff] }
 0x218   :  { %2599 = vmatpush1.bf16.msra.mxu0 %v5505_v18  ;;  %2640 = vmatpush1.bf16.msra.mxu1 %v5507_v19  ;;  %v1930_v60 = vld [vmem:[#allocation2 + $0x360] sm:$0xff]  ;;  %v1931_v0 = vld [vmem:[#allocation2 + $0x368] sm:$0xff]  ;;  %v1884_v52 = vld [vmem:[#allocation2 + $0x1f0] sm:$0xff] }
 0x219   :  { %2600 = vmatprep.subr.bf16.mxu0 %v5498_v20  ;;  %2641 = vmatprep.subr.bf16.mxu1 %v5500_v22  ;;  %v5586_v4 = vcombine.high %v1926_v59, %v1930_v60  ;;  %v5588_v5 = vcombine.high %v1927_v63, %v1931_v0  ;;  %v1918_v6 = vld [vmem:[#allocation2 + $0x300] sm:$0xff]  ;;  %v1919_v9 = vld [vmem:[#allocation2 + $0x308] sm:$0xff]  ;;  %v5585_v11 = vcombine.low %v1926_v59, %v1930_v60  ;;  %v1881_v53 = vld [vmem:[#allocation2 + $0x1d8] sm:$0xff] }
 0x21a   :  { %v1922_v8 = vld [vmem:[#allocation2 + $0x320] sm:$0xff]  ;;  %v1923_v10 = vld [vmem:[#allocation2 + $0x328] sm:$0xff]  ;;  %v5587_v12 = vcombine.low %v1927_v63, %v1931_v0  ;;  %v1872_v60 = vld [vmem:[#allocation2 + $0x190] sm:$0xff] }
 0x21b   :  { %v5578_v13 = vcombine.high %v1918_v6, %v1922_v8  ;;  %v5580_v14 = vcombine.high %v1919_v9, %v1923_v10  ;;  %v1910_v43 = vld [vmem:[#allocation2 + $0x2c0] sm:$0xff]  ;;  %v1911_v16 = vld [vmem:[#allocation2 + $0x2c8] sm:$0xff]  ;;  %v5577_v19 = vcombine.low %v1918_v6, %v1922_v8  ;;  %v5579_v20 = vcombine.low %v1919_v9, %v1923_v10  ;;  %v1876_v63 = vld [vmem:[#allocation2 + $0x1b0] sm:$0xff] }
 0x21c   :  { %2601 = vmatpush1.bf16.msra.mxu0 %v5497_v26  ;;  %2642 = vmatpush1.bf16.msra.mxu1 %v5499_v27  ;;  %v1914_v15 = vld [vmem:[#allocation2 + $0x2e0] sm:$0xff]  ;;  %v1915_v18 = vld [vmem:[#allocation2 + $0x2e8] sm:$0xff]  ;;  %v1873_v0 = vld [vmem:[#allocation2 + $0x198] sm:$0xff] }
 0x21d   :  { %2602 = vmatprep.subr.bf16.mxu0 %v5490_v28  ;;  %2643 = vmatprep.subr.bf16.mxu1 %v5492_v29  ;;  %v5570_v22 = vcombine.high %v1910_v43, %v1914_v15  ;;  %v5572_v39 = vcombine.high %v1911_v16, %v1915_v18  ;;  %v1902_v17 = vld [vmem:[#allocation2 + $0x280] sm:$0xff]  ;;  %v1903_v25 = vld [vmem:[#allocation2 + $0x288] sm:$0xff]  ;;  %v5569_v27 = vcombine.low %v1910_v43, %v1914_v15  ;;  %v1864_v8 = vld [vmem:[#allocation2 + $0x150] sm:$0xff] }
 0x21e   :  { %v1906_v24 = vld [vmem:[#allocation2 + $0x2a0] sm:$0xff]  ;;  %v1907_v26 = vld [vmem:[#allocation2 + $0x2a8] sm:$0xff]  ;;  %v5571_v28 = vcombine.low %v1911_v16, %v1915_v18  ;;  %v1868_v9 = vld [vmem:[#allocation2 + $0x170] sm:$0xff] }
 0x21f   :  { %v5562_v29 = vcombine.high %v1902_v17, %v1906_v24  ;;  %v5564_v31 = vcombine.high %v1903_v25, %v1907_v26  ;;  %v1894_v33 = vld [vmem:[#allocation2 + $0x240] sm:$0xff]  ;;  %v1895_v35 = vld [vmem:[#allocation2 + $0x248] sm:$0xff]  ;;  %v1865_v10 = vld [vmem:[#allocation2 + $0x158] sm:$0xff] }
 0x220   :  { %2603 = vmatpush1.bf16.msra.mxu0 %v5489_v36  ;;  %2644 = vmatpush1.bf16.msra.mxu1 %v5491_v37  ;;  %v1898_v34 = vld [vmem:[#allocation2 + $0x260] sm:$0xff]  ;;  %v1899_v36 = vld [vmem:[#allocation2 + $0x268] sm:$0xff]  ;;  %v5561_v37 = vcombine.low %v1902_v17, %v1906_v24  ;;  %v1856_v15 = vld [vmem:[#allocation2 + $0x110] sm:$0xff] }
 0x221   :  { %2604 = vmatprep.subr.bf16.mxu0 %v5482_v38  ;;  %2645 = vmatprep.subr.bf16.mxu1 %v5484_v40  ;;  %v5563_v38 = vcombine.low %v1903_v25, %v1907_v26  ;;  %v5554_v40 = vcombine.high %v1894_v33, %v1898_v34  ;;  %v5556_v41 = vcombine.high %v1895_v35, %v1899_v36  ;;  %v1886_v61 = vld [vmem:[#allocation2 + $0x200] sm:$0xff]  ;;  %v1887_v45 = vld [vmem:[#allocation2 + $0x208] sm:$0xff]  ;;  %v1860_v16 = vld [vmem:[#allocation2 + $0x130] sm:$0xff] }
 0x222   :  { %v1890_v44 = vld [vmem:[#allocation2 + $0x220] sm:$0xff]  ;;  %v1857_v18 = vld [vmem:[#allocation2 + $0x118] sm:$0xff]  ;;  %v1848_v24 = vld [vmem:[#allocation2 + $0xd0] sm:$0xff] }
 0x223   :  { %v1852_v25 = vld [vmem:[#allocation2 + $0xf0] sm:$0xff]  ;;  %v1849_v26 = vld [vmem:[#allocation2 + $0xd8] sm:$0xff] }
 0x224   :  { %2605 = vmatpush1.bf16.msra.mxu0 %v5481_v46  ;;  %2646 = vmatpush1.bf16.msra.mxu1 %v5483_v47  ;;  %v1891_v46 = vld [vmem:[#allocation2 + $0x228] sm:$0xff]  ;;  %v5553_v47 = vcombine.low %v1894_v33, %v1898_v34  ;;  %v1840_v33 = vld [vmem:[#allocation2 + $0x90] sm:$0xff] }
 0x225   :  { %2606 = vmatprep.subr.bf16.mxu0 %v5602_v48  ;;  %2647 = vmatprep.subr.bf16.mxu1 %v5604_v49  ;;  %v5555_v48 = vcombine.low %v1895_v35, %v1899_v36  ;;  %v5546_v49 = vcombine.high %v1886_v61, %v1890_v44  ;;  %v5548_v50 = vcombine.high %v1887_v45, %v1891_v46  ;;  %v1844_v34 = vld [vmem:[#allocation2 + $0xb0] sm:$0xff]  ;;  %v1841_v35 = vld [vmem:[#allocation2 + $0x98] sm:$0xff] }
 0x226   :  { %v1845_v36 = vld [vmem:[#allocation2 + $0xb8] sm:$0xff] }
 0x228   :  { %2607 = vmatpush2.bf16.msra.mxu0 %v5601_v54  ;;  %2648 = vmatpush2.bf16.msra.mxu1 %v5603_v55  ;;  %v1885_v54 = vld [vmem:[#allocation2 + $0x1f8] sm:$0xff]  ;;  %v5545_v55 = vcombine.low %v1886_v61, %v1890_v44  ;;  %v1832_v61 = vld [vmem:[#allocation2 + $0x50] sm:$0xff] }
 0x229   :  { %2608 = vmatprep.subr.bf16.mxu0 %v5594_v56  ;;  %2649 = vmatprep.subr.bf16.mxu1 %v5596_v58  ;;  %v5547_v56 = vcombine.low %v1887_v45, %v1891_v46  ;;  %v5542_v58 = vcombine.high %v1880_v51, %v1884_v52  ;;  %v5544_v59 = vcombine.high %v1881_v53, %v1885_v54  ;;  %v1836_v44 = vld [vmem:[#allocation2 + $0x70] sm:$0xff]  ;;  %v1833_v45 = vld [vmem:[#allocation2 + $0x58] sm:$0xff] }
 0x22a   :  { %v1837_v46 = vld [vmem:[#allocation2 + $0x78] sm:$0xff] }
 0x22c   :  { %2609 = vmatpush2.bf16.msra.mxu0 %v5593_v1  ;;  %2650 = vmatpush2.bf16.msra.mxu1 %v5595_v3  ;;  %v1877_v1 = vld [vmem:[#allocation2 + $0x1b8] sm:$0xff]  ;;  %v5541_v3 = vcombine.low %v1880_v51, %v1884_v52  ;;  %v1824_v51 = vld [vmem:[#allocation2 + $0x10] sm:$0xff] }
 0x22d   :  { %2610 = vmatprep.subr.bf16.mxu0 %v5586_v4  ;;  %2651 = vmatprep.subr.bf16.mxu1 %v5588_v5  ;;  %v5543_v4 = vcombine.low %v1881_v53, %v1885_v54  ;;  %v5534_v5 = vcombine.high %v1872_v60, %v1876_v63  ;;  %v5536_v6 = vcombine.high %v1873_v0, %v1877_v1  ;;  %v1828_v52 = vld [vmem:[#allocation2 + $0x30] sm:$0xff]  ;;  %v1825_v53 = vld [vmem:[#allocation2 + $0x18] sm:$0xff] }
 0x22e   :  { %v1829_v54 = vld [vmem:[#allocation2 + $0x38] sm:$0xff] }
 0x230   :  { %2611 = vmatpush2.bf16.msra.mxu0 %v5585_v11  ;;  %2652 = vmatpush2.bf16.msra.mxu1 %v5587_v12  ;;  %v1869_v11 = vld [vmem:[#allocation2 + $0x178] sm:$0xff]  ;;  %v5533_v12 = vcombine.low %v1872_v60, %v1876_v63  ;;  %v1944_v60 = vld [vmem:[#allocation2 + $0x3d0] sm:$0xff] }
 0x231   :  { %2612 = vmatprep.subr.bf16.mxu0 %v5578_v13  ;;  %2653 = vmatprep.subr.bf16.mxu1 %v5580_v14  ;;  %v5535_v13 = vcombine.low %v1873_v0, %v1877_v1  ;;  %v5526_v14 = vcombine.high %v1864_v8, %v1868_v9  ;;  %v5528_v43 = vcombine.high %v1865_v10, %v1869_v11  ;;  %v1948_v63 = vld [vmem:[#allocation2 + $0x3f0] sm:$0xff]  ;;  %v1945_v0 = vld [vmem:[#allocation2 + $0x3d8] sm:$0xff] }
 0x232   :  { %v1949_v1 = vld [vmem:[#allocation2 + $0x3f8] sm:$0xff] }
 0x234   :  { %2613 = vmatpush2.bf16.msra.mxu0 %v5577_v19  ;;  %2654 = vmatpush2.bf16.msra.mxu1 %v5579_v20  ;;  %v1861_v19 = vld [vmem:[#allocation2 + $0x138] sm:$0xff]  ;;  %v5525_v20 = vcombine.low %v1864_v8, %v1868_v9  ;;  %v1936_v8 = vld [vmem:[#allocation2 + $0x390] sm:$0xff] }
 0x235   :  { %2614 = vmatprep.subr.bf16.mxu0 %v5570_v22  ;;  %2655 = vmatprep.subr.bf16.mxu1 %v5572_v39  ;;  %v5527_v22 = vcombine.low %v1865_v10, %v1869_v11  ;;  %v5518_v39 = vcombine.high %v1856_v15, %v1860_v16  ;;  %v5520_v17 = vcombine.high %v1857_v18, %v1861_v19  ;;  %v1940_v9 = vld [vmem:[#allocation2 + $0x3b0] sm:$0xff]  ;;  %v1937_v10 = vld [vmem:[#allocation2 + $0x398] sm:$0xff] }
 0x236   :  { %v1941_v11 = vld [vmem:[#allocation2 + $0x3b8] sm:$0xff] }
 0x238   :  { %2615 = vmatpush2.bf16.msra.mxu0 %v5569_v27  ;;  %2656 = vmatpush2.bf16.msra.mxu1 %v5571_v28  ;;  %v1853_v27 = vld [vmem:[#allocation2 + $0xf8] sm:$0xff]  ;;  %v5517_v28 = vcombine.low %v1856_v15, %v1860_v16  ;;  %v1928_v15 = vld [vmem:[#allocation2 + $0x350] sm:$0xff] }
 0x239   :  { %2616 = vmatprep.subr.bf16.mxu0 %v5562_v29  ;;  %2657 = vmatprep.subr.bf16.mxu1 %v5564_v31  ;;  %v5519_v29 = vcombine.low %v1857_v18, %v1861_v19  ;;  %v5510_v31 = vcombine.high %v1848_v24, %v1852_v25  ;;  %v1932_v16 = vld [vmem:[#allocation2 + $0x370] sm:$0xff]  ;;  %v1929_v18 = vld [vmem:[#allocation2 + $0x358] sm:$0xff] }
 0x23a   :  { %v1933_v19 = vld [vmem:[#allocation2 + $0x378] sm:$0xff] }
 0x23c   :  { %2617 = vmatpush2.bf16.msra.mxu0 %v5561_v37  ;;  %2658 = vmatpush2.bf16.msra.mxu1 %v5563_v38  ;;  %v5509_v37 = vcombine.low %v1848_v24, %v1852_v25  ;;  %v5511_v38 = vcombine.low %v1849_v26, %v1853_v27  ;;  %v1920_v24 = vld [vmem:[#allocation2 + $0x310] sm:$0xff] }
 0x23d   :  { %2618 = vmatprep.subr.bf16.mxu0 %v5554_v40  ;;  %2659 = vmatprep.subr.bf16.mxu1 %v5556_v41  ;;  %v5502_v40 = vcombine.high %v1840_v33, %v1844_v34  ;;  %v5504_v41 = vcombine.high %v1841_v35, %v1845_v36  ;;  %v1924_v25 = vld [vmem:[#allocation2 + $0x330] sm:$0xff] }
 0x240   :  { %2619 = vmatpush2.bf16.msra.mxu0 %v5553_v47  ;;  %2660 = vmatpush2.bf16.msra.mxu1 %v5555_v48  ;;  %v5501_v47 = vcombine.low %v1840_v33, %v1844_v34  ;;  %v5503_v48 = vcombine.low %v1841_v35, %v1845_v36  ;;  %v1912_v33 = vld [vmem:[#allocation2 + $0x2d0] sm:$0xff]  ;;  %v1913_v35 = vld [vmem:[#allocation2 + $0x2d8] sm:$0xff] }
 0x241   :  { %2620 = vmatprep.subr.bf16.mxu0 %v5546_v49  ;;  %2661 = vmatprep.subr.bf16.mxu1 %v5548_v50  ;;  %v5494_v49 = vcombine.high %v1832_v61, %v1836_v44  ;;  %v5496_v50 = vcombine.high %v1833_v45, %v1837_v46  ;;  %v1916_v34 = vld [vmem:[#allocation2 + $0x2f0] sm:$0xff]  ;;  %v1917_v36 = vld [vmem:[#allocation2 + $0x2f8] sm:$0xff] }
 0x244   :  { %2621 = vmatpush2.bf16.msra.mxu0 %v5545_v55  ;;  %2662 = vmatpush2.bf16.msra.mxu1 %v5547_v56  ;;  %v5493_v55 = vcombine.low %v1832_v61, %v1836_v44  ;;  %v5495_v56 = vcombine.low %v1833_v45, %v1837_v46  ;;  %v1904_v61 = vld [vmem:[#allocation2 + $0x290] sm:$0xff]  ;;  %v1905_v45 = vld [vmem:[#allocation2 + $0x298] sm:$0xff] }
 0x245   :  { %2672 = vmatprep.subr.bf16.mxu0 %v5542_v58  ;;  %2713 = vmatprep.subr.bf16.mxu1 %v5544_v59  ;;  %v5486_v58 = vcombine.high %v1824_v51, %v1828_v52  ;;  %v5488_v59 = vcombine.high %v1825_v53, %v1829_v54  ;;  %v1908_v44 = vld [vmem:[#allocation2 + $0x2b0] sm:$0xff]  ;;  %v1909_v46 = vld [vmem:[#allocation2 + $0x2b8] sm:$0xff] }
 0x247   :  { %2623 = vmatmul.mubr.bf16.vlgmr.msra.gmra.mxu0 %v6755_v30  ;;  %2664 = vmatmul.mubr.bf16.vlgmr.msra.gmra.mxu1 %v6755_v30 }
 0x248   :  { %2673 = vmatpush1.bf16.msra.mxu0 %v5541_v3  ;;  %2714 = vmatpush1.bf16.msra.mxu1 %v5543_v4  ;;  %v5485_v3 = vcombine.low %v1824_v51, %v1828_v52  ;;  %v5487_v4 = vcombine.low %v1825_v53, %v1829_v54  ;;  %v1896_v51 = vld [vmem:[#allocation2 + $0x250] sm:$0xff]  ;;  %v1897_v53 = vld [vmem:[#allocation2 + $0x258] sm:$0xff] }
 0x249   :  { %2674 = vmatprep.subr.bf16.mxu0 %v5534_v5  ;;  %2715 = vmatprep.subr.bf16.mxu1 %v5536_v6  ;;  %v5606_v5 = vcombine.high %v1944_v60, %v1948_v63  ;;  %v5608_v6 = vcombine.high %v1945_v0, %v1949_v1  ;;  %v1900_v52 = vld [vmem:[#allocation2 + $0x270] sm:$0xff]  ;;  %v1901_v54 = vld [vmem:[#allocation2 + $0x278] sm:$0xff] }
 0x24a   :  { %2704 = vmatprep.mubr.bf16.mxu0 %v6757_v32  ;;  %2745 = vmatprep.mubr.bf16.mxu1 %v6757_v32  ;;  %v5512_v32 = vcombine.high %v1849_v26, %v1853_v27  ;;  %v1921_v26 = vld [vmem:[#allocation2 + $0x318] sm:$0xff] }
 0x24b   :  { %v1925_v27 = vld [vmem:[#allocation2 + $0x338] sm:$0xff] }
 0x24c   :  { %2675 = vmatpush1.bf16.msra.mxu0 %v5533_v12  ;;  %2716 = vmatpush1.bf16.msra.mxu1 %v5535_v13  ;;  %v5605_v12 = vcombine.low %v1944_v60, %v1948_v63  ;;  %v5607_v13 = vcombine.low %v1945_v0, %v1949_v1  ;;  %v1888_v60 = vld [vmem:[#allocation2 + $0x210] sm:$0xff]  ;;  %v1889_v0 = vld [vmem:[#allocation2 + $0x218] sm:$0xff] }
 0x24d   :  { %2676 = vmatprep.subr.bf16.mxu0 %v5526_v14  ;;  %2717 = vmatprep.subr.bf16.mxu1 %v5528_v43  ;;  %v5598_v14 = vcombine.high %v1936_v8, %v1940_v9  ;;  %v5600_v43 = vcombine.high %v1937_v10, %v1941_v11  ;;  %v1892_v63 = vld [vmem:[#allocation2 + $0x230] sm:$0xff]  ;;  %v1893_v1 = vld [vmem:[#allocation2 + $0x238] sm:$0xff] }
 0x250   :  { %2677 = vmatpush1.bf16.msra.mxu0 %v5525_v20  ;;  %2718 = vmatpush1.bf16.msra.mxu1 %v5527_v22  ;;  %v5597_v20 = vcombine.low %v1936_v8, %v1940_v9  ;;  %v5599_v22 = vcombine.low %v1937_v10, %v1941_v11  ;;  %v5549_v8 = vcombine.low %v1888_v60, %v1892_v63 }
 0x251   :  { %2678 = vmatprep.subr.bf16.mxu0 %v5518_v39  ;;  %2719 = vmatprep.subr.bf16.mxu1 %v5520_v17  ;;  %v5590_v39 = vcombine.high %v1928_v15, %v1932_v16  ;;  %v5592_v17 = vcombine.high %v1929_v18, %v1933_v19  ;;  %v5551_v9 = vcombine.low %v1889_v0, %v1893_v1 }
 0x254   :  { %2679 = vmatpush1.bf16.msra.mxu0 %v5517_v28  ;;  %2720 = vmatpush1.bf16.msra.mxu1 %v5519_v29  ;;  %v5589_v28 = vcombine.low %v1928_v15, %v1932_v16  ;;  %v5591_v29 = vcombine.low %v1929_v18, %v1933_v19  ;;  %v2768_v18 = vld [vmem:[#allocation13] ss:$4 sm:$0x3]  ;;  %v2771_v19 = vld [vmem:[#allocation13 + $0x1] ss:$4 sm:$0x3] }
 0x255   :  { %2680 = vmatprep.subr.bf16.mxu0 %v5510_v31  ;;  %2721 = vmatprep.subr.bf16.mxu1 %v5512_v32  ;;  %v5582_v31 = vcombine.high %v1920_v24, %v1924_v25  ;;  %v5584_v32 = vcombine.high %v1921_v26, %v1925_v27 }
 0x258   :  { %2681 = vmatpush1.bf16.msra.mxu0 %v5509_v37  ;;  %2722 = vmatpush1.bf16.msra.mxu1 %v5511_v38  ;;  %v5581_v37 = vcombine.low %v1920_v24, %v1924_v25  ;;  %v5583_v38 = vcombine.low %v1921_v26, %v1925_v27  ;;  %v2779_v25 = vld [vmem:[#allocation13 + $0x3] ss:$4 sm:$0x3] }
 0x259   :  { %2682 = vmatprep.subr.bf16.mxu0 %v5502_v40  ;;  %2723 = vmatprep.subr.bf16.mxu1 %v5504_v41  ;;  %v5574_v40 = vcombine.high %v1912_v33, %v1916_v34  ;;  %v5576_v41 = vcombine.high %v1913_v35, %v1917_v36  ;;  %v2780_v26 = vmul.f32 %v2779_v25, %v6738_v57 }
 0x25c   :  { %2683 = vmatpush1.bf16.msra.mxu0 %v5501_v47  ;;  %2724 = vmatpush1.bf16.msra.mxu1 %v5503_v48  ;;  %v5573_v47 = vcombine.low %v1912_v33, %v1916_v34  ;;  %v5575_v48 = vcombine.low %v1913_v35, %v1917_v36 }
 0x25d   :  { %2684 = vmatprep.subr.bf16.mxu0 %v5494_v49  ;;  %2725 = vmatprep.subr.bf16.mxu1 %v5496_v50  ;;  %v5566_v49 = vcombine.high %v1904_v61, %v1908_v44  ;;  %v5568_v50 = vcombine.high %v1905_v45, %v1909_v46 }
 0x260   :  { %2685 = vmatpush1.bf16.msra.mxu0 %v5493_v55  ;;  %2726 = vmatpush1.bf16.msra.mxu1 %v5495_v56  ;;  %v5565_v55 = vcombine.low %v1904_v61, %v1908_v44  ;;  %v5567_v56 = vcombine.low %v1905_v45, %v1909_v46 }
 0x261   :  { %2686 = vmatprep.subr.bf16.mxu0 %v5486_v58  ;;  %2727 = vmatprep.subr.bf16.mxu1 %v5488_v59  ;;  %v5558_v58 = vcombine.high %v1896_v51, %v1900_v52  ;;  %v5560_v59 = vcombine.high %v1897_v53, %v1901_v54 }
 0x264   :  { %2687 = vmatpush1.bf16.msra.mxu0 %v5485_v3  ;;  %2728 = vmatpush1.bf16.msra.mxu1 %v5487_v4  ;;  %v5557_v3 = vcombine.low %v1896_v51, %v1900_v52  ;;  %v5559_v4 = vcombine.low %v1897_v53, %v1901_v54 }
 0x265   :  { %2688 = vmatprep.subr.bf16.mxu0 %v5606_v5  ;;  %2729 = vmatprep.subr.bf16.mxu1 %v5608_v6  ;;  %v5550_v5 = vcombine.high %v1888_v60, %v1892_v63  ;;  %v5552_v6 = vcombine.high %v1889_v0, %v1893_v1 }
 0x268   :  { %2689 = vmatpush2.bf16.msra.mxu0 %v5605_v12  ;;  %2730 = vmatpush2.bf16.msra.mxu1 %v5607_v13 }
 0x269   :  { %2690 = vmatprep.subr.bf16.mxu0 %v5598_v14  ;;  %2731 = vmatprep.subr.bf16.mxu1 %v5600_v43 }
 0x26c   :  { %2691 = vmatpush2.bf16.msra.mxu0 %v5597_v20  ;;  %2732 = vmatpush2.bf16.msra.mxu1 %v5599_v22  ;;  %v2769_v20 = vmul.f32 %v2768_v18, %v6716_v21  ;;  %v2772_v22 = vmul.f32 %v2771_v19, %v6718_v23 }
 0x26d   :  { %2692 = vmatprep.subr.bf16.mxu0 %v5590_v39  ;;  %2733 = vmatprep.subr.bf16.mxu1 %v5592_v17  ;;  %v2775_v39 = vld [vmem:[#allocation13 + $0x2] ss:$4 sm:$0x3] }
 0x26e   :  { %v2773_v17 = vadd.f32 %v2772_v22, %v2769_v20  ;;  %v2776_v24 = vmul.f32 %v2775_v39, %v6732_v42 }
 0x270   :  { %2693 = vmatpush2.bf16.msra.mxu0 %v5589_v28  ;;  %2734 = vmatpush2.bf16.msra.mxu1 %v5591_v29 }
 0x271   :  { %2694 = vmatprep.subr.bf16.mxu0 %v5582_v31  ;;  %2735 = vmatprep.subr.bf16.mxu1 %v5584_v32 }
 0x274   :  { %2695 = vmatpush2.bf16.msra.mxu0 %v5581_v37  ;;  %2736 = vmatpush2.bf16.msra.mxu1 %v5583_v38 }
 0x275   :  { %2696 = vmatprep.subr.bf16.mxu0 %v5574_v40  ;;  %2737 = vmatprep.subr.bf16.mxu1 %v5576_v41 }
 0x278   :  { %2697 = vmatpush2.bf16.msra.mxu0 %v5573_v47  ;;  %2738 = vmatpush2.bf16.msra.mxu1 %v5575_v48 }
 0x279   :  { %2698 = vmatprep.subr.bf16.mxu0 %v5566_v49  ;;  %2739 = vmatprep.subr.bf16.mxu1 %v5568_v50 }
 0x27c   :  { %2699 = vmatpush2.bf16.msra.mxu0 %v5565_v55  ;;  %2740 = vmatpush2.bf16.msra.mxu1 %v5567_v56 }
 0x27d   :  { %2700 = vmatprep.subr.bf16.mxu0 %v5558_v58  ;;  %2741 = vmatprep.subr.bf16.mxu1 %v5560_v59 }
 0x280   :  { %2701 = vmatpush2.bf16.msra.mxu0 %v5557_v3  ;;  %2742 = vmatpush2.bf16.msra.mxu1 %v5559_v4 }
 0x281   :  { %2702 = vmatprep.subr.bf16.mxu0 %v5550_v5  ;;  %2743 = vmatprep.subr.bf16.mxu1 %v5552_v6 }
 0x284   :  { %2703 = vmatpush2.bf16.msra.mxu0 %v5549_v8  ;;  %2744 = vmatpush2.bf16.msra.mxu1 %v5551_v9 }
 0x287   :  { %2705 = vmatmul.mubr.bf16.vlgmr.msra.gmra.mxu0 %v6755_v30  ;;  %2746 = vmatmul.mubr.bf16.vlgmr.msra.gmra.mxu1 %v6755_v30  ;;  %v2777_v30 = vadd.f32 %v2776_v24, %v2773_v17 }
 0x289   :  { %v2781_v32 = vadd.f32 %v2780_v26, %v2777_v30 }
 0x28b   :  { %v2786_v61 = vrot.slane %v2781_v32, %v6744_v2  ;;  %v2790_v50 = vrot.slane %v2781_v32, %v6748_v7 }
 0x307   :  { %v2624_v10 = vpop.f32.mrf.mxu0  ;;  %v2665_v11 = vpop.f32.mrf.mxu1 }
 0x308   :  { %v2754_v27 = vmul.f32 %v2624_v10, %v6716_v21  ;;  %v2756_v28 = vmul.f32 %v2665_v11, %v6718_v23 }
 0x309   :  { %v2626_v12 = vpop.f32.mrf.mxu0  ;;  %v2667_v13 = vpop.f32.mrf.mxu1 }
 0x30a   :  { %v2755_v29 = vmul.f32 %v2626_v12, %v6716_v21  ;;  %v2757_v31 = vmul.f32 %v2667_v13, %v6718_v23  ;;  %v2758_v34 = vadd.f32 %v2756_v28, %v2754_v27 }
 0x30b   :  { %v2628_v14 = vpop.f32.mrf.mxu0  ;;  %v2669_v43 = vpop.f32.mrf.mxu1 }
 0x30c   :  { %v2759_v40 = vadd.f32 %v2757_v31, %v2755_v29 }
 0x30d   :  { %v2629_v15 = vpop.f32.mrf.mxu0  ;;  %v2670_v16 = vpop.f32.mrf.mxu1 }
 0x347   :  { %v2706_v33 = vpop.f32.mrf.mxu0  ;;  %v2747_v36 = vpop.f32.mrf.mxu1 }
 0x348   :  { %v2760_v35 = vmul.f32 %v2706_v33, %v6732_v42  ;;  %v2764_v37 = vmul.f32 %v2747_v36, %v6738_v57 }
 0x349   :  { %v2708_v38 = vpop.f32.mrf.mxu0  ;;  %v2749_v45 = vpop.f32.mrf.mxu1 }
 0x34a   :  { %v2762_v41 = vadd.f32 %v2760_v35, %v2758_v34  ;;  %v2761_v44 = vmul.f32 %v2708_v38, %v6732_v42  ;;  %v2765_v49 = vmul.f32 %v2749_v45, %v6738_v57 }
 0x34b   :  { %v2710_v46 = vpop.f32.mrf.mxu0  ;;  %v2751_v51 = vpop.f32.mrf.mxu1 }
 0x34c   :  { %v2766_v47 = vadd.f32 %v2764_v37, %v2762_v41  ;;  %v2763_v48 = vadd.f32 %v2761_v44, %v2759_v40 }
 0x34d   :  { %v2711_v52 = vpop.f32.mrf.mxu0  ;;  %v2752_v55 = vpop.f32.mrf.mxu1 }
 0x34e   :  { %v2793_v53 = vadd.f32 %v2786_v61, %v2766_v47  ;;  %v2767_v54 = vadd.f32 %v2765_v49, %v2763_v48 }
 0x350   :  { %v2797_v56 = vmul.f32 1.442695, %v2793_v53  ;;  %v2794_v58 = vadd.f32 %v2790_v50, %v2767_v54  ;;  %vm2795_vm3 = vcmp.gt.f32.partialorder %v2793_v53, 0.0 }
 0x352   :  { %5948 = vpow2.f32 %v2797_v56  ;;  %v2799_v59 = vmul.f32 1.442695, %v2794_v58  ;;  %vm2796_vm4 = vcmp.gt.f32.partialorder %v2794_v58, 0.0 }
 0x354   :  { %5950 = vpow2.f32 %v2799_v59 }
 0x35f   :  { %v5949_v60 = vpop.eup %5948 }
 0x360   :  { %v5609_v63 = vadd.f32 -1.0, %v5949_v60 }
 0x361   :  { %v5951_v0 = vpop.eup %5950 }
 0x362   :  { %v2803_v1 = vsel %vm2795_vm3, %v2793_v53, %v5609_v63  ;;  %v5610_v3 = vadd.f32 -1.0, %v5951_v0 }
 0x363   :  { %v6781_v4 = vpack.c.bf16 %v2803_v1, %v2803_v1 }
 0x364   :  { %v2804_v5 = vsel %vm2796_vm4, %v2794_v58, %v5610_v3 }
 0x365   :  { %v6783_v6 = vpack.c.bf16 %v2804_v5, %v2804_v5 }
 0x366   :  { %6610 = dma.done.wait [#allocation4 + $0x1], 40960 }
 0x367   :  { %6611 = vsyncadd [#allocation4 + $0x1], 4294926336  ;;  %4762 = vmatprep.mubr.bf16.mxu0 %v6783_v6  ;;  %4803 = vmatprep.mubr.bf16.mxu1 %v6783_v6  ;;  %v5952_v8 = vld [vmem:[#allocation3 + $0x464] ss:$80 sps:$4 sm:$0xff]   ;;  %v5954_v9 = vld [vmem:[#allocation3 + $0x46c] ss:$80 sps:$4 sm:$0xff]  }
 0x368   :  { %4730 = vmatprep.subr.bf16.mxu0 %v5952_v8  ;;  %v5956_v10 = vld [vmem:[#allocation3 + $0x460] ss:$80 sps:$4 sm:$0xff]   ;;  %v5957_v11 = vld [vmem:[#allocation3 + $0x468] ss:$80 sps:$4 sm:$0xff]   ;;  %4771 = vmatprep.subr.bf16.mxu1 %v5954_v9  ;;  %v5958_v12 = vld [vmem:[#allocation3 + $0x3c4] ss:$80 sps:$4 sm:$0xff]  }
 0x369   :  { %4731 = vmatpush1.bf16.msra.mxu0 %v5956_v10  ;;  %4772 = vmatpush1.bf16.msra.mxu1 %v5957_v11  ;;  %v5960_v13 = vld [vmem:[#allocation3 + $0x3cc] ss:$80 sps:$4 sm:$0xff]   ;;  %v5962_v14 = vld [vmem:[#allocation3 + $0x3c0] ss:$80 sps:$4 sm:$0xff]   ;;  %v5963_v43 = vld [vmem:[#allocation3 + $0x3c8] ss:$80 sps:$4 sm:$0xff]  }
 0x36a   :  { %4732 = vmatprep.subr.bf16.mxu0 %v5958_v12  ;;  %4773 = vmatprep.subr.bf16.mxu1 %v5960_v13  ;;  %v5964_v15 = vld [vmem:[#allocation3 + $0x324] ss:$80 sps:$4 sm:$0xff]   ;;  %v5966_v16 = vld [vmem:[#allocation3 + $0x32c] ss:$80 sps:$4 sm:$0xff]   ;;  %v5968_v18 = vld [vmem:[#allocation3 + $0x320] ss:$80 sps:$4 sm:$0xff]  }
 0x36b   :  { %v5969_v19 = vld [vmem:[#allocation3 + $0x328] ss:$80 sps:$4 sm:$0xff]   ;;  %v5970_v20 = vld [vmem:[#allocation3 + $0x284] ss:$80 sps:$4 sm:$0xff]   ;;  %v5972_v22 = vld [vmem:[#allocation3 + $0x28c] ss:$80 sps:$4 sm:$0xff]  }
 0x36c   :  { %v5974_v39 = vld [vmem:[#allocation3 + $0x280] ss:$80 sps:$4 sm:$0xff]   ;;  %v5975_v17 = vld [vmem:[#allocation3 + $0x288] ss:$80 sps:$4 sm:$0xff]   ;;  %v5976_v24 = vld [vmem:[#allocation3 + $0x1e4] ss:$80 sps:$4 sm:$0xff]  }
 0x36d   :  { %4733 = vmatpush1.bf16.msra.mxu0 %v5962_v14  ;;  %4774 = vmatpush1.bf16.msra.mxu1 %v5963_v43  ;;  %v5978_v25 = vld [vmem:[#allocation3 + $0x1ec] ss:$80 sps:$4 sm:$0xff]   ;;  %v5980_v30 = vld [vmem:[#allocation3 + $0x1e0] ss:$80 sps:$4 sm:$0xff]   ;;  %v5981_v26 = vld [vmem:[#allocation3 + $0x1e8] ss:$80 sps:$4 sm:$0xff]  }
 0x36e   :  { %4734 = vmatprep.subr.bf16.mxu0 %v5964_v15  ;;  %4775 = vmatprep.subr.bf16.mxu1 %v5966_v16  ;;  %v5982_v27 = vld [vmem:[#allocation3 + $0x144] ss:$80 sps:$4 sm:$0xff]   ;;  %v5984_v28 = vld [vmem:[#allocation3 + $0x14c] ss:$80 sps:$4 sm:$0xff]   ;;  %v5986_v29 = vld [vmem:[#allocation3 + $0x140] ss:$80 sps:$4 sm:$0xff]  }
 0x36f   :  { %v5987_v31 = vld [vmem:[#allocation3 + $0x148] ss:$80 sps:$4 sm:$0xff]   ;;  %v5988_v32 = vld [vmem:[#allocation3 + $0xa4] ss:$80 sps:$4 sm:$0xff]   ;;  %v5990_v33 = vld [vmem:[#allocation3 + $0xac] ss:$80 sps:$4 sm:$0xff]  }
 0x370   :  { %v5992_v34 = vld [vmem:[#allocation3 + $0xa0] ss:$80 sps:$4 sm:$0xff]   ;;  %v5993_v35 = vld [vmem:[#allocation3 + $0xa8] ss:$80 sps:$4 sm:$0xff]   ;;  %v5994_v36 = vld [vmem:[#allocation3 + $0x4] ss:$80 sps:$4 sm:$0xff]  }
 0x371   :  { %4735 = vmatpush1.bf16.msra.mxu0 %v5968_v18  ;;  %4776 = vmatpush1.bf16.msra.mxu1 %v5969_v19  ;;  %v5996_v37 = vld [vmem:[#allocation3 + $0xc] ss:$80 sps:$4 sm:$0xff]   ;;  %v5998_v38 = vld [vmem:[#allocation3] ss:$80 sps:$4 sm:$0xff]   ;;  %v5999_v40 = vld [vmem:[#allocation3 + $0x8] ss:$80 sps:$4 sm:$0xff]  }
 0x372   :  { %4736 = vmatprep.subr.bf16.mxu0 %v5970_v20  ;;  %4777 = vmatprep.subr.bf16.mxu1 %v5972_v22  ;;  %v6000_v41 = vld [vmem:[#allocation3 + $0x964] ss:$80 sps:$4 sm:$0xff]   ;;  %v6002_v61 = vld [vmem:[#allocation3 + $0x96c] ss:$80 sps:$4 sm:$0xff]   ;;  %v6004_v44 = vld [vmem:[#allocation3 + $0x960] ss:$80 sps:$4 sm:$0xff]  }
 0x373   :  { %v6005_v45 = vld [vmem:[#allocation3 + $0x968] ss:$80 sps:$4 sm:$0xff]   ;;  %v6006_v46 = vld [vmem:[#allocation3 + $0x8c4] ss:$80 sps:$4 sm:$0xff]   ;;  %v6008_v47 = vld [vmem:[#allocation3 + $0x8cc] ss:$80 sps:$4 sm:$0xff]  }
 0x374   :  { %v6010_v48 = vld [vmem:[#allocation3 + $0x8c0] ss:$80 sps:$4 sm:$0xff]   ;;  %v6011_v49 = vld [vmem:[#allocation3 + $0x8c8] ss:$80 sps:$4 sm:$0xff]   ;;  %v6012_v50 = vld [vmem:[#allocation3 + $0x824] ss:$80 sps:$4 sm:$0xff]  }
 0x375   :  { %4737 = vmatpush1.bf16.msra.mxu0 %v5974_v39  ;;  %4778 = vmatpush1.bf16.msra.mxu1 %v5975_v17  ;;  %v6014_v51 = vld [vmem:[#allocation3 + $0x82c] ss:$80 sps:$4 sm:$0xff]   ;;  %v6016_v52 = vld [vmem:[#allocation3 + $0x820] ss:$80 sps:$4 sm:$0xff]   ;;  %v6017_v53 = vld [vmem:[#allocation3 + $0x828] ss:$80 sps:$4 sm:$0xff]  }
 0x376   :  { %4738 = vmatprep.subr.bf16.mxu0 %v5976_v24  ;;  %4779 = vmatprep.subr.bf16.mxu1 %v5978_v25  ;;  %v6018_v54 = vld [vmem:[#allocation3 + $0x784] ss:$80 sps:$4 sm:$0xff]   ;;  %v6020_v55 = vld [vmem:[#allocation3 + $0x78c] ss:$80 sps:$4 sm:$0xff]   ;;  %v6022_v56 = vld [vmem:[#allocation3 + $0x780] ss:$80 sps:$4 sm:$0xff]  }
 0x377   :  { %v6023_v58 = vld [vmem:[#allocation3 + $0x788] ss:$80 sps:$4 sm:$0xff]   ;;  %v6024_v59 = vld [vmem:[#allocation3 + $0x6e4] ss:$80 sps:$4 sm:$0xff]   ;;  %v6026_v60 = vld [vmem:[#allocation3 + $0x6ec] ss:$80 sps:$4 sm:$0xff]  }
 0x378   :  { %v6028_v63 = vld [vmem:[#allocation3 + $0x6e0] ss:$80 sps:$4 sm:$0xff]   ;;  %v6029_v0 = vld [vmem:[#allocation3 + $0x6e8] ss:$80 sps:$4 sm:$0xff]   ;;  %v6030_v1 = vld [vmem:[#allocation3 + $0x644] ss:$80 sps:$4 sm:$0xff]  }
 0x379   :  { %4739 = vmatpush1.bf16.msra.mxu0 %v5980_v30  ;;  %4780 = vmatpush1.bf16.msra.mxu1 %v5981_v26  ;;  %v6032_v3 = vld [vmem:[#allocation3 + $0x64c] ss:$80 sps:$4 sm:$0xff]   ;;  %v6034_v5 = vld [vmem:[#allocation3 + $0x640] ss:$80 sps:$4 sm:$0xff]   ;;  %v6035_v8 = vld [vmem:[#allocation3 + $0x648] ss:$80 sps:$4 sm:$0xff]  }
 0x37a   :  { %4740 = vmatprep.subr.bf16.mxu0 %v5982_v27  ;;  %4781 = vmatprep.subr.bf16.mxu1 %v5984_v28  ;;  %v6036_v9 = vld [vmem:[#allocation3 + $0x5a4] ss:$80 sps:$4 sm:$0xff]   ;;  %v6038_v10 = vld [vmem:[#allocation3 + $0x5ac] ss:$80 sps:$4 sm:$0xff]   ;;  %v6040_v11 = vld [vmem:[#allocation3 + $0x5a0] ss:$80 sps:$4 sm:$0xff]  }
 0x37b   :  { %v6041_v12 = vld [vmem:[#allocation3 + $0x5a8] ss:$80 sps:$4 sm:$0xff]   ;;  %v6042_v13 = vld [vmem:[#allocation3 + $0x504] ss:$80 sps:$4 sm:$0xff]   ;;  %v6044_v14 = vld [vmem:[#allocation3 + $0x50c] ss:$80 sps:$4 sm:$0xff]  }
 0x37c   :  { %v6046_v43 = vld [vmem:[#allocation3 + $0x500] ss:$80 sps:$4 sm:$0xff]   ;;  %v6047_v15 = vld [vmem:[#allocation3 + $0x508] ss:$80 sps:$4 sm:$0xff]   ;;  %v6050_v16 = vld [vmem:[#allocation3 + $0x474] ss:$80 sps:$4 sm:$0xff]  }
 0x37d   :  { %4741 = vmatpush1.bf16.msra.mxu0 %v5986_v29  ;;  %4782 = vmatpush1.bf16.msra.mxu1 %v5987_v31  ;;  %v6053_v18 = vld [vmem:[#allocation3 + $0x47c] ss:$80 sps:$4 sm:$0xff]   ;;  %v6048_v19 = vld [vmem:[#allocation3 + $0x470] ss:$80 sps:$4 sm:$0xff]   ;;  %v6051_v20 = vld [vmem:[#allocation3 + $0x478] ss:$80 sps:$4 sm:$0xff]  }
 0x37e   :  { %4742 = vmatprep.subr.bf16.mxu0 %v5988_v32  ;;  %4783 = vmatprep.subr.bf16.mxu1 %v5990_v33  ;;  %v6056_v22 = vld [vmem:[#allocation3 + $0x3d4] ss:$80 sps:$4 sm:$0xff]   ;;  %v6059_v39 = vld [vmem:[#allocation3 + $0x3dc] ss:$80 sps:$4 sm:$0xff]   ;;  %v6054_v17 = vld [vmem:[#allocation3 + $0x3d0] ss:$80 sps:$4 sm:$0xff]  }
 0x37f   :  { %v6057_v24 = vld [vmem:[#allocation3 + $0x3d8] ss:$80 sps:$4 sm:$0xff]   ;;  %v6062_v25 = vld [vmem:[#allocation3 + $0x334] ss:$80 sps:$4 sm:$0xff]   ;;  %v6065_v30 = vld [vmem:[#allocation3 + $0x33c] ss:$80 sps:$4 sm:$0xff]  }
 0x380   :  { %v6060_v26 = vld [vmem:[#allocation3 + $0x330] ss:$80 sps:$4 sm:$0xff]   ;;  %v6063_v27 = vld [vmem:[#allocation3 + $0x338] ss:$80 sps:$4 sm:$0xff]   ;;  %v6068_v28 = vld [vmem:[#allocation3 + $0x294] ss:$80 sps:$4 sm:$0xff]  }
 0x381   :  { %4743 = vmatpush1.bf16.msra.mxu0 %v5992_v34  ;;  %4784 = vmatpush1.bf16.msra.mxu1 %v5993_v35  ;;  %v6071_v29 = vld [vmem:[#allocation3 + $0x29c] ss:$80 sps:$4 sm:$0xff]   ;;  %v6066_v31 = vld [vmem:[#allocation3 + $0x290] ss:$80 sps:$4 sm:$0xff]   ;;  %v6069_v32 = vld [vmem:[#allocation3 + $0x298] ss:$80 sps:$4 sm:$0xff]  }
 0x382   :  { %4744 = vmatprep.subr.bf16.mxu0 %v5994_v36  ;;  %4785 = vmatprep.subr.bf16.mxu1 %v5996_v37  ;;  %v6074_v33 = vld [vmem:[#allocation3 + $0x1f4] ss:$80 sps:$4 sm:$0xff]   ;;  %v6077_v34 = vld [vmem:[#allocation3 + $0x1fc] ss:$80 sps:$4 sm:$0xff]   ;;  %v6072_v35 = vld [vmem:[#allocation3 + $0x1f0] ss:$80 sps:$4 sm:$0xff]  }
 0x383   :  { %v6075_v36 = vld [vmem:[#allocation3 + $0x1f8] ss:$80 sps:$4 sm:$0xff]   ;;  %v6080_v37 = vld [vmem:[#allocation3 + $0x154] ss:$80 sps:$4 sm:$0xff]   ;;  %s6624_s7 = smov [#allocation16]  }
 0x384   :  { %s5231_s2 = sshll.u32 %s6624_s7, 4  ;;  %s5232_s2 = int_to_ptr.vmem [resolvable:$true] %s5231_s2 }
 0x385   :  { %4745 = vmatpush1.bf16.msra.mxu0 %v5998_v38  ;;  %4786 = vmatpush1.bf16.msra.mxu1 %v5999_v40  ;;  %v6083_v38 = vld [vmem:[#allocation3 + $0x15c] ss:$80 sps:$4 sm:$0xff]   ;;  %v6078_v40 = vld [vmem:[#allocation3 + $0x150] ss:$80 sps:$4 sm:$0xff]   ;;  %s6580_s20 = scalar_lea.vmem %s5232_s2, 640  ;;  %p6585_p8 = scmp.lt.s32.totalorder %s5232_s2, %s5232_s2 }
 0x386   :  { %4746 = vmatprep.subr.bf16.mxu0 %v6000_v41  ;;  %4787 = vmatprep.subr.bf16.mxu1 %v6002_v61  ;;  %v6081_v41 = vld [vmem:[#allocation3 + $0x158] ss:$80 sps:$4 sm:$0xff]   ;;  %v6086_v61 = vld [vmem:[#allocation3 + $0xb4] ss:$80 sps:$4 sm:$0xff]   ;;  %p6581_p7 = scmp.ne.s32.totalorder %s5232_s2, %s6580_s20  ;;  %p6586_p9 = scmp.lt.s32.totalorder %s6580_s20, %s6580_s20 }
 0x388   :  { %p6587_p10 = por %p6586_p9, %p6585_p8 }
 0x389   :  { %4747 = vmatpush2.bf16.msra.mxu0 %v6004_v44  ;;  %4788 = vmatpush2.bf16.msra.mxu1 %v6005_v45  ;;  %v6089_v44 = vld [vmem:[#allocation3 + $0xbc] ss:$80 sps:$4 sm:$0xff]   ;;  %v6084_v45 = vld [vmem:[#allocation3 + $0xb0] ss:$80 sps:$4 sm:$0xff]  }
 0x38a   :  { %4748 = vmatprep.subr.bf16.mxu0 %v6006_v46  ;;  %4789 = vmatprep.subr.bf16.mxu1 %v6008_v47  ;;  %v6087_v46 = vld [vmem:[#allocation3 + $0xb8] ss:$80 sps:$4 sm:$0xff]   ;;  %v6092_v47 = vld [vmem:[#allocation3 + $0x14] ss:$80 sps:$4 sm:$0xff]   ;;  %p6588_p11 = pnand %p6587_p10, %p6581_p7 }
 0x38d   :  { %4749 = vmatpush2.bf16.msra.mxu0 %v6010_v48  ;;  %4790 = vmatpush2.bf16.msra.mxu1 %v6011_v49  ;;  %v6095_v48 = vld [vmem:[#allocation3 + $0x1c] ss:$80 sps:$4 sm:$0xff]   ;;  %v6090_v49 = vld [vmem:[#allocation3 + $0x10] ss:$80 sps:$4 sm:$0xff]  }
 0x38e   :  { %4750 = vmatprep.subr.bf16.mxu0 %v6012_v50  ;;  %4791 = vmatprep.subr.bf16.mxu1 %v6014_v51  ;;  %v6093_v50 = vld [vmem:[#allocation3 + $0x18] ss:$80 sps:$4 sm:$0xff]   ;;  %v6098_v51 = vld [vmem:[#allocation3 + $0x974] ss:$80 sps:$4 sm:$0xff]  }
 0x391   :  { %4751 = vmatpush2.bf16.msra.mxu0 %v6016_v52  ;;  %4792 = vmatpush2.bf16.msra.mxu1 %v6017_v53  ;;  %v6101_v52 = vld [vmem:[#allocation3 + $0x97c] ss:$80 sps:$4 sm:$0xff]   ;;  %v6096_v53 = vld [vmem:[#allocation3 + $0x970] ss:$80 sps:$4 sm:$0xff]  }
 0x392   :  { %4752 = vmatprep.subr.bf16.mxu0 %v6018_v54  ;;  %4793 = vmatprep.subr.bf16.mxu1 %v6020_v55  ;;  %v6099_v54 = vld [vmem:[#allocation3 + $0x978] ss:$80 sps:$4 sm:$0xff]   ;;  %v6104_v55 = vld [vmem:[#allocation3 + $0x8d4] ss:$80 sps:$4 sm:$0xff]  }
 0x395   :  { %4753 = vmatpush2.bf16.msra.mxu0 %v6022_v56  ;;  %4794 = vmatpush2.bf16.msra.mxu1 %v6023_v58  ;;  %v6107_v56 = vld [vmem:[#allocation3 + $0x8dc] ss:$80 sps:$4 sm:$0xff]   ;;  %v6102_v58 = vld [vmem:[#allocation3 + $0x8d0] ss:$80 sps:$4 sm:$0xff]  }
 0x396   :  { %4754 = vmatprep.subr.bf16.mxu0 %v6024_v59  ;;  %4795 = vmatprep.subr.bf16.mxu1 %v6026_v60  ;;  %v6105_v59 = vld [vmem:[#allocation3 + $0x8d8] ss:$80 sps:$4 sm:$0xff]   ;;  %v6110_v60 = vld [vmem:[#allocation3 + $0x834] ss:$80 sps:$4 sm:$0xff]  }
 0x399   :  { %4755 = vmatpush2.bf16.msra.mxu0 %v6028_v63  ;;  %4796 = vmatpush2.bf16.msra.mxu1 %v6029_v0  ;;  %v6113_v63 = vld [vmem:[#allocation3 + $0x83c] ss:$80 sps:$4 sm:$0xff]   ;;  %v6108_v0 = vld [vmem:[#allocation3 + $0x830] ss:$80 sps:$4 sm:$0xff]  }
 0x39a   :  { %4756 = vmatprep.subr.bf16.mxu0 %v6030_v1  ;;  %4797 = vmatprep.subr.bf16.mxu1 %v6032_v3  ;;  %v6111_v1 = vld [vmem:[#allocation3 + $0x838] ss:$80 sps:$4 sm:$0xff]   ;;  %v6116_v3 = vld [vmem:[#allocation3 + $0x794] ss:$80 sps:$4 sm:$0xff]  }
 0x39d   :  { %4757 = vmatpush2.bf16.msra.mxu0 %v6034_v5  ;;  %4798 = vmatpush2.bf16.msra.mxu1 %v6035_v8  ;;  %v6119_v5 = vld [vmem:[#allocation3 + $0x79c] ss:$80 sps:$4 sm:$0xff]   ;;  %v6114_v8 = vld [vmem:[#allocation3 + $0x790] ss:$80 sps:$4 sm:$0xff]  }
 0x39e   :  { %4758 = vmatprep.subr.bf16.mxu0 %v6036_v9  ;;  %4799 = vmatprep.subr.bf16.mxu1 %v6038_v10  ;;  %v6117_v9 = vld [vmem:[#allocation3 + $0x798] ss:$80 sps:$4 sm:$0xff]   ;;  %v6122_v10 = vld [vmem:[#allocation3 + $0x6f4] ss:$80 sps:$4 sm:$0xff]  }
 0x3a1   :  { %4759 = vmatpush2.bf16.msra.mxu0 %v6040_v11  ;;  %4800 = vmatpush2.bf16.msra.mxu1 %v6041_v12  ;;  %v6125_v11 = vld [vmem:[#allocation3 + $0x6fc] ss:$80 sps:$4 sm:$0xff]   ;;  %v6120_v12 = vld [vmem:[#allocation3 + $0x6f0] ss:$80 sps:$4 sm:$0xff]  }
 0x3a2   :  { %4760 = vmatprep.subr.bf16.mxu0 %v6042_v13  ;;  %4801 = vmatprep.subr.bf16.mxu1 %v6044_v14  ;;  %v6123_v13 = vld [vmem:[#allocation3 + $0x6f8] ss:$80 sps:$4 sm:$0xff]   ;;  %v6128_v14 = vld [vmem:[#allocation3 + $0x654] ss:$80 sps:$4 sm:$0xff]  }
 0x3a5   :  { %4761 = vmatpush2.bf16.msra.mxu0 %v6046_v43  ;;  %4802 = vmatpush2.bf16.msra.mxu1 %v6047_v15  ;;  %v6131_v43 = vld [vmem:[#allocation3 + $0x65c] ss:$80 sps:$4 sm:$0xff]   ;;  %v6126_v15 = vld [vmem:[#allocation3 + $0x650] ss:$80 sps:$4 sm:$0xff]  }
 0x3a6   :  { %4812 = vmatprep.subr.bf16.mxu0 %v6050_v16  ;;  %4853 = vmatprep.subr.bf16.mxu1 %v6053_v18  ;;  %v6129_v16 = vld [vmem:[#allocation3 + $0x658] ss:$80 sps:$4 sm:$0xff]   ;;  %v6134_v18 = vld [vmem:[#allocation3 + $0x5b4] ss:$80 sps:$4 sm:$0xff]  }
 0x3a8   :  { %4763 = vmatmul.mubr.bf16.vlgmr.msra.gmra.mxu0 %v6781_v4  ;;  %4804 = vmatmul.mubr.bf16.vlgmr.msra.gmra.mxu1 %v6781_v4 }
 0x3a9   :  { %4813 = vmatpush1.bf16.msra.mxu0 %v6048_v19  ;;  %4854 = vmatpush1.bf16.msra.mxu1 %v6051_v20  ;;  %v6137_v19 = vld [vmem:[#allocation3 + $0x5bc] ss:$80 sps:$4 sm:$0xff]   ;;  %v6132_v20 = vld [vmem:[#allocation3 + $0x5b0] ss:$80 sps:$4 sm:$0xff]  }
 0x3aa   :  { %4814 = vmatprep.subr.bf16.mxu0 %v6056_v22  ;;  %4855 = vmatprep.subr.bf16.mxu1 %v6059_v39  ;;  %v6135_v22 = vld [vmem:[#allocation3 + $0x5b8] ss:$80 sps:$4 sm:$0xff]   ;;  %v6140_v39 = vld [vmem:[#allocation3 + $0x514] ss:$80 sps:$4 sm:$0xff]  }
 0x3ab   :  { %4844 = vmatprep.mubr.bf16.mxu0 %v6783_v6  ;;  %4885 = vmatprep.mubr.bf16.mxu1 %v6783_v6 }
 0x3ad   :  { %4815 = vmatpush1.bf16.msra.mxu0 %v6054_v17  ;;  %4856 = vmatpush1.bf16.msra.mxu1 %v6057_v24  ;;  %v6143_v17 = vld [vmem:[#allocation3 + $0x51c] ss:$80 sps:$4 sm:$0xff]   ;;  %v6138_v24 = vld [vmem:[#allocation3 + $0x510] ss:$80 sps:$4 sm:$0xff]  }
 0x3ae   :  { %4816 = vmatprep.subr.bf16.mxu0 %v6062_v25  ;;  %4857 = vmatprep.subr.bf16.mxu1 %v6065_v30  ;;  %v6141_v25 = vld [vmem:[#allocation3 + $0x518] ss:$80 sps:$4 sm:$0xff]   ;;  %v6146_v30 = vld [vmem:[#allocation3 + $0x484] ss:$80 sps:$4 sm:$0xff]  }
 0x3b1   :  { %4817 = vmatpush1.bf16.msra.mxu0 %v6060_v26  ;;  %4858 = vmatpush1.bf16.msra.mxu1 %v6063_v27  ;;  %v6149_v26 = vld [vmem:[#allocation3 + $0x48c] ss:$80 sps:$4 sm:$0xff]   ;;  %v6144_v27 = vld [vmem:[#allocation3 + $0x480] ss:$80 sps:$4 sm:$0xff]  }
 0x3b2   :  { %4818 = vmatprep.subr.bf16.mxu0 %v6068_v28  ;;  %4859 = vmatprep.subr.bf16.mxu1 %v6071_v29  ;;  %v6147_v28 = vld [vmem:[#allocation3 + $0x488] ss:$80 sps:$4 sm:$0xff]   ;;  %v6152_v29 = vld [vmem:[#allocation3 + $0x3e4] ss:$80 sps:$4 sm:$0xff]  }
 0x3b5   :  { %4819 = vmatpush1.bf16.msra.mxu0 %v6066_v31  ;;  %4860 = vmatpush1.bf16.msra.mxu1 %v6069_v32  ;;  %v6155_v31 = vld [vmem:[#allocation3 + $0x3ec] ss:$80 sps:$4 sm:$0xff]   ;;  %v6150_v32 = vld [vmem:[#allocation3 + $0x3e0] ss:$80 sps:$4 sm:$0xff]  }
 0x3b6   :  { %4820 = vmatprep.subr.bf16.mxu0 %v6074_v33  ;;  %4861 = vmatprep.subr.bf16.mxu1 %v6077_v34  ;;  %v6153_v33 = vld [vmem:[#allocation3 + $0x3e8] ss:$80 sps:$4 sm:$0xff]   ;;  %v6158_v34 = vld [vmem:[#allocation3 + $0x344] ss:$80 sps:$4 sm:$0xff]  }
 0x3b9   :  { %4821 = vmatpush1.bf16.msra.mxu0 %v6072_v35  ;;  %4862 = vmatpush1.bf16.msra.mxu1 %v6075_v36  ;;  %v6161_v35 = vld [vmem:[#allocation3 + $0x34c] ss:$80 sps:$4 sm:$0xff]   ;;  %v6156_v36 = vld [vmem:[#allocation3 + $0x340] ss:$80 sps:$4 sm:$0xff]  }
 0x3ba   :  { %4822 = vmatprep.subr.bf16.mxu0 %v6080_v37  ;;  %4863 = vmatprep.subr.bf16.mxu1 %v6083_v38  ;;  %v6159_v37 = vld [vmem:[#allocation3 + $0x348] ss:$80 sps:$4 sm:$0xff]   ;;  %v6164_v38 = vld [vmem:[#allocation3 + $0x2a4] ss:$80 sps:$4 sm:$0xff]  }
 0x3bd   :  { %4823 = vmatpush1.bf16.msra.mxu0 %v6078_v40  ;;  %4864 = vmatpush1.bf16.msra.mxu1 %v6081_v41  ;;  %v6167_v40 = vld [vmem:[#allocation3 + $0x2ac] ss:$80 sps:$4 sm:$0xff]   ;;  %v6162_v41 = vld [vmem:[#allocation3 + $0x2a0] ss:$80 sps:$4 sm:$0xff]  }
 0x3be   :  { %4824 = vmatprep.subr.bf16.mxu0 %v6086_v61  ;;  %4865 = vmatprep.subr.bf16.mxu1 %v6089_v44  ;;  %v6165_v61 = vld [vmem:[#allocation3 + $0x2a8] ss:$80 sps:$4 sm:$0xff]   ;;  %v6170_v44 = vld [vmem:[#allocation3 + $0x204] ss:$80 sps:$4 sm:$0xff]  }
 0x3c1   :  { %4825 = vmatpush1.bf16.msra.mxu0 %v6084_v45  ;;  %4866 = vmatpush1.bf16.msra.mxu1 %v6087_v46  ;;  %v6173_v45 = vld [vmem:[#allocation3 + $0x20c] ss:$80 sps:$4 sm:$0xff]   ;;  %v6168_v46 = vld [vmem:[#allocation3 + $0x200] ss:$80 sps:$4 sm:$0xff]  }
 0x3c2   :  { %4826 = vmatprep.subr.bf16.mxu0 %v6092_v47  ;;  %4867 = vmatprep.subr.bf16.mxu1 %v6095_v48  ;;  %v6171_v47 = vld [vmem:[#allocation3 + $0x208] ss:$80 sps:$4 sm:$0xff]   ;;  %v6176_v48 = vld [vmem:[#allocation3 + $0x164] ss:$80 sps:$4 sm:$0xff]  }
 0x3c5   :  { %4827 = vmatpush1.bf16.msra.mxu0 %v6090_v49  ;;  %4868 = vmatpush1.bf16.msra.mxu1 %v6093_v50  ;;  %v6179_v49 = vld [vmem:[#allocation3 + $0x16c] ss:$80 sps:$4 sm:$0xff]   ;;  %v6174_v50 = vld [vmem:[#allocation3 + $0x160] ss:$80 sps:$4 sm:$0xff]  }
 0x3c6   :  { %4828 = vmatprep.subr.bf16.mxu0 %v6098_v51  ;;  %4869 = vmatprep.subr.bf16.mxu1 %v6101_v52  ;;  %v6177_v51 = vld [vmem:[#allocation3 + $0x168] ss:$80 sps:$4 sm:$0xff]   ;;  %v6182_v52 = vld [vmem:[#allocation3 + $0xc4] ss:$80 sps:$4 sm:$0xff]  }
 0x3c9   :  { %4829 = vmatpush2.bf16.msra.mxu0 %v6096_v53  ;;  %4870 = vmatpush2.bf16.msra.mxu1 %v6099_v54  ;;  %v6185_v53 = vld [vmem:[#allocation3 + $0xcc] ss:$80 sps:$4 sm:$0xff]   ;;  %v6180_v54 = vld [vmem:[#allocation3 + $0xc0] ss:$80 sps:$4 sm:$0xff]  }
 0x3ca   :  { %4830 = vmatprep.subr.bf16.mxu0 %v6104_v55  ;;  %4871 = vmatprep.subr.bf16.mxu1 %v6107_v56  ;;  %v6183_v55 = vld [vmem:[#allocation3 + $0xc8] ss:$80 sps:$4 sm:$0xff]   ;;  %v6188_v56 = vld [vmem:[#allocation3 + $0x24] ss:$80 sps:$4 sm:$0xff]  }
 0x3cd   :  { %4831 = vmatpush2.bf16.msra.mxu0 %v6102_v58  ;;  %4872 = vmatpush2.bf16.msra.mxu1 %v6105_v59  ;;  %v6191_v58 = vld [vmem:[#allocation3 + $0x2c] ss:$80 sps:$4 sm:$0xff]   ;;  %v6186_v59 = vld [vmem:[#allocation3 + $0x20] ss:$80 sps:$4 sm:$0xff]  }
 0x3ce   :  { %4832 = vmatprep.subr.bf16.mxu0 %v6110_v60  ;;  %4873 = vmatprep.subr.bf16.mxu1 %v6113_v63  ;;  %v6189_v60 = vld [vmem:[#allocation3 + $0x28] ss:$80 sps:$4 sm:$0xff]   ;;  %v6194_v63 = vld [vmem:[#allocation3 + $0x984] ss:$80 sps:$4 sm:$0xff]  }
 0x3d1   :  { %4833 = vmatpush2.bf16.msra.mxu0 %v6108_v0  ;;  %4874 = vmatpush2.bf16.msra.mxu1 %v6111_v1  ;;  %v6197_v0 = vld [vmem:[#allocation3 + $0x98c] ss:$80 sps:$4 sm:$0xff]   ;;  %v6192_v1 = vld [vmem:[#allocation3 + $0x980] ss:$80 sps:$4 sm:$0xff]  }
 0x3d2   :  { %4834 = vmatprep.subr.bf16.mxu0 %v6116_v3  ;;  %4875 = vmatprep.subr.bf16.mxu1 %v6119_v5  ;;  %v6195_v3 = vld [vmem:[#allocation3 + $0x988] ss:$80 sps:$4 sm:$0xff]   ;;  %v6200_v5 = vld [vmem:[#allocation3 + $0x8e4] ss:$80 sps:$4 sm:$0xff]  }
 0x3d5   :  { %4835 = vmatpush2.bf16.msra.mxu0 %v6114_v8  ;;  %4876 = vmatpush2.bf16.msra.mxu1 %v6117_v9  ;;  %v6203_v8 = vld [vmem:[#allocation3 + $0x8ec] ss:$80 sps:$4 sm:$0xff]   ;;  %v6198_v9 = vld [vmem:[#allocation3 + $0x8e0] ss:$80 sps:$4 sm:$0xff]  }
 0x3d6   :  { %4836 = vmatprep.subr.bf16.mxu0 %v6122_v10  ;;  %4877 = vmatprep.subr.bf16.mxu1 %v6125_v11  ;;  %v6201_v10 = vld [vmem:[#allocation3 + $0x8e8] ss:$80 sps:$4 sm:$0xff]   ;;  %v6206_v11 = vld [vmem:[#allocation3 + $0x844] ss:$80 sps:$4 sm:$0xff]  }
 0x3d9   :  { %4837 = vmatpush2.bf16.msra.mxu0 %v6120_v12  ;;  %4878 = vmatpush2.bf16.msra.mxu1 %v6123_v13  ;;  %v6209_v12 = vld [vmem:[#allocation3 + $0x84c] ss:$80 sps:$4 sm:$0xff]   ;;  %v6204_v13 = vld [vmem:[#allocation3 + $0x840] ss:$80 sps:$4 sm:$0xff]  }
 0x3da   :  { %4838 = vmatprep.subr.bf16.mxu0 %v6128_v14  ;;  %4879 = vmatprep.subr.bf16.mxu1 %v6131_v43  ;;  %v6207_v14 = vld [vmem:[#allocation3 + $0x848] ss:$80 sps:$4 sm:$0xff]   ;;  %v6212_v43 = vld [vmem:[#allocation3 + $0x7a4] ss:$80 sps:$4 sm:$0xff]  }
 0x3dd   :  { %4839 = vmatpush2.bf16.msra.mxu0 %v6126_v15  ;;  %4880 = vmatpush2.bf16.msra.mxu1 %v6129_v16  ;;  %v6215_v15 = vld [vmem:[#allocation3 + $0x7ac] ss:$80 sps:$4 sm:$0xff]   ;;  %v6210_v16 = vld [vmem:[#allocation3 + $0x7a0] ss:$80 sps:$4 sm:$0xff]  }
 0x3de   :  { %4840 = vmatprep.subr.bf16.mxu0 %v6134_v18  ;;  %4881 = vmatprep.subr.bf16.mxu1 %v6137_v19  ;;  %v6213_v18 = vld [vmem:[#allocation3 + $0x7a8] ss:$80 sps:$4 sm:$0xff]   ;;  %v6218_v19 = vld [vmem:[#allocation3 + $0x704] ss:$80 sps:$4 sm:$0xff]  }
 0x3e1   :  { %4841 = vmatpush2.bf16.msra.mxu0 %v6132_v20  ;;  %4882 = vmatpush2.bf16.msra.mxu1 %v6135_v22  ;;  %v6221_v20 = vld [vmem:[#allocation3 + $0x70c] ss:$80 sps:$4 sm:$0xff]   ;;  %v6216_v22 = vld [vmem:[#allocation3 + $0x700] ss:$80 sps:$4 sm:$0xff]  }
 0x3e2   :  { %4842 = vmatprep.subr.bf16.mxu0 %v6140_v39  ;;  %4883 = vmatprep.subr.bf16.mxu1 %v6143_v17  ;;  %v6219_v39 = vld [vmem:[#allocation3 + $0x708] ss:$80 sps:$4 sm:$0xff]   ;;  %v6224_v17 = vld [vmem:[#allocation3 + $0x664] ss:$80 sps:$4 sm:$0xff]  }
 0x3e5   :  { %4843 = vmatpush2.bf16.msra.mxu0 %v6138_v24  ;;  %4884 = vmatpush2.bf16.msra.mxu1 %v6141_v25  ;;  %v6227_v24 = vld [vmem:[#allocation3 + $0x66c] ss:$80 sps:$4 sm:$0xff]   ;;  %v6222_v25 = vld [vmem:[#allocation3 + $0x660] ss:$80 sps:$4 sm:$0xff]  }
 0x3e6   :  { %4894 = vmatprep.subr.bf16.mxu0 %v6146_v30  ;;  %4935 = vmatprep.subr.bf16.mxu1 %v6149_v26  ;;  %v6225_v30 = vld [vmem:[#allocation3 + $0x668] ss:$80 sps:$4 sm:$0xff]   ;;  %v6230_v26 = vld [vmem:[#allocation3 + $0x5c4] ss:$80 sps:$4 sm:$0xff]  }
 0x3e8   :  { %4845 = vmatmul.mubr.bf16.vlgmr.msra.gmra.mxu0 %v6781_v4  ;;  %4886 = vmatmul.mubr.bf16.vlgmr.msra.gmra.mxu1 %v6781_v4 }
 0x3e9   :  { %4895 = vmatpush1.bf16.msra.mxu0 %v6144_v27  ;;  %4936 = vmatpush1.bf16.msra.mxu1 %v6147_v28  ;;  %v6233_v27 = vld [vmem:[#allocation3 + $0x5cc] ss:$80 sps:$4 sm:$0xff]   ;;  %v6228_v28 = vld [vmem:[#allocation3 + $0x5c0] ss:$80 sps:$4 sm:$0xff]  }
 0x3ea   :  { %4896 = vmatprep.subr.bf16.mxu0 %v6152_v29  ;;  %4937 = vmatprep.subr.bf16.mxu1 %v6155_v31  ;;  %v6231_v29 = vld [vmem:[#allocation3 + $0x5c8] ss:$80 sps:$4 sm:$0xff]   ;;  %v6236_v31 = vld [vmem:[#allocation3 + $0x524] ss:$80 sps:$4 sm:$0xff]  }
 0x3eb   :  { %4926 = vmatprep.mubr.bf16.mxu0 %v6783_v6  ;;  %4967 = vmatprep.mubr.bf16.mxu1 %v6783_v6 }
 0x3ed   :  { %4897 = vmatpush1.bf16.msra.mxu0 %v6150_v32  ;;  %4938 = vmatpush1.bf16.msra.mxu1 %v6153_v33  ;;  %v6239_v32 = vld [vmem:[#allocation3 + $0x52c] ss:$80 sps:$4 sm:$0xff]   ;;  %v6234_v33 = vld [vmem:[#allocation3 + $0x520] ss:$80 sps:$4 sm:$0xff]  }
 0x3ee   :  { %4898 = vmatprep.subr.bf16.mxu0 %v6158_v34  ;;  %4939 = vmatprep.subr.bf16.mxu1 %v6161_v35  ;;  %v6237_v34 = vld [vmem:[#allocation3 + $0x528] ss:$80 sps:$4 sm:$0xff]   ;;  %v6242_v35 = vld [vmem:[#allocation3 + $0x494] ss:$80 sps:$4 sm:$0xff]  }
 0x3f1   :  { %4899 = vmatpush1.bf16.msra.mxu0 %v6156_v36  ;;  %4940 = vmatpush1.bf16.msra.mxu1 %v6159_v37  ;;  %v6245_v36 = vld [vmem:[#allocation3 + $0x49c] ss:$80 sps:$4 sm:$0xff]   ;;  %v6240_v37 = vld [vmem:[#allocation3 + $0x490] ss:$80 sps:$4 sm:$0xff]  }
 0x3f2   :  { %4900 = vmatprep.subr.bf16.mxu0 %v6164_v38  ;;  %4941 = vmatprep.subr.bf16.mxu1 %v6167_v40  ;;  %v6243_v38 = vld [vmem:[#allocation3 + $0x498] ss:$80 sps:$4 sm:$0xff]   ;;  %v6248_v40 = vld [vmem:[#allocation3 + $0x3f4] ss:$80 sps:$4 sm:$0xff]  }
 0x3f5   :  { %4901 = vmatpush1.bf16.msra.mxu0 %v6162_v41  ;;  %4942 = vmatpush1.bf16.msra.mxu1 %v6165_v61  ;;  %v6251_v41 = vld [vmem:[#allocation3 + $0x3fc] ss:$80 sps:$4 sm:$0xff]   ;;  %v6246_v61 = vld [vmem:[#allocation3 + $0x3f0] ss:$80 sps:$4 sm:$0xff]  }
 0x3f6   :  { %4902 = vmatprep.subr.bf16.mxu0 %v6170_v44  ;;  %4943 = vmatprep.subr.bf16.mxu1 %v6173_v45  ;;  %v6249_v44 = vld [vmem:[#allocation3 + $0x3f8] ss:$80 sps:$4 sm:$0xff]   ;;  %v6254_v45 = vld [vmem:[#allocation3 + $0x354] ss:$80 sps:$4 sm:$0xff]  }
 0x3f9   :  { %4903 = vmatpush1.bf16.msra.mxu0 %v6168_v46  ;;  %4944 = vmatpush1.bf16.msra.mxu1 %v6171_v47  ;;  %v6257_v46 = vld [vmem:[#allocation3 + $0x35c] ss:$80 sps:$4 sm:$0xff]   ;;  %v6252_v47 = vld [vmem:[#allocation3 + $0x350] ss:$80 sps:$4 sm:$0xff]  }
 0x3fa   :  { %4904 = vmatprep.subr.bf16.mxu0 %v6176_v48  ;;  %4945 = vmatprep.subr.bf16.mxu1 %v6179_v49  ;;  %v6255_v48 = vld [vmem:[#allocation3 + $0x358] ss:$80 sps:$4 sm:$0xff]   ;;  %v6260_v49 = vld [vmem:[#allocation3 + $0x2b4] ss:$80 sps:$4 sm:$0xff]  }
 0x3fd   :  { %4905 = vmatpush1.bf16.msra.mxu0 %v6174_v50  ;;  %4946 = vmatpush1.bf16.msra.mxu1 %v6177_v51  ;;  %v6263_v50 = vld [vmem:[#allocation3 + $0x2bc] ss:$80 sps:$4 sm:$0xff]   ;;  %v6258_v51 = vld [vmem:[#allocation3 + $0x2b0] ss:$80 sps:$4 sm:$0xff]  }
 0x3fe   :  { %4906 = vmatprep.subr.bf16.mxu0 %v6182_v52  ;;  %4947 = vmatprep.subr.bf16.mxu1 %v6185_v53  ;;  %v6261_v52 = vld [vmem:[#allocation3 + $0x2b8] ss:$80 sps:$4 sm:$0xff]   ;;  %v6266_v53 = vld [vmem:[#allocation3 + $0x214] ss:$80 sps:$4 sm:$0xff]  }
 0x401   :  { %4907 = vmatpush1.bf16.msra.mxu0 %v6180_v54  ;;  %4948 = vmatpush1.bf16.msra.mxu1 %v6183_v55  ;;  %v6269_v54 = vld [vmem:[#allocation3 + $0x21c] ss:$80 sps:$4 sm:$0xff]   ;;  %v6264_v55 = vld [vmem:[#allocation3 + $0x210] ss:$80 sps:$4 sm:$0xff]  }
 0x402   :  { %4908 = vmatprep.subr.bf16.mxu0 %v6188_v56  ;;  %4949 = vmatprep.subr.bf16.mxu1 %v6191_v58  ;;  %v6267_v56 = vld [vmem:[#allocation3 + $0x218] ss:$80 sps:$4 sm:$0xff]   ;;  %v6272_v58 = vld [vmem:[#allocation3 + $0x174] ss:$80 sps:$4 sm:$0xff]  }
 0x405   :  { %4909 = vmatpush1.bf16.msra.mxu0 %v6186_v59  ;;  %4950 = vmatpush1.bf16.msra.mxu1 %v6189_v60  ;;  %v6275_v59 = vld [vmem:[#allocation3 + $0x17c] ss:$80 sps:$4 sm:$0xff]   ;;  %v6270_v60 = vld [vmem:[#allocation3 + $0x170] ss:$80 sps:$4 sm:$0xff]  }
 0x406   :  { %4910 = vmatprep.subr.bf16.mxu0 %v6194_v63  ;;  %4951 = vmatprep.subr.bf16.mxu1 %v6197_v0  ;;  %v6273_v63 = vld [vmem:[#allocation3 + $0x178] ss:$80 sps:$4 sm:$0xff]   ;;  %v6278_v0 = vld [vmem:[#allocation3 + $0xd4] ss:$80 sps:$4 sm:$0xff]  }
 0x409   :  { %4911 = vmatpush2.bf16.msra.mxu0 %v6192_v1  ;;  %4952 = vmatpush2.bf16.msra.mxu1 %v6195_v3  ;;  %v6281_v1 = vld [vmem:[#allocation3 + $0xdc] ss:$80 sps:$4 sm:$0xff]   ;;  %v6276_v3 = vld [vmem:[#allocation3 + $0xd0] ss:$80 sps:$4 sm:$0xff]  }
 0x40a   :  { %4912 = vmatprep.subr.bf16.mxu0 %v6200_v5  ;;  %4953 = vmatprep.subr.bf16.mxu1 %v6203_v8  ;;  %v6279_v5 = vld [vmem:[#allocation3 + $0xd8] ss:$80 sps:$4 sm:$0xff]   ;;  %v6284_v8 = vld [vmem:[#allocation3 + $0x34] ss:$80 sps:$4 sm:$0xff]  }
 0x40d   :  { %4913 = vmatpush2.bf16.msra.mxu0 %v6198_v9  ;;  %4954 = vmatpush2.bf16.msra.mxu1 %v6201_v10  ;;  %v6287_v9 = vld [vmem:[#allocation3 + $0x3c] ss:$80 sps:$4 sm:$0xff]   ;;  %v6282_v10 = vld [vmem:[#allocation3 + $0x30] ss:$80 sps:$4 sm:$0xff]  }
 0x40e   :  { %4914 = vmatprep.subr.bf16.mxu0 %v6206_v11  ;;  %4955 = vmatprep.subr.bf16.mxu1 %v6209_v12  ;;  %v6285_v11 = vld [vmem:[#allocation3 + $0x38] ss:$80 sps:$4 sm:$0xff]   ;;  %v6290_v12 = vld [vmem:[#allocation3 + $0x994] ss:$80 sps:$4 sm:$0xff]  }
 0x411   :  { %4915 = vmatpush2.bf16.msra.mxu0 %v6204_v13  ;;  %4956 = vmatpush2.bf16.msra.mxu1 %v6207_v14  ;;  %v6293_v13 = vld [vmem:[#allocation3 + $0x99c] ss:$80 sps:$4 sm:$0xff]   ;;  %v6288_v14 = vld [vmem:[#allocation3 + $0x990] ss:$80 sps:$4 sm:$0xff]  }
 0x412   :  { %4916 = vmatprep.subr.bf16.mxu0 %v6212_v43  ;;  %4957 = vmatprep.subr.bf16.mxu1 %v6215_v15  ;;  %v6291_v43 = vld [vmem:[#allocation3 + $0x998] ss:$80 sps:$4 sm:$0xff]   ;;  %v6296_v15 = vld [vmem:[#allocation3 + $0x8f4] ss:$80 sps:$4 sm:$0xff]  }
 0x415   :  { %4917 = vmatpush2.bf16.msra.mxu0 %v6210_v16  ;;  %4958 = vmatpush2.bf16.msra.mxu1 %v6213_v18  ;;  %v6299_v16 = vld [vmem:[#allocation3 + $0x8fc] ss:$80 sps:$4 sm:$0xff]   ;;  %v6294_v18 = vld [vmem:[#allocation3 + $0x8f0] ss:$80 sps:$4 sm:$0xff]  }
 0x416   :  { %4918 = vmatprep.subr.bf16.mxu0 %v6218_v19  ;;  %4959 = vmatprep.subr.bf16.mxu1 %v6221_v20  ;;  %v6297_v19 = vld [vmem:[#allocation3 + $0x8f8] ss:$80 sps:$4 sm:$0xff]   ;;  %v6302_v20 = vld [vmem:[#allocation3 + $0x854] ss:$80 sps:$4 sm:$0xff]  }
 0x419   :  { %4919 = vmatpush2.bf16.msra.mxu0 %v6216_v22  ;;  %4960 = vmatpush2.bf16.msra.mxu1 %v6219_v39  ;;  %v6305_v22 = vld [vmem:[#allocation3 + $0x85c] ss:$80 sps:$4 sm:$0xff]   ;;  %v6300_v39 = vld [vmem:[#allocation3 + $0x850] ss:$80 sps:$4 sm:$0xff]  }
 0x41a   :  { %4920 = vmatprep.subr.bf16.mxu0 %v6224_v17  ;;  %4961 = vmatprep.subr.bf16.mxu1 %v6227_v24  ;;  %v6303_v17 = vld [vmem:[#allocation3 + $0x858] ss:$80 sps:$4 sm:$0xff]   ;;  %v6308_v24 = vld [vmem:[#allocation3 + $0x7b4] ss:$80 sps:$4 sm:$0xff]  }
 0x41d   :  { %4921 = vmatpush2.bf16.msra.mxu0 %v6222_v25  ;;  %4962 = vmatpush2.bf16.msra.mxu1 %v6225_v30  ;;  %v6311_v25 = vld [vmem:[#allocation3 + $0x7bc] ss:$80 sps:$4 sm:$0xff]   ;;  %v6306_v30 = vld [vmem:[#allocation3 + $0x7b0] ss:$80 sps:$4 sm:$0xff]  }
 0x41e   :  { %4922 = vmatprep.subr.bf16.mxu0 %v6230_v26  ;;  %4963 = vmatprep.subr.bf16.mxu1 %v6233_v27  ;;  %v6309_v26 = vld [vmem:[#allocation3 + $0x7b8] ss:$80 sps:$4 sm:$0xff]   ;;  %v6314_v27 = vld [vmem:[#allocation3 + $0x714] ss:$80 sps:$4 sm:$0xff]  }
 0x421   :  { %4923 = vmatpush2.bf16.msra.mxu0 %v6228_v28  ;;  %4964 = vmatpush2.bf16.msra.mxu1 %v6231_v29  ;;  %v6317_v28 = vld [vmem:[#allocation3 + $0x71c] ss:$80 sps:$4 sm:$0xff]   ;;  %v6312_v29 = vld [vmem:[#allocation3 + $0x710] ss:$80 sps:$4 sm:$0xff]  }
 0x422   :  { %4924 = vmatprep.subr.bf16.mxu0 %v6236_v31  ;;  %4965 = vmatprep.subr.bf16.mxu1 %v6239_v32  ;;  %v6315_v31 = vld [vmem:[#allocation3 + $0x718] ss:$80 sps:$4 sm:$0xff]   ;;  %v6320_v32 = vld [vmem:[#allocation3 + $0x674] ss:$80 sps:$4 sm:$0xff]  }
 0x425   :  { %4925 = vmatpush2.bf16.msra.mxu0 %v6234_v33  ;;  %4966 = vmatpush2.bf16.msra.mxu1 %v6237_v34  ;;  %v6323_v33 = vld [vmem:[#allocation3 + $0x67c] ss:$80 sps:$4 sm:$0xff]   ;;  %v6318_v34 = vld [vmem:[#allocation3 + $0x670] ss:$80 sps:$4 sm:$0xff]  }
 0x426   :  { %4976 = vmatprep.subr.bf16.mxu0 %v6242_v35  ;;  %5017 = vmatprep.subr.bf16.mxu1 %v6245_v36  ;;  %v6321_v35 = vld [vmem:[#allocation3 + $0x678] ss:$80 sps:$4 sm:$0xff]   ;;  %v6326_v36 = vld [vmem:[#allocation3 + $0x5d4] ss:$80 sps:$4 sm:$0xff]  }
 0x428   :  { %4927 = vmatmul.mubr.bf16.vlgmr.msra.gmra.mxu0 %v6781_v4  ;;  %4968 = vmatmul.mubr.bf16.vlgmr.msra.gmra.mxu1 %v6781_v4 }
 0x429   :  { %4977 = vmatpush1.bf16.msra.mxu0 %v6240_v37  ;;  %5018 = vmatpush1.bf16.msra.mxu1 %v6243_v38  ;;  %v6329_v37 = vld [vmem:[#allocation3 + $0x5dc] ss:$80 sps:$4 sm:$0xff]   ;;  %v6324_v38 = vld [vmem:[#allocation3 + $0x5d0] ss:$80 sps:$4 sm:$0xff]  }
 0x42a   :  { %4978 = vmatprep.subr.bf16.mxu0 %v6248_v40  ;;  %5019 = vmatprep.subr.bf16.mxu1 %v6251_v41  ;;  %v6327_v40 = vld [vmem:[#allocation3 + $0x5d8] ss:$80 sps:$4 sm:$0xff]   ;;  %v6332_v41 = vld [vmem:[#allocation3 + $0x534] ss:$80 sps:$4 sm:$0xff]  }
 0x42b   :  { %5008 = vmatprep.mubr.bf16.mxu0 %v6783_v6  ;;  %5049 = vmatprep.mubr.bf16.mxu1 %v6783_v6 }
 0x42d   :  { %4979 = vmatpush1.bf16.msra.mxu0 %v6246_v61  ;;  %5020 = vmatpush1.bf16.msra.mxu1 %v6249_v44  ;;  %v6335_v61 = vld [vmem:[#allocation3 + $0x53c] ss:$80 sps:$4 sm:$0xff]   ;;  %v6330_v44 = vld [vmem:[#allocation3 + $0x530] ss:$80 sps:$4 sm:$0xff]  }
 0x42e   :  { %4980 = vmatprep.subr.bf16.mxu0 %v6254_v45  ;;  %5021 = vmatprep.subr.bf16.mxu1 %v6257_v46  ;;  %v6333_v45 = vld [vmem:[#allocation3 + $0x538] ss:$80 sps:$4 sm:$0xff]   ;;  %v6338_v46 = vld [vmem:[#allocation3 + $0x4a4] ss:$80 sps:$4 sm:$0xff]  }
 0x431   :  { %4981 = vmatpush1.bf16.msra.mxu0 %v6252_v47  ;;  %5022 = vmatpush1.bf16.msra.mxu1 %v6255_v48  ;;  %v6341_v47 = vld [vmem:[#allocation3 + $0x4ac] ss:$80 sps:$4 sm:$0xff]   ;;  %v6336_v48 = vld [vmem:[#allocation3 + $0x4a0] ss:$80 sps:$4 sm:$0xff]  }
 0x432   :  { %4982 = vmatprep.subr.bf16.mxu0 %v6260_v49  ;;  %5023 = vmatprep.subr.bf16.mxu1 %v6263_v50  ;;  %v6339_v49 = vld [vmem:[#allocation3 + $0x4a8] ss:$80 sps:$4 sm:$0xff]   ;;  %v6344_v50 = vld [vmem:[#allocation3 + $0x404] ss:$80 sps:$4 sm:$0xff]  }
 0x435   :  { %4983 = vmatpush1.bf16.msra.mxu0 %v6258_v51  ;;  %5024 = vmatpush1.bf16.msra.mxu1 %v6261_v52  ;;  %v6347_v51 = vld [vmem:[#allocation3 + $0x40c] ss:$80 sps:$4 sm:$0xff]  }
 0x436   :  { %4984 = vmatprep.subr.bf16.mxu0 %v6266_v53  ;;  %5025 = vmatprep.subr.bf16.mxu1 %v6269_v54  ;;  %v6342_v54 = vld [vmem:[#allocation3 + $0x400] ss:$80 sps:$4 sm:$0xff]  }
 0x439   :  { %4985 = vmatpush1.bf16.msra.mxu0 %v6264_v55  ;;  %5026 = vmatpush1.bf16.msra.mxu1 %v6267_v56  ;;  %v6345_v55 = vld [vmem:[#allocation3 + $0x408] ss:$80 sps:$4 sm:$0xff]  }
 0x43a   :  { %4986 = vmatprep.subr.bf16.mxu0 %v6272_v58  ;;  %5027 = vmatprep.subr.bf16.mxu1 %v6275_v59  ;;  %v6350_v59 = vld [vmem:[#allocation3 + $0x364] ss:$80 sps:$4 sm:$0xff]  }
 0x43d   :  { %4987 = vmatpush1.bf16.msra.mxu0 %v6270_v60  ;;  %5028 = vmatpush1.bf16.msra.mxu1 %v6273_v63  ;;  %v6353_v60 = vld [vmem:[#allocation3 + $0x36c] ss:$80 sps:$4 sm:$0xff]  }
 0x43e   :  { %4988 = vmatprep.subr.bf16.mxu0 %v6278_v0  ;;  %5029 = vmatprep.subr.bf16.mxu1 %v6281_v1  ;;  %v6348_v1 = vld [vmem:[#allocation3 + $0x360] ss:$80 sps:$4 sm:$0xff]  }
 0x441   :  { %4989 = vmatpush1.bf16.msra.mxu0 %v6276_v3  ;;  %5030 = vmatpush1.bf16.msra.mxu1 %v6279_v5  ;;  %v6351_v3 = vld [vmem:[#allocation3 + $0x368] ss:$80 sps:$4 sm:$0xff]  }
 0x442   :  { %4990 = vmatprep.subr.bf16.mxu0 %v6284_v8  ;;  %5031 = vmatprep.subr.bf16.mxu1 %v6287_v9  ;;  %v6356_v9 = vld [vmem:[#allocation3 + $0x2c4] ss:$80 sps:$4 sm:$0xff]  }
 0x445   :  { %4991 = vmatpush1.bf16.msra.mxu0 %v6282_v10  ;;  %5032 = vmatpush1.bf16.msra.mxu1 %v6285_v11  ;;  %v6359_v10 = vld [vmem:[#allocation3 + $0x2cc] ss:$80 sps:$4 sm:$0xff]   ;;  %v6354_v11 = vld [vmem:[#allocation3 + $0x2c0] ss:$80 sps:$4 sm:$0xff]  }
 0x446   :  { %4992 = vmatprep.subr.bf16.mxu0 %v6290_v12  ;;  %5033 = vmatprep.subr.bf16.mxu1 %v6293_v13  ;;  %v6357_v12 = vld [vmem:[#allocation3 + $0x2c8] ss:$80 sps:$4 sm:$0xff]   ;;  %v6362_v13 = vld [vmem:[#allocation3 + $0x224] ss:$80 sps:$4 sm:$0xff]  }
 0x449   :  { %4993 = vmatpush2.bf16.msra.mxu0 %v6288_v14  ;;  %5034 = vmatpush2.bf16.msra.mxu1 %v6291_v43  ;;  %v6360_v14 = vld [vmem:[#allocation3 + $0x220] ss:$80 sps:$4 sm:$0xff]   ;;  %v6363_v43 = vld [vmem:[#allocation3 + $0x228] ss:$80 sps:$4 sm:$0xff]  }
 0x44a   :  { %4994 = vmatprep.subr.bf16.mxu0 %v6296_v15  ;;  %5035 = vmatprep.subr.bf16.mxu1 %v6299_v16  ;;  %v6368_v15 = vld [vmem:[#allocation3 + $0x184] ss:$80 sps:$4 sm:$0xff]   ;;  %v6371_v16 = vld [vmem:[#allocation3 + $0x18c] ss:$80 sps:$4 sm:$0xff]  }
 0x44d   :  { %4995 = vmatpush2.bf16.msra.mxu0 %v6294_v18  ;;  %5036 = vmatpush2.bf16.msra.mxu1 %v6297_v19  ;;  %v6366_v18 = vld [vmem:[#allocation3 + $0x180] ss:$80 sps:$4 sm:$0xff]   ;;  %v6369_v19 = vld [vmem:[#allocation3 + $0x188] ss:$80 sps:$4 sm:$0xff]  }
 0x44e   :  { %4996 = vmatprep.subr.bf16.mxu0 %v6302_v20  ;;  %5037 = vmatprep.subr.bf16.mxu1 %v6305_v22  ;;  %v6374_v20 = vld [vmem:[#allocation3 + $0xe4] ss:$80 sps:$4 sm:$0xff]   ;;  %v6377_v22 = vld [vmem:[#allocation3 + $0xec] ss:$80 sps:$4 sm:$0xff]  }
 0x451   :  { %4997 = vmatpush2.bf16.msra.mxu0 %v6300_v39  ;;  %5038 = vmatpush2.bf16.msra.mxu1 %v6303_v17  ;;  %v6372_v39 = vld [vmem:[#allocation3 + $0xe0] ss:$80 sps:$4 sm:$0xff]   ;;  %v6375_v17 = vld [vmem:[#allocation3 + $0xe8] ss:$80 sps:$4 sm:$0xff]  }
 0x452   :  { %4998 = vmatprep.subr.bf16.mxu0 %v6308_v24  ;;  %5039 = vmatprep.subr.bf16.mxu1 %v6311_v25  ;;  %v6380_v24 = vld [vmem:[#allocation3 + $0x44] ss:$80 sps:$4 sm:$0xff]   ;;  %v6383_v25 = vld [vmem:[#allocation3 + $0x4c] ss:$80 sps:$4 sm:$0xff]  }
 0x455   :  { %4999 = vmatpush2.bf16.msra.mxu0 %v6306_v30  ;;  %5040 = vmatpush2.bf16.msra.mxu1 %v6309_v26  ;;  %v6378_v30 = vld [vmem:[#allocation3 + $0x40] ss:$80 sps:$4 sm:$0xff]   ;;  %v6381_v26 = vld [vmem:[#allocation3 + $0x48] ss:$80 sps:$4 sm:$0xff]  }
 0x456   :  { %5000 = vmatprep.subr.bf16.mxu0 %v6314_v27  ;;  %5041 = vmatprep.subr.bf16.mxu1 %v6317_v28  ;;  %v6386_v27 = vld [vmem:[#allocation3 + $0x9a4] ss:$80 sps:$4 sm:$0xff]   ;;  %v6389_v28 = vld [vmem:[#allocation3 + $0x9ac] ss:$80 sps:$4 sm:$0xff]  }
 0x459   :  { %5001 = vmatpush2.bf16.msra.mxu0 %v6312_v29  ;;  %5042 = vmatpush2.bf16.msra.mxu1 %v6315_v31  ;;  %v6384_v29 = vld [vmem:[#allocation3 + $0x9a0] ss:$80 sps:$4 sm:$0xff]   ;;  %v6387_v31 = vld [vmem:[#allocation3 + $0x9a8] ss:$80 sps:$4 sm:$0xff]  }
 0x45a   :  { %5002 = vmatprep.subr.bf16.mxu0 %v6320_v32  ;;  %5043 = vmatprep.subr.bf16.mxu1 %v6323_v33  ;;  %v6392_v32 = vld [vmem:[#allocation3 + $0x904] ss:$80 sps:$4 sm:$0xff]   ;;  %v6395_v33 = vld [vmem:[#allocation3 + $0x90c] ss:$80 sps:$4 sm:$0xff]  }
 0x45d   :  { %5003 = vmatpush2.bf16.msra.mxu0 %v6318_v34  ;;  %5044 = vmatpush2.bf16.msra.mxu1 %v6321_v35  ;;  %v6390_v34 = vld [vmem:[#allocation3 + $0x900] ss:$80 sps:$4 sm:$0xff]   ;;  %v6393_v35 = vld [vmem:[#allocation3 + $0x908] ss:$80 sps:$4 sm:$0xff]  }
 0x45e   :  { %5004 = vmatprep.subr.bf16.mxu0 %v6326_v36  ;;  %5045 = vmatprep.subr.bf16.mxu1 %v6329_v37  ;;  %v6398_v36 = vld [vmem:[#allocation3 + $0x864] ss:$80 sps:$4 sm:$0xff]   ;;  %v6401_v37 = vld [vmem:[#allocation3 + $0x86c] ss:$80 sps:$4 sm:$0xff]  }
 0x461   :  { %5005 = vmatpush2.bf16.msra.mxu0 %v6324_v38  ;;  %5046 = vmatpush2.bf16.msra.mxu1 %v6327_v40  ;;  %v6396_v38 = vld [vmem:[#allocation3 + $0x860] ss:$80 sps:$4 sm:$0xff]   ;;  %v6399_v40 = vld [vmem:[#allocation3 + $0x868] ss:$80 sps:$4 sm:$0xff]  }
 0x462   :  { %5006 = vmatprep.subr.bf16.mxu0 %v6332_v41  ;;  %5047 = vmatprep.subr.bf16.mxu1 %v6335_v61  ;;  %v6404_v41 = vld [vmem:[#allocation3 + $0x7c4] ss:$80 sps:$4 sm:$0xff]   ;;  %v6407_v61 = vld [vmem:[#allocation3 + $0x7cc] ss:$80 sps:$4 sm:$0xff]  }
 0x465   :  { %5007 = vmatpush2.bf16.msra.mxu0 %v6330_v44  ;;  %5048 = vmatpush2.bf16.msra.mxu1 %v6333_v45  ;;  %v6402_v44 = vld [vmem:[#allocation3 + $0x7c0] ss:$80 sps:$4 sm:$0xff]   ;;  %v6405_v45 = vld [vmem:[#allocation3 + $0x7c8] ss:$80 sps:$4 sm:$0xff]  }
 0x466   :  { %5058 = vmatprep.subr.bf16.mxu0 %v6338_v46  ;;  %5099 = vmatprep.subr.bf16.mxu1 %v6341_v47  ;;  %v6410_v46 = vld [vmem:[#allocation3 + $0x724] ss:$80 sps:$4 sm:$0xff]   ;;  %v6413_v47 = vld [vmem:[#allocation3 + $0x72c] ss:$80 sps:$4 sm:$0xff]  }
 0x468   :  { %v6799_v52 = vpop.f32.mrf.mxu0  ;;  %v6801_v53 = vpop.f32.mrf.mxu1  ;;  %5009 = vmatmul.mubr.bf16.vlgmr.msra.gmra.mxu0 %v6781_v4  ;;  %5050 = vmatmul.mubr.bf16.vlgmr.msra.gmra.mxu1 %v6781_v4 }
 0x469   :  { %5059 = vmatpush1.bf16.msra.mxu0 %v6336_v48  ;;  %5100 = vmatpush1.bf16.msra.mxu1 %v6339_v49  ;;  %v6408_v48 = vld [vmem:[#allocation3 + $0x720] ss:$80 sps:$4 sm:$0xff]   ;;  %v6411_v49 = vld [vmem:[#allocation3 + $0x728] ss:$80 sps:$4 sm:$0xff]  }
 0x46a   :  { %v6805_v56 = vpop.f32.mrf.mxu0  ;;  %v6807_v58 = vpop.f32.mrf.mxu1  ;;  %5060 = vmatprep.subr.bf16.mxu0 %v6344_v50  ;;  %5101 = vmatprep.subr.bf16.mxu1 %v6347_v51  ;;  %v6416_v50 = vld [vmem:[#allocation3 + $0x684] ss:$80 sps:$4 sm:$0xff]   ;;  %v6419_v51 = vld [vmem:[#allocation3 + $0x68c] ss:$80 sps:$4 sm:$0xff]  }
 0x46b   :  { %5090 = vmatprep.mubr.bf16.mxu0 %v6783_v6  ;;  %5131 = vmatprep.mubr.bf16.mxu1 %v6783_v6  ;;  %v6365_v6 = vld [vmem:[#allocation3 + $0x22c] ss:$80 sps:$4 sm:$0xff]  }
 0x46c   :  { %v4768_v63 = vpop.f32.mrf.mxu0  ;;  %v4809_v0 = vpop.f32.mrf.mxu1 }
 0x46d   :  { %5061 = vmatpush1.bf16.msra.mxu0 %v6342_v54  ;;  %5102 = vmatpush1.bf16.msra.mxu1 %v6345_v55  ;;  %v6414_v54 = vld [vmem:[#allocation3 + $0x680] ss:$80 sps:$4 sm:$0xff]   ;;  %v6417_v55 = vld [vmem:[#allocation3 + $0x688] ss:$80 sps:$4 sm:$0xff]  }
 0x46e   :  { %v4769_v5 = vpop.f32.mrf.mxu0  ;;  %v4810_v8 = vpop.f32.mrf.mxu1  ;;  %5062 = vmatprep.subr.bf16.mxu0 %v6350_v59  ;;  %5103 = vmatprep.subr.bf16.mxu1 %v6353_v60  ;;  %v6422_v59 = vld [vmem:[#allocation3 + $0x5e4] ss:$80 sps:$4 sm:$0xff]   ;;  %v6425_v60 = vld [vmem:[#allocation3 + $0x5ec] ss:$80 sps:$4 sm:$0xff]   ;;  %v6420_v63 = vld [vmem:[#allocation3 + $0x5e0] ss:$80 sps:$4 sm:$0xff]  }
 0x46f   :  { %v6423_v0 = vld [vmem:[#allocation3 + $0x5e8] ss:$80 sps:$4 sm:$0xff]   ;;  %v6426_v5 = vld [vmem:[#allocation3 + $0x540] ss:$80 sps:$4 sm:$0xff]  }
 0x470   :  { %v6429_v8 = vld [vmem:[#allocation3 + $0x548] ss:$80 sps:$4 sm:$0xff]  }
 0x471   :  { %5063 = vmatpush1.bf16.msra.mxu0 %v6348_v1  ;;  %5104 = vmatpush1.bf16.msra.mxu1 %v6351_v3  ;;  %v6428_v1 = vld [vmem:[#allocation3 + $0x544] ss:$80 sps:$4 sm:$0xff]   ;;  %v6431_v3 = vld [vmem:[#allocation3 + $0x54c] ss:$80 sps:$4 sm:$0xff]  }
 0x472   :  { %5064 = vmatprep.subr.bf16.mxu0 %v6356_v9  ;;  %5105 = vmatprep.subr.bf16.mxu1 %v6359_v10 }
 0x475   :  { %5065 = vmatpush1.bf16.msra.mxu0 %v6354_v11  ;;  %5106 = vmatpush1.bf16.msra.mxu1 %v6357_v12  ;;  %v5141_v11 = vmul.f32 %v6805_v56, %v6716_v21 }
 0x476   :  { %5066 = vmatprep.subr.bf16.mxu0 %v6362_v13  ;;  %5107 = vmatprep.subr.bf16.mxu1 %v6365_v6  ;;  %v5140_v13 = vmul.f32 %v6799_v52, %v6716_v21  ;;  %v5143_v52 = vmul.f32 %v6807_v58, %v6716_v21 }
 0x479   :  { %5067 = vmatpush1.bf16.msra.mxu0 %v6360_v14  ;;  %5108 = vmatpush1.bf16.msra.mxu1 %v6363_v43  ;;  %v5142_v43 = vmul.f32 %v6801_v53, %v6716_v21 }
 0x47a   :  { %5068 = vmatprep.subr.bf16.mxu0 %v6368_v15  ;;  %5109 = vmatprep.subr.bf16.mxu1 %v6371_v16 }
 0x47d   :  { %5069 = vmatpush1.bf16.msra.mxu0 %v6366_v18  ;;  %5110 = vmatpush1.bf16.msra.mxu1 %v6369_v19 }
 0x47e   :  { %5070 = vmatprep.subr.bf16.mxu0 %v6374_v20  ;;  %5111 = vmatprep.subr.bf16.mxu1 %v6377_v22 }
 0x481   :  { %5071 = vmatpush1.bf16.msra.mxu0 %v6372_v39  ;;  %5112 = vmatpush1.bf16.msra.mxu1 %v6375_v17 }
 0x482   :  { %5072 = vmatprep.subr.bf16.mxu0 %v6380_v24  ;;  %5113 = vmatprep.subr.bf16.mxu1 %v6383_v25 }
 0x485   :  { %5073 = vmatpush1.bf16.msra.mxu0 %v6378_v30  ;;  %5114 = vmatpush1.bf16.msra.mxu1 %v6381_v26 }
 0x486   :  { %5074 = vmatprep.subr.bf16.mxu0 %v6386_v27  ;;  %5115 = vmatprep.subr.bf16.mxu1 %v6389_v28 }
 0x489   :  { %5075 = vmatpush2.bf16.msra.mxu0 %v6384_v29  ;;  %5116 = vmatpush2.bf16.msra.mxu1 %v6387_v31 }
 0x48a   :  { %5076 = vmatprep.subr.bf16.mxu0 %v6392_v32  ;;  %5117 = vmatprep.subr.bf16.mxu1 %v6395_v33 }
 0x48d   :  { %5077 = vmatpush2.bf16.msra.mxu0 %v6390_v34  ;;  %5118 = vmatpush2.bf16.msra.mxu1 %v6393_v35 }
 0x48e   :  { %5078 = vmatprep.subr.bf16.mxu0 %v6398_v36  ;;  %5119 = vmatprep.subr.bf16.mxu1 %v6401_v37 }
 0x491   :  { %5079 = vmatpush2.bf16.msra.mxu0 %v6396_v38  ;;  %5120 = vmatpush2.bf16.msra.mxu1 %v6399_v40  ;;  %v5175_v38 = vld [vmem:[#allocation15] ss:$4 sm:$0x1f]  ;;  %v5178_v40 = vld [vmem:[#allocation15 + $0x1] ss:$4 sm:$0x1f] }
 0x492   :  { %5080 = vmatprep.subr.bf16.mxu0 %v6404_v41  ;;  %5121 = vmatprep.subr.bf16.mxu1 %v6407_v61  ;;  %v5176_v41 = vmul.f32 %v5175_v38, %v6716_v21  ;;  %v5179_v61 = vmul.f32 %v5178_v40, %v6718_v23 }
 0x495   :  { %5081 = vmatpush2.bf16.msra.mxu0 %v6402_v44  ;;  %5122 = vmatpush2.bf16.msra.mxu1 %v6405_v45  ;;  %v5182_v44 = vld [vmem:[#allocation15 + $0x2] ss:$4 sm:$0x1f]  ;;  %v5180_v45 = vadd.f32 %v5179_v61, %v5176_v41 }
 0x496   :  { %5082 = vmatprep.subr.bf16.mxu0 %v6410_v46  ;;  %5123 = vmatprep.subr.bf16.mxu1 %v6413_v47  ;;  %v5183_v46 = vmul.f32 %v5182_v44, %v6732_v42  ;;  %v5186_v47 = vld [vmem:[#allocation15 + $0x3] ss:$4 sm:$0x1f] }
 0x499   :  { %5083 = vmatpush2.bf16.msra.mxu0 %v6408_v48  ;;  %5124 = vmatpush2.bf16.msra.mxu1 %v6411_v49  ;;  %v5184_v48 = vadd.f32 %v5183_v46, %v5180_v45  ;;  %v5187_v49 = vmul.f32 %v5186_v47, %v6738_v57 }
 0x49a   :  { %5084 = vmatprep.subr.bf16.mxu0 %v6416_v50  ;;  %5125 = vmatprep.subr.bf16.mxu1 %v6419_v51 }
 0x49b   :  { %v5188_v50 = vadd.f32 %v5187_v49, %v5184_v48 }
 0x49d   :  { %5085 = vmatpush2.bf16.msra.mxu0 %v6414_v54  ;;  %5126 = vmatpush2.bf16.msra.mxu1 %v6417_v55 }
 0x49e   :  { %5086 = vmatprep.subr.bf16.mxu0 %v6422_v59  ;;  %5127 = vmatprep.subr.bf16.mxu1 %v6425_v60 }
 0x4a1   :  { %5087 = vmatpush2.bf16.msra.mxu0 %v6420_v63  ;;  %5128 = vmatpush2.bf16.msra.mxu1 %v6423_v0 }
 0x4a2   :  { %5088 = vmatprep.subr.bf16.mxu0 %v6428_v1  ;;  %5129 = vmatprep.subr.bf16.mxu1 %v6431_v3  ;;  %v5193_v1 = vrot.slane %v5188_v50, %v6744_v2 }
 0x4a5   :  { %5089 = vmatpush2.bf16.msra.mxu0 %v6426_v5  ;;  %5130 = vmatpush2.bf16.msra.mxu1 %v6429_v8 }
 0x4a8   :  { %v4846_v9 = vpop.f32.mrf.mxu0  ;;  %v4887_v10 = vpop.f32.mrf.mxu1  ;;  %5091 = vmatmul.mubr.bf16.vlgmr.msra.gmra.mxu0 %v6781_v4  ;;  %5132 = vmatmul.mubr.bf16.vlgmr.msra.gmra.mxu1 %v6781_v4 }
 0x4a9   :  { %v5146_v12 = vmul.f32 %v4887_v10, %v6718_v23  ;;  %v5144_v30 = vmul.f32 %v4846_v9, %v6716_v21 }
 0x4aa   :  { %v4848_v6 = vpop.f32.mrf.mxu0  ;;  %v4889_v14 = vpop.f32.mrf.mxu1 }
 0x4ab   :  { %v5151_v15 = vadd.f32 %v5146_v12, %v5141_v11  ;;  %v5145_v16 = vmul.f32 %v4848_v6, %v6718_v23  ;;  %v5147_v18 = vmul.f32 %v4889_v14, %v6718_v23  ;;  %v5200_v6 = vsub.s32 2, %v6741_v62 }
 0x4ac   :  { %v4850_v19 = vpop.f32.mrf.mxu0  ;;  %v4891_v4 = vpop.f32.mrf.mxu1  ;;  %v5208_v14 = vsub.s32 4, %v6741_v62 }
 0x4ad   :  { %v5150_v20 = vadd.f32 %v5145_v16, %v5140_v13  ;;  %v5152_v22 = vadd.f32 %v5147_v18, %v5142_v43  ;;  %v5204_v13 = vsub.s32 3, %v6741_v62 }
 0x4ae   :  { %v4851_v56 = vpop.f32.mrf.mxu0  ;;  %v4892_v39 = vpop.f32.mrf.mxu1 }
 0x4af   :  { %v5205_v4 = vrot.slane %v5188_v50, %v5204_v13 }
 0x4e8   :  { %v4928_v17 = vpop.f32.mrf.mxu0  ;;  %v4969_v24 = vpop.f32.mrf.mxu1 }
 0x4e9   :  { %v5148_v25 = vmul.f32 %v4928_v17, %v6718_v23  ;;  %v5155_v53 = vmul.f32 %v4969_v24, %v6732_v42 }
 0x4ea   :  { %v4930_v26 = vpop.f32.mrf.mxu0  ;;  %v4971_v27 = vpop.f32.mrf.mxu1 }
 0x4eb   :  { %v5153_v28 = vadd.f32 %v5148_v25, %v5143_v52  ;;  %v5160_v29 = vadd.f32 %v5155_v53, %v5150_v20  ;;  %v5149_v31 = vmul.f32 %v4930_v26, %v6718_v23  ;;  %v5156_v32 = vmul.f32 %v4971_v27, %v6732_v42 }
 0x4ec   :  { %v4932_v33 = vpop.f32.mrf.mxu0  ;;  %v4973_v34 = vpop.f32.mrf.mxu1 }
 0x4ed   :  { %v5154_v35 = vadd.f32 %v5149_v31, %v5144_v30  ;;  %v5161_v36 = vadd.f32 %v5156_v32, %v5151_v15  ;;  %v5197_v15 = vrot.slane %v5188_v50, %v6748_v7 }
 0x4ee   :  { %v4933_v37 = vpop.f32.mrf.mxu0  ;;  %v4974_v58 = vpop.f32.mrf.mxu1 }
 0x528   :  { %v5010_v51 = vpop.f32.mrf.mxu0  ;;  %v5051_v54 = vpop.f32.mrf.mxu1 }
 0x529   :  { %v5157_v55 = vmul.f32 %v5010_v51, %v6732_v42  ;;  %v5159_v59 = vmul.f32 %v5051_v54, %v6732_v42 }
 0x52a   :  { %v5012_v60 = vpop.f32.mrf.mxu0  ;;  %v5053_v63 = vpop.f32.mrf.mxu1 }
 0x52b   :  { %v5162_v21 = vadd.f32 %v5157_v55, %v5152_v22  ;;  %v5164_v0 = vadd.f32 %v5159_v59, %v5154_v35  ;;  %v5165_v23 = vmul.f32 %v5053_v63, %v6738_v57  ;;  %v5158_v12 = vmul.f32 %v5012_v60, %v6732_v42 }
 0x52c   :  { %v5014_v3 = vpop.f32.mrf.mxu0  ;;  %v5055_v5 = vpop.f32.mrf.mxu1  ;;  %v5201_v22 = vrot.slane %v5188_v50, %v5200_v6  ;;  %v5209_v42 = vrot.slane %v5188_v50, %v5208_v14 }
 0x52d   :  { %v5170_v8 = vadd.f32 %v5165_v23, %v5160_v29  ;;  %v5163_v2 = vadd.f32 %v5158_v12, %v5153_v28 }
 0x52e   :  { %v5015_v9 = vpop.f32.mrf.mxu0  ;;  %v5056_v10 = vpop.f32.mrf.mxu1 }
 0x52f   :  { %v5215_v11 = vadd.f32 %v5193_v1, %v5170_v8 }
 0x531   :  { %5220 = vst [vmem:[#allocation16] sm:$0xff] %v5215_v11 }
 0x568   :  { %v5092_v43 = vpop.f32.mrf.mxu0  ;;  %v5133_v16 = vpop.f32.mrf.mxu1 }
 0x569   :  { %v5166_v18 = vmul.f32 %v5092_v43, %v6738_v57  ;;  %v5168_v19 = vmul.f32 %v5133_v16, %v6738_v57 }
 0x56a   :  { %v5094_v20 = vpop.f32.mrf.mxu0  ;;  %v5135_v56 = vpop.f32.mrf.mxu1 }
 0x56b   :  { %v5171_v39 = vadd.f32 %v5166_v18, %v5161_v36  ;;  %v5173_v17 = vadd.f32 %v5168_v19, %v5163_v2  ;;  %v5167_v24 = vmul.f32 %v5094_v20, %v6738_v57  ;;  %v5169_v62 = vmul.f32 %v5135_v56, %v6738_v57 }
 0x56c   :  { %v5096_v52 = vpop.f32.mrf.mxu0  ;;  %v5137_v25 = vpop.f32.mrf.mxu1 }
 0x56d   :  { %v5216_v7 = vadd.f32 %v5197_v15, %v5171_v39  ;;  %v5218_v53 = vadd.f32 %v5205_v4, %v5173_v17  ;;  %v5172_v30 = vadd.f32 %v5167_v24, %v5162_v21  ;;  %v5174_v26 = vadd.f32 %v5169_v62, %v5164_v0 }
 0x56e   :  { %v5097_v27 = vpop.f32.mrf.mxu0  ;;  %v5138_v28 = vpop.f32.mrf.mxu1 }
 0x56f   :  { %5221 = vst [vmem:[#allocation16 + $0x8] sm:$0xff] %v5216_v7  ;;  %5223 = vst [vmem:[#allocation16 + $0x18] sm:$0xff] %v5218_v53  ;;  %v5217_v29 = vadd.f32 %v5201_v22, %v5172_v30  ;;  %v5219_v31 = vadd.f32 %v5209_v42, %v5174_v26 }
 0x571   :  { %5222 = vst [vmem:[#allocation16 + $0x10] sm:$0xff] %v5217_v29  ;;  %5224 = vst [vmem:[#allocation16 + $0x20] sm:$0xff] %v5219_v31 }
 0x572   :  { %6591 = shalt.err (!%p6588_p11)
}
 0x573   :  { %5234 = dma.vmem_to_hbm [thread:$0]  %s5232_s2, 640, %s6857_s8, [#allocation7]  }
 0x574   :  { %6612 = dma.done.wait [#allocation7], 640  }
 0x575   :  { %6613 = vsyncadd [#allocation7], 4294966656 }
 0x576   :  { %5238 = vsyncpa [#allocation6], 1 }
 0x577   :  { %5239 = vsyncpa [#allocation11], 1 }
 0x578   :  { %5240 = vsyncpa [#allocation14], 1 }
 0x579   :  { %5241 = vsyncpa [#allocation7], 1 }
 0x57a   :  { %5242 = vsyncpa [#allocation8], 1 }
 0x57b   :  { %5243 = vsyncmov [#allocation4] }
 0x57e   :  { %s5244_s23 = vpop.sfrf %5243 }
 0x57f   :  { %p5931_p12 = scmp.ne.s32.totalorder %s5244_s23, 0 }
 0x581   :  { %5248 = shalt.err (%p5931_p12)  }
 0x582   :  { %5250 = vsyncmov [#allocation4 + $0x1] }
 0x585   :  { %s5251_s24 = vpop.sfrf %5250 }
 0x586   :  { %p5932_p13 = scmp.ne.s32.totalorder %s5251_s24, 0 }
 0x588   :  { %5255 = shalt.err (%p5932_p13)  }

</bundles_post_ra>
